<compile_context>
chip_gen: v7x
topology: tpu7x:2x2x1
jax: 0.10.0
libtpu: 0.0.40
codegen_flags: <defaults>
</compile_context>

<pallas_src>
import functools

import jax
import jax.numpy as jnp
import numpy as np
from jax.experimental import pallas as pl

D_MODEL = 32
N_HEADS = 4
D_HEAD = D_MODEL // N_HEADS
D_FF = 64
_ATTN_SCALE = 1.0 / float(D_HEAD) ** 0.5
NEG_INF = -1e9
LN_EPS = 1e-5
MXU_DTYPE = jnp.bfloat16          # dot-boundary cast only; elementwise stays f32


# --------------------------- packed-parameter layout --------------------------
# Static (module-level) layout: every parameter gets an 8-row-aligned slot in a
# [rows, 96]-column f32 slab, so in-kernel unpacking is pure static slicing.

ENC_PARAM_SHAPES = (
    ("wqkv", (D_MODEL, 3 * D_MODEL)), ("bqkv", (1, 3 * D_MODEL)),
    ("wo", (D_MODEL, D_MODEL)), ("bo", (1, D_MODEL)),
    ("ln1", (2, D_MODEL)),
    ("w1", (D_MODEL, D_FF)), ("b1", (1, D_FF)),
    ("w2", (D_FF, D_MODEL)), ("b2", (1, D_MODEL)),
    ("ln2", (2, D_MODEL)),
)
DEC_PARAM_SHAPES = (
    ("sa_wqkv", (D_MODEL, 3 * D_MODEL)), ("sa_bqkv", (1, 3 * D_MODEL)),
    ("sa_wo", (D_MODEL, D_MODEL)), ("sa_bo", (1, D_MODEL)),
    ("ln1", (2, D_MODEL)),
    ("ca_wq", (D_MODEL, D_MODEL)), ("ca_bq", (1, D_MODEL)),
    ("ca_wkv", (D_MODEL, 2 * D_MODEL)), ("ca_bkv", (1, 2 * D_MODEL)),
    ("ca_wo", (D_MODEL, D_MODEL)), ("ca_bo", (1, D_MODEL)),
    ("ln2", (2, D_MODEL)),
    ("w1", (D_MODEL, D_FF)), ("b1", (1, D_FF)),
    ("w2", (FF := D_FF, D_MODEL)), ("b2", (1, D_MODEL)),
    ("ln3", (2, D_MODEL)),
)


def _make_layout(shapes):
    cols = max(c for _, (_, c) in shapes)
    layout, off = {}, 0
    for name, (r, c) in shapes:
        layout[name] = (off, r, c)
        off += -(-r // 8) * 8          # sublane(8)-aligned row slots
    return layout, off, cols


ENC_LAYOUT, ENC_ROWS, ENC_COLS = _make_layout(ENC_PARAM_SHAPES)
DEC_LAYOUT, DEC_ROWS, DEC_COLS = _make_layout(DEC_PARAM_SHAPES)


def _pack(params, shapes, layout, rows, cols):
    buf = jnp.zeros((rows, cols), jnp.float32)
    for name, (r, c) in shapes:
        off = layout[name][0]
        buf = buf.at[off:off + r, :c].set(params[name].astype(jnp.float32))
    return buf


def _unpack(buf, layout):
    """Static slices of the VMEM-resident packed slab (zero runtime cost)."""
    return {n: buf[o:o + r, :c] for n, (o, r, c) in layout.items()}


# ----------------------- in-kernel building blocks ---------------------------

def _attend_proj(q, k, v, bias, wo):
    """Multi-head attention fused with the output projection.

    q:[Nq,D] k,v:[Nk,D] f32, bias:[Nq,Nk] additive (block-diagonal per batch),
    wo:[D,D].  Per head: acc += softmax(q_h k_h^T * scale + bias) @ v_h @ wo_h.
    No lane concat; heads accumulate straight into the [Nq,D] result.
    """
    acc = None
    for h in range(N_HEADS):
        sl = slice(h * D_HEAD, (h + 1) * D_HEAD)
        qh = q[:, sl].astype(MXU_DTYPE)
        kh = k[:, sl].astype(MXU_DTYPE)
        # q @ k^T without an explicit transpose: contract last dims of both.
        s = jax.lax.dot_general(qh, kh, (((1,), (1,)), ((), ())),
                                preferred_element_type=jnp.float32)
        s = s * _ATTN_SCALE + bias
        m = jnp.max(s, axis=-1, keepdims=True)
        e = jnp.exp(s - m)                      # off-batch blocks underflow to 0
        denom = jnp.sum(e, axis=-1, keepdims=True)
        p = (e * pl.reciprocal(denom, approx=True)).astype(MXU_DTYPE)
        ov = jnp.dot(p, v[:, sl].astype(MXU_DTYPE),
                     preferred_element_type=jnp.float32)
        contrib = jnp.dot(ov.astype(MXU_DTYPE), wo[sl, :].astype(MXU_DTYPE),
                          preferred_element_type=jnp.float32)
        acc = contrib if acc is None else acc + contrib
    return acc


def _ln_res(x, r, ln):
    """LayerNorm(x + r), ln packed as [2, D] (row0=gamma, row1=beta); f32."""
    h = x + r
    mu = jnp.mean(h, axis=-1, keepdims=True)
    d = h - mu
    var = jnp.mean(d * d, axis=-1, keepdims=True)
    return d * jax.lax.rsqrt(var + LN_EPS) * ln[0:1, :] + ln[1:2, :]


def _ffn(x, p):
    h = jnp.dot(x.astype(MXU_DTYPE), p["w1"].astype(MXU_DTYPE),
                preferred_element_type=jnp.float32) + p["b1"]
    h = jnp.maximum(h, 0.0)
    return jnp.dot(h.astype(MXU_DTYPE), p["w2"].astype(MXU_DTYPE),
                   preferred_element_type=jnp.float32) + p["b2"]


def _encoder_block(x, bias, p):
    """One post-LN encoder layer over the folded batch.  x:[B*S,D]."""
    qkv = jnp.dot(x.astype(MXU_DTYPE), p["wqkv"].astype(MXU_DTYPE),
                  preferred_element_type=jnp.float32) + p["bqkv"]
    q = qkv[:, 0:D_MODEL]
    k = qkv[:, D_MODEL:2 * D_MODEL]
    v = qkv[:, 2 * D_MODEL:3 * D_MODEL]
    x = _ln_res(x, _attend_proj(q, k, v, bias, p["wo"]) + p["bo"], p["ln1"])
    return _ln_res(x, _ffn(x, p), p["ln2"])


def _decoder_block(y, mem, self_bias, cross_bias, p):
    """One post-LN decoder layer over the folded batch.  y:[B*T,D] mem:[B*S,D]."""
    qkv = jnp.dot(y.astype(MXU_DTYPE), p["sa_wqkv"].astype(MXU_DTYPE),
                  preferred_element_type=jnp.float32) + p["sa_bqkv"]
    q = qkv[:, 0:D_MODEL]
    k = qkv[:, D_MODEL:2 * D_MODEL]
    v = qkv[:, 2 * D_MODEL:3 * D_MODEL]
    y = _ln_res(y, _attend_proj(q, k, v, self_bias, p["sa_wo"]) + p["sa_bo"],
                p["ln1"])

    q = jnp.dot(y.astype(MXU_DTYPE), p["ca_wq"].astype(MXU_DTYPE),
                preferred_element_type=jnp.float32) + p["ca_bq"]
    kv = jnp.dot(mem.astype(MXU_DTYPE), p["ca_wkv"].astype(MXU_DTYPE),
                 preferred_element_type=jnp.float32) + p["ca_bkv"]
    k = kv[:, 0:D_MODEL]
    v = kv[:, D_MODEL:2 * D_MODEL]
    y = _ln_res(y, _attend_proj(q, k, v, cross_bias, p["ca_wo"]) + p["ca_bo"],
                p["ln2"])

    return _ln_res(y, _ffn(y, p), p["ln3"])


# ----------------------------------- kernels ----------------------------------
# No grid: one invocation, every operand is a single whole-array VMEM block.

def _forward_kernel(src_ref, tgt_ref, bias_ref, encw_ref, decw_ref, out_ref,
                    *, ns, nt):
    enc_p = _unpack(encw_ref[...], ENC_LAYOUT)
    dec_p = _unpack(decw_ref[...], DEC_LAYOUT)
    bias = bias_ref[...]                              # [3, Qmax, Kmax]
    enc_bias = bias[0, :ns, :ns]
    self_bias = bias[1, :nt, :nt]
    cross_bias = bias[2, :nt, :ns]
    mem = _encoder_block(src_ref[...], enc_bias, enc_p)
    out_ref[...] = _decoder_block(tgt_ref[...], mem, self_bias, cross_bias,
                                  dec_p)


def _encoder_kernel(src_ref, bias_ref, encw_ref, out_ref):
    enc_p = _unpack(encw_ref[...], ENC_LAYOUT)
    out_ref[...] = _encoder_block(src_ref[...], bias_ref[...], enc_p)


def _decoder_kernel(tgt_ref, mem_ref, bias_ref, decw_ref, out_ref, *, ns, nt):
    dec_p = _unpack(decw_ref[...], DEC_LAYOUT)
    bias = bias_ref[...]                              # [2, Qmax, Kmax]
    out_ref[...] = _decoder_block(tgt_ref[...], mem_ref[...],
                                  bias[0, :nt, :nt], bias[1, :nt, :ns], dec_p)


# --------------------------------- mask glue -----------------------------------

def _per_batch_bias(attn_mask, key_padding_mask, B, Sq, Sk):
    """Additive bias [B, Sq, Sk]: 0 where attending is allowed, NEG_INF else."""
    allowed = jnp.ones((B, Sq, Sk), jnp.bool_)
    if attn_mask is not None:
        allowed = jnp.logical_and(allowed, attn_mask.astype(jnp.bool_)[None])
    if key_padding_mask is not None:
        allowed = jnp.logical_and(
            allowed,
            jnp.logical_not(key_padding_mask.astype(jnp.bool_))[:, None, :])
    return jnp.where(allowed, 0.0, NEG_INF).astype(jnp.float32)


def _block_diag_bias(attn_mask, key_padding_mask, B, Sq, Sk):
    """Block-diagonal bias [B*Sq, B*Sk]: per-batch bias on the diagonal blocks,
    NEG_INF off-diagonal (isolates batches inside the folded attention)."""
    per = _per_batch_bias(attn_mask, key_padding_mask, B, Sq, Sk)
    same = jnp.arange(B)[:, None] == jnp.arange(B)[None, :]          # [B, B]
    bd = jnp.where(same[:, None, :, None], per[:, :, None, :], NEG_INF)
    return bd.reshape(B * Sq, B * Sk)


def _stack_biases(biases):
    """Stack differently-shaped 2D biases into one [n, Qmax, Kmax] operand
    (padding value irrelevant: the kernel slices statically)."""
    qmax = max(b.shape[0] for b in biases)
    kmax = max(b.shape[1] for b in biases)
    out = jnp.full((len(biases), qmax, kmax), NEG_INF, jnp.float32)
    for i, b in enumerate(biases):
        out = out.at[i, :b.shape[0], :b.shape[1]].set(b)
    return out


def _and_masks(a, b):
    if a is None:
        return b
    if b is None:
        return a
    return jnp.logical_and(a.astype(jnp.bool_), b.astype(jnp.bool_))


# ----------------------------- jitted entry points ------------------------------

@jax.jit
def _forward_call(src, tgt, src_mask, tgt_mask, memory_mask,
                  src_padding_mask, tgt_padding_mask, memory_key_padding_mask,
                  enc_pack, dec_pack):
    B, S, _ = src.shape
    T = tgt.shape[1]
    # Spec semantics: encoder gets src_padding_mask; src_mask goes to the
    # decoder's cross-attention (optionally ANDed with memory_mask).
    enc_bias = _block_diag_bias(None, src_padding_mask, B, S, S)
    self_bias = _block_diag_bias(tgt_mask, tgt_padding_mask, B, T, T)
    cross_bias = _block_diag_bias(_and_masks(src_mask, memory_mask),
                                  memory_key_padding_mask, B, T, S)
    bias_stack = _stack_biases([enc_bias, self_bias, cross_bias])

    kern = functools.partial(_forward_kernel, ns=B * S, nt=B * T)
    out2 = pl.pallas_call(
        kern,
        out_shape=jax.ShapeDtypeStruct((B * T, D_MODEL), jnp.float32),
    )(src.reshape(B * S, D_MODEL), tgt.reshape(B * T, D_MODEL),
      bias_stack, enc_pack, dec_pack)
    return out2.reshape(B, T, D_MODEL)


@jax.jit
def _encode_call(src, src_mask, enc_pack):
    B, S, _ = src.shape
    bias = _block_diag_bias(src_mask, None, B, S, S)
    out2 = pl.pallas_call(
        _encoder_kernel,
        out_shape=jax.ShapeDtypeStruct((B * S, D_MODEL), jnp.float32),
    )(src.reshape(B * S, D_MODEL), bias, enc_pack)
    return out2.reshape(B, S, D_MODEL)


@jax.jit
def _decode_call(tgt, memory, tgt_mask, src_mask, dec_pack):
    B, T, _ = tgt.shape
    S = memory.shape[1]
    self_bias = _block_diag_bias(tgt_mask, None, B, T, T)
    cross_bias = _block_diag_bias(src_mask, None, B, T, S)
    bias_stack = _stack_biases([self_bias, cross_bias])

    kern = functools.partial(_decoder_kernel, ns=B * S, nt=B * T)
    out2 = pl.pallas_call(
        kern,
        out_shape=jax.ShapeDtypeStruct((B * T, D_MODEL), jnp.float32),
    )(tgt.reshape(B * T, D_MODEL), memory.reshape(B * S, D_MODEL),
      bias_stack, dec_pack)
    return out2.reshape(B, T, D_MODEL)


# -------------------------------- module wrapper --------------------------------

class EncoderDecoder:
    """Mirrors the PyTorch EncoderDecoder.forward semantics:
         memory = encoder(src, src_padding_mask)
         out    = decoder(tgt, memory, tgt_mask, src_mask, memory_mask, ...)
    Each public entry point runs as ONE fused, ungridded Pallas kernel."""

    def __init__(self, params):
        self.enc_pack = _pack(params["encoder"], ENC_PARAM_SHAPES, ENC_LAYOUT,
                              ENC_ROWS, ENC_COLS)
        self.dec_pack = _pack(params["decoder"], DEC_PARAM_SHAPES, DEC_LAYOUT,
                              DEC_ROWS, DEC_COLS)

    def encode(self, src, src_mask=None):
        """src: [B,S,D]; src_mask: optional bool [S,S] attention mask."""
        return _encode_call(src, src_mask, self.enc_pack)

    def decode(self, memory, src_mask, tgt, tgt_mask):
        """memory:[B,S,D], tgt:[B,T,D]; tgt_mask:[T,T] self-attn mask,
        src_mask:[T,S] cross-attn mask (True = attend)."""
        return _decode_call(tgt, memory, tgt_mask, src_mask, self.dec_pack)

    def __call__(self, src, tgt, src_mask, tgt_mask, memory_mask=None,
                 src_padding_mask=None, tgt_padding_mask=None,
                 memory_key_padding_mask=None):
        return _forward_call(src, tgt, src_mask, tgt_mask, memory_mask,
                             src_padding_mask, tgt_padding_mask,
                             memory_key_padding_mask,
                             self.enc_pack, self.dec_pack)


# -------------------------------- parameter init --------------------------------

def _w(key, shape):
    return (0.02 * jax.random.normal(key, shape)).astype(jnp.float32)


def init_params(key):
    ke, kd = jax.random.split(key)
    ke = jax.random.split(ke, 6)
    kd = jax.random.split(kd, 10)
    ln = jnp.stack([jnp.ones((D_MODEL,), jnp.float32),
                    jnp.zeros((D_MODEL,), jnp.float32)])       # [2, D]
    zD = jnp.zeros((1, D_MODEL), jnp.float32)
    enc = {
        "wqkv": jnp.concatenate([_w(ke[0], (D_MODEL, D_MODEL)),
                                 _w(ke[1], (D_MODEL, D_MODEL)),
                                 _w(ke[2], (D_MODEL, D_MODEL))], axis=1),
        "bqkv": jnp.zeros((1, 3 * D_MODEL), jnp.float32),
        "wo": _w(ke[3], (D_MODEL, D_MODEL)), "bo": zD,
        "ln1": ln,
        "w1": _w(ke[4], (D_MODEL, D_FF)),
        "b1": jnp.zeros((1, D_FF), jnp.float32),
        "w2": _w(ke[5], (D_FF, D_MODEL)), "b2": zD,
        "ln2": ln,
    }
    dec = {
        "sa_wqkv": jnp.concatenate([_w(kd[0], (D_MODEL, D_MODEL)),
                                    _w(kd[1], (D_MODEL, D_MODEL)),
                                    _w(kd[2], (D_MODEL, D_MODEL))], axis=1),
        "sa_bqkv": jnp.zeros((1, 3 * D_MODEL), jnp.float32),
        "sa_wo": _w(kd[3], (D_MODEL, D_MODEL)), "sa_bo": zD,
        "ln1": ln,
        "ca_wq": _w(kd[4], (D_MODEL, D_MODEL)), "ca_bq": zD,
        "ca_wkv": jnp.concatenate([_w(kd[5], (D_MODEL, D_MODEL)),
                                   _w(kd[6], (D_MODEL, D_MODEL))], axis=1),
        "ca_bkv": jnp.zeros((1, 2 * D_MODEL), jnp.float32),
        "ca_wo": _w(kd[7], (D_MODEL, D_MODEL)), "ca_bo": zD,
        "ln2": ln,
        "w1": _w(kd[8], (D_MODEL, D_FF)),
        "b1": jnp.zeros((1, D_FF), jnp.float32),
        "w2": _w(kd[9], (D_FF, D_MODEL)), "b2": zD,
        "ln3": ln,
    }
    return {"encoder": enc, "decoder": dec}


# ------------------------------- pure-JAX reference ------------------------------

def _ref_mha(q, k, v, bias):
    B, Sq, _ = q.shape
    Sk = k.shape[1]
    qh = q.reshape(B, Sq, N_HEADS, D_HEAD).transpose(0, 2, 1, 3)
    kh = k.reshape(B, Sk, N_HEADS, D_HEAD).transpose(0, 2, 1, 3)
    vh = v.reshape(B, Sk, N_HEADS, D_HEAD).transpose(0, 2, 1, 3)
    s = jnp.einsum("bhqd,bhkd->bhqk", qh, kh) * _ATTN_SCALE + bias[:, None]
    p = jax.nn.softmax(s, axis=-1)
    o = jnp.einsum("bhqk,bhkd->bhqd", p, vh)
    return o.transpose(0, 2, 1, 3).reshape(B, Sq, D_MODEL)


def _ref_ln(x, ln):
    mu = x.mean(-1, keepdims=True)
    d = x - mu
    var = (d * d).mean(-1, keepdims=True)
    return d * jax.lax.rsqrt(var + LN_EPS) * ln[0] + ln[1]


def _ref_encoder(x, bias, p):
    qkv = x @ p["wqkv"] + p["bqkv"][0]
    q, k, v = jnp.split(qkv, 3, axis=-1)
    attn = _ref_mha(q, k, v, bias) @ p["wo"] + p["bo"][0]
    x = _ref_ln(x + attn, p["ln1"])
    ff = jax.nn.relu(x @ p["w1"] + p["b1"][0]) @ p["w2"] + p["b2"][0]
    return _ref_ln(x + ff, p["ln2"])


def _ref_decoder(y, mem, sb, cb, p):
    qkv = y @ p["sa_wqkv"] + p["sa_bqkv"][0]
    q, k, v = jnp.split(qkv, 3, axis=-1)
    sattn = _ref_mha(q, k, v, sb) @ p["sa_wo"] + p["sa_bo"][0]
    y = _ref_ln(y + sattn, p["ln1"])
    q = y @ p["ca_wq"] + p["ca_bq"][0]
    kv = mem @ p["ca_wkv"] + p["ca_bkv"][0]
    k, v = jnp.split(kv, 2, axis=-1)
    cattn = _ref_mha(q, k, v, cb) @ p["ca_wo"] + p["ca_bo"][0]
    y = _ref_ln(y + cattn, p["ln2"])
    ff = jax.nn.relu(y @ p["w1"] + p["b1"][0]) @ p["w2"] + p["b2"][0]
    return _ref_ln(y + ff, p["ln3"])


# ---------------------------------------- main ------------------------------------

if __name__ == "__main__":
    B, S_SRC, S_TGT = 2, 8, 8
    root = jax.random.PRNGKey(0)
    k_src, k_tgt, k_par = jax.random.split(root, 3)

    src = jax.random.normal(k_src, (B, S_SRC, D_MODEL), jnp.float32)
    tgt = jax.random.normal(k_tgt, (B, S_TGT, D_MODEL), jnp.float32)

    src_mask = jnp.ones((S_TGT, S_SRC), jnp.bool_)             # cross-attn (all)
    tgt_mask = jnp.tril(jnp.ones((S_TGT, S_TGT), jnp.bool_))   # causal self-attn
    src_padding = jnp.zeros((B, S_SRC), jnp.bool_).at[:, -1].set(True)  # PAD

    params = init_params(k_par)
    model = EncoderDecoder(params)

    out = model(src, tgt, src_mask, tgt_mask, src_padding_mask=src_padding)
    out = jax.block_until_ready(out)
    assert out.shape == (B, S_TGT, D_MODEL) and out.dtype == jnp.float32

    # Exercise the standalone encode()/decode() paths too.
    mem = jax.block_until_ready(
        model.encode(src, jnp.ones((S_SRC, S_SRC), jnp.bool_)))
    dec = jax.block_until_ready(model.decode(mem, src_mask, tgt, tgt_mask))
    assert mem.shape == (B, S_SRC, D_MODEL) and dec.shape == (B, S_TGT, D_MODEL)
    assert bool(jnp.all(jnp.isfinite(mem))) and bool(jnp.all(jnp.isfinite(dec)))

    # Correctness check against a pure-JAX f32 reference.  Tolerance covers the
    # bf16 MXU feeds and the EUP approximate reciprocal in the softmax.
    enc_p, dec_p = params["encoder"], params["decoder"]
    enc_bias = _per_batch_bias(None, src_padding, B, S_SRC, S_SRC)
    dec_self_bias = _per_batch_bias(tgt_mask, None, B, S_TGT, S_TGT)
    dec_cross_bias = _per_batch_bias(src_mask, None, B, S_TGT, S_SRC)
    with jax.default_matmul_precision("highest"):
        ref_mem = _ref_encoder(src, enc_bias, enc_p)
        ref_out = _ref_decoder(tgt, ref_mem, dec_self_bias, dec_cross_bias,
                               dec_p)
    np.testing.assert_allclose(np.asarray(out), np.asarray(ref_out),
                               rtol=2e-2, atol=2e-2)
    assert bool(jnp.all(jnp.isfinite(out)))
    print("KERNEL_OK")
</pallas_src>

<mosaic_0001>
module attributes {stable_mosaic.version = 11 : i64} {
  func.func @_forward_kernel(%arg0: memref<16x32xf32, #tpu.memory_space<vmem>>, %arg1: memref<16x32xf32, #tpu.memory_space<vmem>>, %arg2: memref<3x16x16xf32, #tpu.memory_space<vmem>>, %arg3: memref<208x96xf32, #tpu.memory_space<vmem>>, %arg4: memref<336x96xf32, #tpu.memory_space<vmem>>, %arg5: memref<16x32xf32, #tpu.memory_space<vmem>>) attributes {dimension_semantics = [], scalar_prefetch = 0 : i64, scratch_operands = 0 : i64, tpu.core_type = #tpu.core_type<tc>} {
    %c0 = arith.constant 0 : index
    %c0_0 = arith.constant 0 : index
    %0 = vector.load %arg3[%c0, %c0_0] : memref<208x96xf32, #tpu.memory_space<vmem>>, vector<208x96xf32>
    %1 = vector.extract_strided_slice %0 {offsets = [0, 0], sizes = [32, 96], strides = [1, 1]} : vector<208x96xf32> to vector<32x96xf32>
    %2 = vector.extract_strided_slice %0 {offsets = [32, 0], sizes = [1, 96], strides = [1, 1]} : vector<208x96xf32> to vector<1x96xf32>
    %3 = vector.extract_strided_slice %0 {offsets = [40, 0], sizes = [32, 32], strides = [1, 1]} : vector<208x96xf32> to vector<32x32xf32>
    %4 = vector.extract_strided_slice %0 {offsets = [72, 0], sizes = [1, 32], strides = [1, 1]} : vector<208x96xf32> to vector<1x32xf32>
    %5 = vector.extract_strided_slice %0 {offsets = [80, 0], sizes = [2, 32], strides = [1, 1]} : vector<208x96xf32> to vector<2x32xf32>
    %6 = vector.extract_strided_slice %0 {offsets = [88, 0], sizes = [32, 64], strides = [1, 1]} : vector<208x96xf32> to vector<32x64xf32>
    %7 = vector.extract_strided_slice %0 {offsets = [120, 0], sizes = [1, 64], strides = [1, 1]} : vector<208x96xf32> to vector<1x64xf32>
    %8 = vector.extract_strided_slice %0 {offsets = [128, 0], sizes = [64, 32], strides = [1, 1]} : vector<208x96xf32> to vector<64x32xf32>
    %9 = vector.extract_strided_slice %0 {offsets = [192, 0], sizes = [1, 32], strides = [1, 1]} : vector<208x96xf32> to vector<1x32xf32>
    %10 = vector.extract_strided_slice %0 {offsets = [200, 0], sizes = [2, 32], strides = [1, 1]} : vector<208x96xf32> to vector<2x32xf32>
    %c0_1 = arith.constant 0 : index
    %c0_2 = arith.constant 0 : index
    %11 = vector.load %arg4[%c0_1, %c0_2] : memref<336x96xf32, #tpu.memory_space<vmem>>, vector<336x96xf32>
    %12 = vector.extract_strided_slice %11 {offsets = [0, 0], sizes = [32, 96], strides = [1, 1]} : vector<336x96xf32> to vector<32x96xf32>
    %13 = vector.extract_strided_slice %11 {offsets = [32, 0], sizes = [1, 96], strides = [1, 1]} : vector<336x96xf32> to vector<1x96xf32>
    %14 = vector.extract_strided_slice %11 {offsets = [40, 0], sizes = [32, 32], strides = [1, 1]} : vector<336x96xf32> to vector<32x32xf32>
    %15 = vector.extract_strided_slice %11 {offsets = [72, 0], sizes = [1, 32], strides = [1, 1]} : vector<336x96xf32> to vector<1x32xf32>
    %16 = vector.extract_strided_slice %11 {offsets = [80, 0], sizes = [2, 32], strides = [1, 1]} : vector<336x96xf32> to vector<2x32xf32>
    %17 = vector.extract_strided_slice %11 {offsets = [88, 0], sizes = [32, 32], strides = [1, 1]} : vector<336x96xf32> to vector<32x32xf32>
    %18 = vector.extract_strided_slice %11 {offsets = [120, 0], sizes = [1, 32], strides = [1, 1]} : vector<336x96xf32> to vector<1x32xf32>
    %19 = vector.extract_strided_slice %11 {offsets = [128, 0], sizes = [32, 64], strides = [1, 1]} : vector<336x96xf32> to vector<32x64xf32>
    %20 = vector.extract_strided_slice %11 {offsets = [160, 0], sizes = [1, 64], strides = [1, 1]} : vector<336x96xf32> to vector<1x64xf32>
    %21 = vector.extract_strided_slice %11 {offsets = [168, 0], sizes = [32, 32], strides = [1, 1]} : vector<336x96xf32> to vector<32x32xf32>
    %22 = vector.extract_strided_slice %11 {offsets = [200, 0], sizes = [1, 32], strides = [1, 1]} : vector<336x96xf32> to vector<1x32xf32>
    %23 = vector.extract_strided_slice %11 {offsets = [208, 0], sizes = [2, 32], strides = [1, 1]} : vector<336x96xf32> to vector<2x32xf32>
    %24 = vector.extract_strided_slice %11 {offsets = [216, 0], sizes = [32, 64], strides = [1, 1]} : vector<336x96xf32> to vector<32x64xf32>
    %25 = vector.extract_strided_slice %11 {offsets = [248, 0], sizes = [1, 64], strides = [1, 1]} : vector<336x96xf32> to vector<1x64xf32>
    %26 = vector.extract_strided_slice %11 {offsets = [256, 0], sizes = [64, 32], strides = [1, 1]} : vector<336x96xf32> to vector<64x32xf32>
    %27 = vector.extract_strided_slice %11 {offsets = [320, 0], sizes = [1, 32], strides = [1, 1]} : vector<336x96xf32> to vector<1x32xf32>
    %28 = vector.extract_strided_slice %11 {offsets = [328, 0], sizes = [2, 32], strides = [1, 1]} : vector<336x96xf32> to vector<2x32xf32>
    %c0_3 = arith.constant 0 : index
    %c0_4 = arith.constant 0 : index
    %c0_5 = arith.constant 0 : index
    %29 = vector.load %arg2[%c0_3, %c0_4, %c0_5] : memref<3x16x16xf32, #tpu.memory_space<vmem>>, vector<3x16x16xf32>
    %30 = vector.extract_strided_slice %29 {offsets = [0, 0, 0], sizes = [1, 16, 16], strides = [1, 1, 1]} : vector<3x16x16xf32> to vector<1x16x16xf32>
    %31 = vector.shape_cast %30 : vector<1x16x16xf32> to vector<16x16xf32>
    %32 = vector.extract_strided_slice %29 {offsets = [1, 0, 0], sizes = [1, 16, 16], strides = [1, 1, 1]} : vector<3x16x16xf32> to vector<1x16x16xf32>
    %33 = vector.shape_cast %32 : vector<1x16x16xf32> to vector<16x16xf32>
    %34 = vector.extract_strided_slice %29 {offsets = [2, 0, 0], sizes = [1, 16, 16], strides = [1, 1, 1]} : vector<3x16x16xf32> to vector<1x16x16xf32>
    %35 = vector.shape_cast %34 : vector<1x16x16xf32> to vector<16x16xf32>
    %c0_6 = arith.constant 0 : index
    %c0_7 = arith.constant 0 : index
    %36 = vector.load %arg0[%c0_6, %c0_7] : memref<16x32xf32, #tpu.memory_space<vmem>>, vector<16x32xf32>
    %37 = arith.truncf %36 : vector<16x32xf32> to vector<16x32xbf16>
    %38 = arith.truncf %1 : vector<32x96xf32> to vector<32x96xbf16>
    %cst = arith.constant dense<0.000000e+00> : vector<16x96xf32>
    %39 = tpu.matmul %37, %38, %cst {dimension_numbers = #tpu.dot_dimension_numbers<[1], [0], [0], [1], [0, 0, 1, 1], [], []>} : vector<16x32xbf16>, vector<32x96xbf16>, vector<16x96xf32> -> vector<16x96xf32>
    %40 = vector.broadcast %2 : vector<1x96xf32> to vector<16x96xf32>
    %41 = arith.addf %39, %40 : vector<16x96xf32>
    %42 = vector.extract_strided_slice %41 {offsets = [0, 0], sizes = [16, 32], strides = [1, 1]} : vector<16x96xf32> to vector<16x32xf32>
    %43 = vector.extract_strided_slice %41 {offsets = [0, 32], sizes = [16, 32], strides = [1, 1]} : vector<16x96xf32> to vector<16x32xf32>
    %44 = vector.extract_strided_slice %41 {offsets = [0, 64], sizes = [16, 32], strides = [1, 1]} : vector<16x96xf32> to vector<16x32xf32>
    %45 = vector.extract_strided_slice %42 {offsets = [0, 0], sizes = [16, 8], strides = [1, 1]} : vector<16x32xf32> to vector<16x8xf32>
    %46 = arith.truncf %45 : vector<16x8xf32> to vector<16x8xbf16>
    %47 = vector.extract_strided_slice %43 {offsets = [0, 0], sizes = [16, 8], strides = [1, 1]} : vector<16x32xf32> to vector<16x8xf32>
    %48 = arith.truncf %47 : vector<16x8xf32> to vector<16x8xbf16>
    %cst_8 = arith.constant dense<0.000000e+00> : vector<16x16xf32>
    %49 = tpu.matmul %46, %48, %cst_8 {dimension_numbers = #tpu.dot_dimension_numbers<[1], [1], [0], [0], [0, 0, 1, 0], [], []>} : vector<16x8xbf16>, vector<16x8xbf16>, vector<16x16xf32> -> vector<16x16xf32>
    %cst_9 = arith.constant 0.353553385 : f32
    %50 = vector.broadcast %cst_9 : f32 to vector<16x16xf32>
    %51 = arith.mulf %49, %50 : vector<16x16xf32>
    %52 = arith.addf %51, %31 : vector<16x16xf32>
    %cst_10 = arith.constant dense<0xFF800000> : vector<16xf32>
    %53 = vector.multi_reduction <maximumf>, %52, %cst_10 [1] : vector<16x16xf32> to vector<16xf32>
    %54 = vector.shape_cast %53 : vector<16xf32> to vector<16x1xf32>
    %55 = vector.broadcast %54 : vector<16x1xf32> to vector<16x16xf32>
    %56 = arith.subf %52, %55 : vector<16x16xf32>
    %57 = math.exp %56 : vector<16x16xf32>
    %cst_11 = arith.constant dense<0.000000e+00> : vector<16xf32>
    %58 = vector.multi_reduction <add>, %57, %cst_11 [1] : vector<16x16xf32> to vector<16xf32>
    %59 = vector.shape_cast %58 : vector<16xf32> to vector<16x1xf32>
    %60 = tpu.reciprocal %59 {approx = true} : vector<16x1xf32> -> vector<16x1xf32>
    %61 = vector.broadcast %60 : vector<16x1xf32> to vector<16x16xf32>
    %62 = arith.mulf %57, %61 : vector<16x16xf32>
    %63 = arith.truncf %62 : vector<16x16xf32> to vector<16x16xbf16>
    %64 = vector.extract_strided_slice %44 {offsets = [0, 0], sizes = [16, 8], strides = [1, 1]} : vector<16x32xf32> to vector<16x8xf32>
    %65 = arith.truncf %64 : vector<16x8xf32> to vector<16x8xbf16>
    %cst_12 = arith.constant dense<0.000000e+00> : vector<16x8xf32>
    %66 = tpu.matmul %63, %65, %cst_12 {dimension_numbers = #tpu.dot_dimension_numbers<[1], [0], [0], [1], [0, 0, 1, 1], [], []>} : vector<16x16xbf16>, vector<16x8xbf16>, vector<16x8xf32> -> vector<16x8xf32>
    %67 = arith.truncf %66 : vector<16x8xf32> to vector<16x8xbf16>
    %68 = vector.extract_strided_slice %3 {offsets = [0, 0], sizes = [8, 32], strides = [1, 1]} : vector<32x32xf32> to vector<8x32xf32>
    %69 = arith.truncf %68 : vector<8x32xf32> to vector<8x32xbf16>
    %cst_13 = arith.constant dense<0.000000e+00> : vector<16x32xf32>
    %70 = tpu.matmul %67, %69, %cst_13 {dimension_numbers = #tpu.dot_dimension_numbers<[1], [0], [0], [1], [0, 0, 1, 1], [], []>} : vector<16x8xbf16>, vector<8x32xbf16>, vector<16x32xf32> -> vector<16x32xf32>
    %71 = vector.extract_strided_slice %42 {offsets = [0, 8], sizes = [16, 8], strides = [1, 1]} : vector<16x32xf32> to vector<16x8xf32>
    %72 = arith.truncf %71 : vector<16x8xf32> to vector<16x8xbf16>
    %73 = vector.extract_strided_slice %43 {offsets = [0, 8], sizes = [16, 8], strides = [1, 1]} : vector<16x32xf32> to vector<16x8xf32>
    %74 = arith.truncf %73 : vector<16x8xf32> to vector<16x8xbf16>
    %cst_14 = arith.constant dense<0.000000e+00> : vector<16x16xf32>
    %75 = tpu.matmul %72, %74, %cst_14 {dimension_numbers = #tpu.dot_dimension_numbers<[1], [1], [0], [0], [0, 0, 1, 0], [], []>} : vector<16x8xbf16>, vector<16x8xbf16>, vector<16x16xf32> -> vector<16x16xf32>
    %cst_15 = arith.constant 0.353553385 : f32
    %76 = vector.broadcast %cst_15 : f32 to vector<16x16xf32>
    %77 = arith.mulf %75, %76 : vector<16x16xf32>
    %78 = arith.addf %77, %31 : vector<16x16xf32>
    %cst_16 = arith.constant dense<0xFF800000> : vector<16xf32>
    %79 = vector.multi_reduction <maximumf>, %78, %cst_16 [1] : vector<16x16xf32> to vector<16xf32>
    %80 = vector.shape_cast %79 : vector<16xf32> to vector<16x1xf32>
    %81 = vector.broadcast %80 : vector<16x1xf32> to vector<16x16xf32>
    %82 = arith.subf %78, %81 : vector<16x16xf32>
    %83 = math.exp %82 : vector<16x16xf32>
    %cst_17 = arith.constant dense<0.000000e+00> : vector<16xf32>
    %84 = vector.multi_reduction <add>, %83, %cst_17 [1] : vector<16x16xf32> to vector<16xf32>
    %85 = vector.shape_cast %84 : vector<16xf32> to vector<16x1xf32>
    %86 = tpu.reciprocal %85 {approx = true} : vector<16x1xf32> -> vector<16x1xf32>
    %87 = vector.broadcast %86 : vector<16x1xf32> to vector<16x16xf32>
    %88 = arith.mulf %83, %87 : vector<16x16xf32>
    %89 = arith.truncf %88 : vector<16x16xf32> to vector<16x16xbf16>
    %90 = vector.extract_strided_slice %44 {offsets = [0, 8], sizes = [16, 8], strides = [1, 1]} : vector<16x32xf32> to vector<16x8xf32>
    %91 = arith.truncf %90 : vector<16x8xf32> to vector<16x8xbf16>
    %cst_18 = arith.constant dense<0.000000e+00> : vector<16x8xf32>
    %92 = tpu.matmul %89, %91, %cst_18 {dimension_numbers = #tpu.dot_dimension_numbers<[1], [0], [0], [1], [0, 0, 1, 1], [], []>} : vector<16x16xbf16>, vector<16x8xbf16>, vector<16x8xf32> -> vector<16x8xf32>
    %93 = arith.truncf %92 : vector<16x8xf32> to vector<16x8xbf16>
    %94 = vector.extract_strided_slice %3 {offsets = [8, 0], sizes = [8, 32], strides = [1, 1]} : vector<32x32xf32> to vector<8x32xf32>
    %95 = arith.truncf %94 : vector<8x32xf32> to vector<8x32xbf16>
    %cst_19 = arith.constant dense<0.000000e+00> : vector<16x32xf32>
    %96 = tpu.matmul %93, %95, %cst_19 {dimension_numbers = #tpu.dot_dimension_numbers<[1], [0], [0], [1], [0, 0, 1, 1], [], []>} : vector<16x8xbf16>, vector<8x32xbf16>, vector<16x32xf32> -> vector<16x32xf32>
    %97 = arith.addf %70, %96 : vector<16x32xf32>
    %98 = vector.extract_strided_slice %42 {offsets = [0, 16], sizes = [16, 8], strides = [1, 1]} : vector<16x32xf32> to vector<16x8xf32>
    %99 = arith.truncf %98 : vector<16x8xf32> to vector<16x8xbf16>
    %100 = vector.extract_strided_slice %43 {offsets = [0, 16], sizes = [16, 8], strides = [1, 1]} : vector<16x32xf32> to vector<16x8xf32>
    %101 = arith.truncf %100 : vector<16x8xf32> to vector<16x8xbf16>
    %cst_20 = arith.constant dense<0.000000e+00> : vector<16x16xf32>
    %102 = tpu.matmul %99, %101, %cst_20 {dimension_numbers = #tpu.dot_dimension_numbers<[1], [1], [0], [0], [0, 0, 1, 0], [], []>} : vector<16x8xbf16>, vector<16x8xbf16>, vector<16x16xf32> -> vector<16x16xf32>
    %cst_21 = arith.constant 0.353553385 : f32
    %103 = vector.broadcast %cst_21 : f32 to vector<16x16xf32>
    %104 = arith.mulf %102, %103 : vector<16x16xf32>
    %105 = arith.addf %104, %31 : vector<16x16xf32>
    %cst_22 = arith.constant dense<0xFF800000> : vector<16xf32>
    %106 = vector.multi_reduction <maximumf>, %105, %cst_22 [1] : vector<16x16xf32> to vector<16xf32>
    %107 = vector.shape_cast %106 : vector<16xf32> to vector<16x1xf32>
    %108 = vector.broadcast %107 : vector<16x1xf32> to vector<16x16xf32>
    %109 = arith.subf %105, %108 : vector<16x16xf32>
    %110 = math.exp %109 : vector<16x16xf32>
    %cst_23 = arith.constant dense<0.000000e+00> : vector<16xf32>
    %111 = vector.multi_reduction <add>, %110, %cst_23 [1] : vector<16x16xf32> to vector<16xf32>
    %112 = vector.shape_cast %111 : vector<16xf32> to vector<16x1xf32>
    %113 = tpu.reciprocal %112 {approx = true} : vector<16x1xf32> -> vector<16x1xf32>
    %114 = vector.broadcast %113 : vector<16x1xf32> to vector<16x16xf32>
    %115 = arith.mulf %110, %114 : vector<16x16xf32>
    %116 = arith.truncf %115 : vector<16x16xf32> to vector<16x16xbf16>
    %117 = vector.extract_strided_slice %44 {offsets = [0, 16], sizes = [16, 8], strides = [1, 1]} : vector<16x32xf32> to vector<16x8xf32>
    %118 = arith.truncf %117 : vector<16x8xf32> to vector<16x8xbf16>
    %cst_24 = arith.constant dense<0.000000e+00> : vector<16x8xf32>
    %119 = tpu.matmul %116, %118, %cst_24 {dimension_numbers = #tpu.dot_dimension_numbers<[1], [0], [0], [1], [0, 0, 1, 1], [], []>} : vector<16x16xbf16>, vector<16x8xbf16>, vector<16x8xf32> -> vector<16x8xf32>
    %120 = arith.truncf %119 : vector<16x8xf32> to vector<16x8xbf16>
    %121 = vector.extract_strided_slice %3 {offsets = [16, 0], sizes = [8, 32], strides = [1, 1]} : vector<32x32xf32> to vector<8x32xf32>
    %122 = arith.truncf %121 : vector<8x32xf32> to vector<8x32xbf16>
    %cst_25 = arith.constant dense<0.000000e+00> : vector<16x32xf32>
    %123 = tpu.matmul %120, %122, %cst_25 {dimension_numbers = #tpu.dot_dimension_numbers<[1], [0], [0], [1], [0, 0, 1, 1], [], []>} : vector<16x8xbf16>, vector<8x32xbf16>, vector<16x32xf32> -> vector<16x32xf32>
    %124 = arith.addf %97, %123 : vector<16x32xf32>
    %125 = vector.extract_strided_slice %42 {offsets = [0, 24], sizes = [16, 8], strides = [1, 1]} : vector<16x32xf32> to vector<16x8xf32>
    %126 = arith.truncf %125 : vector<16x8xf32> to vector<16x8xbf16>
    %127 = vector.extract_strided_slice %43 {offsets = [0, 24], sizes = [16, 8], strides = [1, 1]} : vector<16x32xf32> to vector<16x8xf32>
    %128 = arith.truncf %127 : vector<16x8xf32> to vector<16x8xbf16>
    %cst_26 = arith.constant dense<0.000000e+00> : vector<16x16xf32>
    %129 = tpu.matmul %126, %128, %cst_26 {dimension_numbers = #tpu.dot_dimension_numbers<[1], [1], [0], [0], [0, 0, 1, 0], [], []>} : vector<16x8xbf16>, vector<16x8xbf16>, vector<16x16xf32> -> vector<16x16xf32>
    %cst_27 = arith.constant 0.353553385 : f32
    %130 = vector.broadcast %cst_27 : f32 to vector<16x16xf32>
    %131 = arith.mulf %129, %130 : vector<16x16xf32>
    %132 = arith.addf %131, %31 : vector<16x16xf32>
    %cst_28 = arith.constant dense<0xFF800000> : vector<16xf32>
    %133 = vector.multi_reduction <maximumf>, %132, %cst_28 [1] : vector<16x16xf32> to vector<16xf32>
    %134 = vector.shape_cast %133 : vector<16xf32> to vector<16x1xf32>
    %135 = vector.broadcast %134 : vector<16x1xf32> to vector<16x16xf32>
    %136 = arith.subf %132, %135 : vector<16x16xf32>
    %137 = math.exp %136 : vector<16x16xf32>
    %cst_29 = arith.constant dense<0.000000e+00> : vector<16xf32>
    %138 = vector.multi_reduction <add>, %137, %cst_29 [1] : vector<16x16xf32> to vector<16xf32>
    %139 = vector.shape_cast %138 : vector<16xf32> to vector<16x1xf32>
    %140 = tpu.reciprocal %139 {approx = true} : vector<16x1xf32> -> vector<16x1xf32>
    %141 = vector.broadcast %140 : vector<16x1xf32> to vector<16x16xf32>
    %142 = arith.mulf %137, %141 : vector<16x16xf32>
    %143 = arith.truncf %142 : vector<16x16xf32> to vector<16x16xbf16>
    %144 = vector.extract_strided_slice %44 {offsets = [0, 24], sizes = [16, 8], strides = [1, 1]} : vector<16x32xf32> to vector<16x8xf32>
    %145 = arith.truncf %144 : vector<16x8xf32> to vector<16x8xbf16>
    %cst_30 = arith.constant dense<0.000000e+00> : vector<16x8xf32>
    %146 = tpu.matmul %143, %145, %cst_30 {dimension_numbers = #tpu.dot_dimension_numbers<[1], [0], [0], [1], [0, 0, 1, 1], [], []>} : vector<16x16xbf16>, vector<16x8xbf16>, vector<16x8xf32> -> vector<16x8xf32>
    %147 = arith.truncf %146 : vector<16x8xf32> to vector<16x8xbf16>
    %148 = vector.extract_strided_slice %3 {offsets = [24, 0], sizes = [8, 32], strides = [1, 1]} : vector<32x32xf32> to vector<8x32xf32>
    %149 = arith.truncf %148 : vector<8x32xf32> to vector<8x32xbf16>
    %cst_31 = arith.constant dense<0.000000e+00> : vector<16x32xf32>
    %150 = tpu.matmul %147, %149, %cst_31 {dimension_numbers = #tpu.dot_dimension_numbers<[1], [0], [0], [1], [0, 0, 1, 1], [], []>} : vector<16x8xbf16>, vector<8x32xbf16>, vector<16x32xf32> -> vector<16x32xf32>
    %151 = arith.addf %124, %150 : vector<16x32xf32>
    %152 = vector.broadcast %4 : vector<1x32xf32> to vector<16x32xf32>
    %153 = arith.addf %151, %152 : vector<16x32xf32>
    %154 = arith.addf %36, %153 : vector<16x32xf32>
    %cst_32 = arith.constant dense<0.000000e+00> : vector<16xf32>
    %155 = vector.multi_reduction <add>, %154, %cst_32 [1] : vector<16x32xf32> to vector<16xf32>
    %156 = vector.shape_cast %155 : vector<16xf32> to vector<16x1xf32>
    %cst_33 = arith.constant 3.200000e+01 : f32
    %157 = vector.broadcast %cst_33 : f32 to vector<16x1xf32>
    %158 = arith.divf %156, %157 : vector<16x1xf32>
    %159 = vector.broadcast %158 : vector<16x1xf32> to vector<16x32xf32>
    %160 = arith.subf %154, %159 : vector<16x32xf32>
    %161 = arith.mulf %160, %160 : vector<16x32xf32>
    %cst_34 = arith.constant dense<0.000000e+00> : vector<16xf32>
    %162 = vector.multi_reduction <add>, %161, %cst_34 [1] : vector<16x32xf32> to vector<16xf32>
    %163 = vector.shape_cast %162 : vector<16xf32> to vector<16x1xf32>
    %cst_35 = arith.constant 3.200000e+01 : f32
    %164 = vector.broadcast %cst_35 : f32 to vector<16x1xf32>
    %165 = arith.divf %163, %164 : vector<16x1xf32>
    %cst_36 = arith.constant 9.99999974E-6 : f32
    %166 = vector.broadcast %cst_36 : f32 to vector<16x1xf32>
    %167 = arith.addf %165, %166 : vector<16x1xf32>
    %168 = math.rsqrt %167 : vector<16x1xf32>
    %169 = vector.broadcast %168 : vector<16x1xf32> to vector<16x32xf32>
    %170 = arith.mulf %160, %169 : vector<16x32xf32>
    %171 = vector.extract_strided_slice %5 {offsets = [0, 0], sizes = [1, 32], strides = [1, 1]} : vector<2x32xf32> to vector<1x32xf32>
    %172 = vector.broadcast %171 : vector<1x32xf32> to vector<16x32xf32>
    %173 = arith.mulf %170, %172 : vector<16x32xf32>
    %174 = vector.extract_strided_slice %5 {offsets = [1, 0], sizes = [1, 32], strides = [1, 1]} : vector<2x32xf32> to vector<1x32xf32>
    %175 = vector.broadcast %174 : vector<1x32xf32> to vector<16x32xf32>
    %176 = arith.addf %173, %175 : vector<16x32xf32>
    %177 = arith.truncf %176 : vector<16x32xf32> to vector<16x32xbf16>
    %178 = arith.truncf %6 : vector<32x64xf32> to vector<32x64xbf16>
    %cst_37 = arith.constant dense<0.000000e+00> : vector<16x64xf32>
    %179 = tpu.matmul %177, %178, %cst_37 {dimension_numbers = #tpu.dot_dimension_numbers<[1], [0], [0], [1], [0, 0, 1, 1], [], []>} : vector<16x32xbf16>, vector<32x64xbf16>, vector<16x64xf32> -> vector<16x64xf32>
    %180 = vector.broadcast %7 : vector<1x64xf32> to vector<16x64xf32>
    %181 = arith.addf %179, %180 : vector<16x64xf32>
    %cst_38 = arith.constant 0.000000e+00 : f32
    %182 = vector.broadcast %cst_38 : f32 to vector<16x64xf32>
    %183 = arith.maximumf %181, %182 : vector<16x64xf32>
    %184 = arith.truncf %183 : vector<16x64xf32> to vector<16x64xbf16>
    %185 = arith.truncf %8 : vector<64x32xf32> to vector<64x32xbf16>
    %cst_39 = arith.constant dense<0.000000e+00> : vector<16x32xf32>
    %186 = tpu.matmul %184, %185, %cst_39 {dimension_numbers = #tpu.dot_dimension_numbers<[1], [0], [0], [1], [0, 0, 1, 1], [], []>} : vector<16x64xbf16>, vector<64x32xbf16>, vector<16x32xf32> -> vector<16x32xf32>
    %187 = vector.broadcast %9 : vector<1x32xf32> to vector<16x32xf32>
    %188 = arith.addf %186, %187 : vector<16x32xf32>
    %189 = arith.addf %176, %188 : vector<16x32xf32>
    %cst_40 = arith.constant dense<0.000000e+00> : vector<16xf32>
    %190 = vector.multi_reduction <add>, %189, %cst_40 [1] : vector<16x32xf32> to vector<16xf32>
    %191 = vector.shape_cast %190 : vector<16xf32> to vector<16x1xf32>
    %cst_41 = arith.constant 3.200000e+01 : f32
    %192 = vector.broadcast %cst_41 : f32 to vector<16x1xf32>
    %193 = arith.divf %191, %192 : vector<16x1xf32>
    %194 = vector.broadcast %193 : vector<16x1xf32> to vector<16x32xf32>
    %195 = arith.subf %189, %194 : vector<16x32xf32>
    %196 = arith.mulf %195, %195 : vector<16x32xf32>
    %cst_42 = arith.constant dense<0.000000e+00> : vector<16xf32>
    %197 = vector.multi_reduction <add>, %196, %cst_42 [1] : vector<16x32xf32> to vector<16xf32>
    %198 = vector.shape_cast %197 : vector<16xf32> to vector<16x1xf32>
    %cst_43 = arith.constant 3.200000e+01 : f32
    %199 = vector.broadcast %cst_43 : f32 to vector<16x1xf32>
    %200 = arith.divf %198, %199 : vector<16x1xf32>
    %cst_44 = arith.constant 9.99999974E-6 : f32
    %201 = vector.broadcast %cst_44 : f32 to vector<16x1xf32>
    %202 = arith.addf %200, %201 : vector<16x1xf32>
    %203 = math.rsqrt %202 : vector<16x1xf32>
    %204 = vector.broadcast %203 : vector<16x1xf32> to vector<16x32xf32>
    %205 = arith.mulf %195, %204 : vector<16x32xf32>
    %206 = vector.extract_strided_slice %10 {offsets = [0, 0], sizes = [1, 32], strides = [1, 1]} : vector<2x32xf32> to vector<1x32xf32>
    %207 = vector.broadcast %206 : vector<1x32xf32> to vector<16x32xf32>
    %208 = arith.mulf %205, %207 : vector<16x32xf32>
    %209 = vector.extract_strided_slice %10 {offsets = [1, 0], sizes = [1, 32], strides = [1, 1]} : vector<2x32xf32> to vector<1x32xf32>
    %210 = vector.broadcast %209 : vector<1x32xf32> to vector<16x32xf32>
    %211 = arith.addf %208, %210 : vector<16x32xf32>
    %c0_45 = arith.constant 0 : index
    %c0_46 = arith.constant 0 : index
    %212 = vector.load %arg1[%c0_45, %c0_46] : memref<16x32xf32, #tpu.memory_space<vmem>>, vector<16x32xf32>
    %213 = arith.truncf %212 : vector<16x32xf32> to vector<16x32xbf16>
    %214 = arith.truncf %12 : vector<32x96xf32> to vector<32x96xbf16>
    %cst_47 = arith.constant dense<0.000000e+00> : vector<16x96xf32>
    %215 = tpu.matmul %213, %214, %cst_47 {dimension_numbers = #tpu.dot_dimension_numbers<[1], [0], [0], [1], [0, 0, 1, 1], [], []>} : vector<16x32xbf16>, vector<32x96xbf16>, vector<16x96xf32> -> vector<16x96xf32>
    %216 = vector.broadcast %13 : vector<1x96xf32> to vector<16x96xf32>
    %217 = arith.addf %215, %216 : vector<16x96xf32>
    %218 = vector.extract_strided_slice %217 {offsets = [0, 0], sizes = [16, 32], strides = [1, 1]} : vector<16x96xf32> to vector<16x32xf32>
    %219 = vector.extract_strided_slice %217 {offsets = [0, 32], sizes = [16, 32], strides = [1, 1]} : vector<16x96xf32> to vector<16x32xf32>
    %220 = vector.extract_strided_slice %217 {offsets = [0, 64], sizes = [16, 32], strides = [1, 1]} : vector<16x96xf32> to vector<16x32xf32>
    %221 = vector.extract_strided_slice %218 {offsets = [0, 0], sizes = [16, 8], strides = [1, 1]} : vector<16x32xf32> to vector<16x8xf32>
    %222 = arith.truncf %221 : vector<16x8xf32> to vector<16x8xbf16>
    %223 = vector.extract_strided_slice %219 {offsets = [0, 0], sizes = [16, 8], strides = [1, 1]} : vector<16x32xf32> to vector<16x8xf32>
    %224 = arith.truncf %223 : vector<16x8xf32> to vector<16x8xbf16>
    %cst_48 = arith.constant dense<0.000000e+00> : vector<16x16xf32>
    %225 = tpu.matmul %222, %224, %cst_48 {dimension_numbers = #tpu.dot_dimension_numbers<[1], [1], [0], [0], [0, 0, 1, 0], [], []>} : vector<16x8xbf16>, vector<16x8xbf16>, vector<16x16xf32> -> vector<16x16xf32>
    %cst_49 = arith.constant 0.353553385 : f32
    %226 = vector.broadcast %cst_49 : f32 to vector<16x16xf32>
    %227 = arith.mulf %225, %226 : vector<16x16xf32>
    %228 = arith.addf %227, %33 : vector<16x16xf32>
    %cst_50 = arith.constant dense<0xFF800000> : vector<16xf32>
    %229 = vector.multi_reduction <maximumf>, %228, %cst_50 [1] : vector<16x16xf32> to vector<16xf32>
    %230 = vector.shape_cast %229 : vector<16xf32> to vector<16x1xf32>
    %231 = vector.broadcast %230 : vector<16x1xf32> to vector<16x16xf32>
    %232 = arith.subf %228, %231 : vector<16x16xf32>
    %233 = math.exp %232 : vector<16x16xf32>
    %cst_51 = arith.constant dense<0.000000e+00> : vector<16xf32>
    %234 = vector.multi_reduction <add>, %233, %cst_51 [1] : vector<16x16xf32> to vector<16xf32>
    %235 = vector.shape_cast %234 : vector<16xf32> to vector<16x1xf32>
    %236 = tpu.reciprocal %235 {approx = true} : vector<16x1xf32> -> vector<16x1xf32>
    %237 = vector.broadcast %236 : vector<16x1xf32> to vector<16x16xf32>
    %238 = arith.mulf %233, %237 : vector<16x16xf32>
    %239 = arith.truncf %238 : vector<16x16xf32> to vector<16x16xbf16>
    %240 = vector.extract_strided_slice %220 {offsets = [0, 0], sizes = [16, 8], strides = [1, 1]} : vector<16x32xf32> to vector<16x8xf32>
    %241 = arith.truncf %240 : vector<16x8xf32> to vector<16x8xbf16>
    %cst_52 = arith.constant dense<0.000000e+00> : vector<16x8xf32>
    %242 = tpu.matmul %239, %241, %cst_52 {dimension_numbers = #tpu.dot_dimension_numbers<[1], [0], [0], [1], [0, 0, 1, 1], [], []>} : vector<16x16xbf16>, vector<16x8xbf16>, vector<16x8xf32> -> vector<16x8xf32>
    %243 = arith.truncf %242 : vector<16x8xf32> to vector<16x8xbf16>
    %244 = vector.extract_strided_slice %14 {offsets = [0, 0], sizes = [8, 32], strides = [1, 1]} : vector<32x32xf32> to vector<8x32xf32>
    %245 = arith.truncf %244 : vector<8x32xf32> to vector<8x32xbf16>
    %cst_53 = arith.constant dense<0.000000e+00> : vector<16x32xf32>
    %246 = tpu.matmul %243, %245, %cst_53 {dimension_numbers = #tpu.dot_dimension_numbers<[1], [0], [0], [1], [0, 0, 1, 1], [], []>} : vector<16x8xbf16>, vector<8x32xbf16>, vector<16x32xf32> -> vector<16x32xf32>
    %247 = vector.extract_strided_slice %218 {offsets = [0, 8], sizes = [16, 8], strides = [1, 1]} : vector<16x32xf32> to vector<16x8xf32>
    %248 = arith.truncf %247 : vector<16x8xf32> to vector<16x8xbf16>
    %249 = vector.extract_strided_slice %219 {offsets = [0, 8], sizes = [16, 8], strides = [1, 1]} : vector<16x32xf32> to vector<16x8xf32>
    %250 = arith.truncf %249 : vector<16x8xf32> to vector<16x8xbf16>
    %cst_54 = arith.constant dense<0.000000e+00> : vector<16x16xf32>
    %251 = tpu.matmul %248, %250, %cst_54 {dimension_numbers = #tpu.dot_dimension_numbers<[1], [1], [0], [0], [0, 0, 1, 0], [], []>} : vector<16x8xbf16>, vector<16x8xbf16>, vector<16x16xf32> -> vector<16x16xf32>
    %cst_55 = arith.constant 0.353553385 : f32
    %252 = vector.broadcast %cst_55 : f32 to vector<16x16xf32>
    %253 = arith.mulf %251, %252 : vector<16x16xf32>
    %254 = arith.addf %253, %33 : vector<16x16xf32>
    %cst_56 = arith.constant dense<0xFF800000> : vector<16xf32>
    %255 = vector.multi_reduction <maximumf>, %254, %cst_56 [1] : vector<16x16xf32> to vector<16xf32>
    %256 = vector.shape_cast %255 : vector<16xf32> to vector<16x1xf32>
    %257 = vector.broadcast %256 : vector<16x1xf32> to vector<16x16xf32>
    %258 = arith.subf %254, %257 : vector<16x16xf32>
    %259 = math.exp %258 : vector<16x16xf32>
    %cst_57 = arith.constant dense<0.000000e+00> : vector<16xf32>
    %260 = vector.multi_reduction <add>, %259, %cst_57 [1] : vector<16x16xf32> to vector<16xf32>
    %261 = vector.shape_cast %260 : vector<16xf32> to vector<16x1xf32>
    %262 = tpu.reciprocal %261 {approx = true} : vector<16x1xf32> -> vector<16x1xf32>
    %263 = vector.broadcast %262 : vector<16x1xf32> to vector<16x16xf32>
    %264 = arith.mulf %259, %263 : vector<16x16xf32>
    %265 = arith.truncf %264 : vector<16x16xf32> to vector<16x16xbf16>
    %266 = vector.extract_strided_slice %220 {offsets = [0, 8], sizes = [16, 8], strides = [1, 1]} : vector<16x32xf32> to vector<16x8xf32>
    %267 = arith.truncf %266 : vector<16x8xf32> to vector<16x8xbf16>
    %cst_58 = arith.constant dense<0.000000e+00> : vector<16x8xf32>
    %268 = tpu.matmul %265, %267, %cst_58 {dimension_numbers = #tpu.dot_dimension_numbers<[1], [0], [0], [1], [0, 0, 1, 1], [], []>} : vector<16x16xbf16>, vector<16x8xbf16>, vector<16x8xf32> -> vector<16x8xf32>
    %269 = arith.truncf %268 : vector<16x8xf32> to vector<16x8xbf16>
    %270 = vector.extract_strided_slice %14 {offsets = [8, 0], sizes = [8, 32], strides = [1, 1]} : vector<32x32xf32> to vector<8x32xf32>
    %271 = arith.truncf %270 : vector<8x32xf32> to vector<8x32xbf16>
    %cst_59 = arith.constant dense<0.000000e+00> : vector<16x32xf32>
    %272 = tpu.matmul %269, %271, %cst_59 {dimension_numbers = #tpu.dot_dimension_numbers<[1], [0], [0], [1], [0, 0, 1, 1], [], []>} : vector<16x8xbf16>, vector<8x32xbf16>, vector<16x32xf32> -> vector<16x32xf32>
    %273 = arith.addf %246, %272 : vector<16x32xf32>
    %274 = vector.extract_strided_slice %218 {offsets = [0, 16], sizes = [16, 8], strides = [1, 1]} : vector<16x32xf32> to vector<16x8xf32>
    %275 = arith.truncf %274 : vector<16x8xf32> to vector<16x8xbf16>
    %276 = vector.extract_strided_slice %219 {offsets = [0, 16], sizes = [16, 8], strides = [1, 1]} : vector<16x32xf32> to vector<16x8xf32>
    %277 = arith.truncf %276 : vector<16x8xf32> to vector<16x8xbf16>
    %cst_60 = arith.constant dense<0.000000e+00> : vector<16x16xf32>
    %278 = tpu.matmul %275, %277, %cst_60 {dimension_numbers = #tpu.dot_dimension_numbers<[1], [1], [0], [0], [0, 0, 1, 0], [], []>} : vector<16x8xbf16>, vector<16x8xbf16>, vector<16x16xf32> -> vector<16x16xf32>
    %cst_61 = arith.constant 0.353553385 : f32
    %279 = vector.broadcast %cst_61 : f32 to vector<16x16xf32>
    %280 = arith.mulf %278, %279 : vector<16x16xf32>
    %281 = arith.addf %280, %33 : vector<16x16xf32>
    %cst_62 = arith.constant dense<0xFF800000> : vector<16xf32>
    %282 = vector.multi_reduction <maximumf>, %281, %cst_62 [1] : vector<16x16xf32> to vector<16xf32>
    %283 = vector.shape_cast %282 : vector<16xf32> to vector<16x1xf32>
    %284 = vector.broadcast %283 : vector<16x1xf32> to vector<16x16xf32>
    %285 = arith.subf %281, %284 : vector<16x16xf32>
    %286 = math.exp %285 : vector<16x16xf32>
    %cst_63 = arith.constant dense<0.000000e+00> : vector<16xf32>
    %287 = vector.multi_reduction <add>, %286, %cst_63 [1] : vector<16x16xf32> to vector<16xf32>
    %288 = vector.shape_cast %287 : vector<16xf32> to vector<16x1xf32>
    %289 = tpu.reciprocal %288 {approx = true} : vector<16x1xf32> -> vector<16x1xf32>
    %290 = vector.broadcast %289 : vector<16x1xf32> to vector<16x16xf32>
    %291 = arith.mulf %286, %290 : vector<16x16xf32>
    %292 = arith.truncf %291 : vector<16x16xf32> to vector<16x16xbf16>
    %293 = vector.extract_strided_slice %220 {offsets = [0, 16], sizes = [16, 8], strides = [1, 1]} : vector<16x32xf32> to vector<16x8xf32>
    %294 = arith.truncf %293 : vector<16x8xf32> to vector<16x8xbf16>
    %cst_64 = arith.constant dense<0.000000e+00> : vector<16x8xf32>
    %295 = tpu.matmul %292, %294, %cst_64 {dimension_numbers = #tpu.dot_dimension_numbers<[1], [0], [0], [1], [0, 0, 1, 1], [], []>} : vector<16x16xbf16>, vector<16x8xbf16>, vector<16x8xf32> -> vector<16x8xf32>
    %296 = arith.truncf %295 : vector<16x8xf32> to vector<16x8xbf16>
    %297 = vector.extract_strided_slice %14 {offsets = [16, 0], sizes = [8, 32], strides = [1, 1]} : vector<32x32xf32> to vector<8x32xf32>
    %298 = arith.truncf %297 : vector<8x32xf32> to vector<8x32xbf16>
    %cst_65 = arith.constant dense<0.000000e+00> : vector<16x32xf32>
    %299 = tpu.matmul %296, %298, %cst_65 {dimension_numbers = #tpu.dot_dimension_numbers<[1], [0], [0], [1], [0, 0, 1, 1], [], []>} : vector<16x8xbf16>, vector<8x32xbf16>, vector<16x32xf32> -> vector<16x32xf32>
    %300 = arith.addf %273, %299 : vector<16x32xf32>
    %301 = vector.extract_strided_slice %218 {offsets = [0, 24], sizes = [16, 8], strides = [1, 1]} : vector<16x32xf32> to vector<16x8xf32>
    %302 = arith.truncf %301 : vector<16x8xf32> to vector<16x8xbf16>
    %303 = vector.extract_strided_slice %219 {offsets = [0, 24], sizes = [16, 8], strides = [1, 1]} : vector<16x32xf32> to vector<16x8xf32>
    %304 = arith.truncf %303 : vector<16x8xf32> to vector<16x8xbf16>
    %cst_66 = arith.constant dense<0.000000e+00> : vector<16x16xf32>
    %305 = tpu.matmul %302, %304, %cst_66 {dimension_numbers = #tpu.dot_dimension_numbers<[1], [1], [0], [0], [0, 0, 1, 0], [], []>} : vector<16x8xbf16>, vector<16x8xbf16>, vector<16x16xf32> -> vector<16x16xf32>
    %cst_67 = arith.constant 0.353553385 : f32
    %306 = vector.broadcast %cst_67 : f32 to vector<16x16xf32>
    %307 = arith.mulf %305, %306 : vector<16x16xf32>
    %308 = arith.addf %307, %33 : vector<16x16xf32>
    %cst_68 = arith.constant dense<0xFF800000> : vector<16xf32>
    %309 = vector.multi_reduction <maximumf>, %308, %cst_68 [1] : vector<16x16xf32> to vector<16xf32>
    %310 = vector.shape_cast %309 : vector<16xf32> to vector<16x1xf32>
    %311 = vector.broadcast %310 : vector<16x1xf32> to vector<16x16xf32>
    %312 = arith.subf %308, %311 : vector<16x16xf32>
    %313 = math.exp %312 : vector<16x16xf32>
    %cst_69 = arith.constant dense<0.000000e+00> : vector<16xf32>
    %314 = vector.multi_reduction <add>, %313, %cst_69 [1] : vector<16x16xf32> to vector<16xf32>
    %315 = vector.shape_cast %314 : vector<16xf32> to vector<16x1xf32>
    %316 = tpu.reciprocal %315 {approx = true} : vector<16x1xf32> -> vector<16x1xf32>
    %317 = vector.broadcast %316 : vector<16x1xf32> to vector<16x16xf32>
    %318 = arith.mulf %313, %317 : vector<16x16xf32>
    %319 = arith.truncf %318 : vector<16x16xf32> to vector<16x16xbf16>
    %320 = vector.extract_strided_slice %220 {offsets = [0, 24], sizes = [16, 8], strides = [1, 1]} : vector<16x32xf32> to vector<16x8xf32>
    %321 = arith.truncf %320 : vector<16x8xf32> to vector<16x8xbf16>
    %cst_70 = arith.constant dense<0.000000e+00> : vector<16x8xf32>
    %322 = tpu.matmul %319, %321, %cst_70 {dimension_numbers = #tpu.dot_dimension_numbers<[1], [0], [0], [1], [0, 0, 1, 1], [], []>} : vector<16x16xbf16>, vector<16x8xbf16>, vector<16x8xf32> -> vector<16x8xf32>
    %323 = arith.truncf %322 : vector<16x8xf32> to vector<16x8xbf16>
    %324 = vector.extract_strided_slice %14 {offsets = [24, 0], sizes = [8, 32], strides = [1, 1]} : vector<32x32xf32> to vector<8x32xf32>
    %325 = arith.truncf %324 : vector<8x32xf32> to vector<8x32xbf16>
    %cst_71 = arith.constant dense<0.000000e+00> : vector<16x32xf32>
    %326 = tpu.matmul %323, %325, %cst_71 {dimension_numbers = #tpu.dot_dimension_numbers<[1], [0], [0], [1], [0, 0, 1, 1], [], []>} : vector<16x8xbf16>, vector<8x32xbf16>, vector<16x32xf32> -> vector<16x32xf32>
    %327 = arith.addf %300, %326 : vector<16x32xf32>
    %328 = vector.broadcast %15 : vector<1x32xf32> to vector<16x32xf32>
    %329 = arith.addf %327, %328 : vector<16x32xf32>
    %330 = arith.addf %212, %329 : vector<16x32xf32>
    %cst_72 = arith.constant dense<0.000000e+00> : vector<16xf32>
    %331 = vector.multi_reduction <add>, %330, %cst_72 [1] : vector<16x32xf32> to vector<16xf32>
    %332 = vector.shape_cast %331 : vector<16xf32> to vector<16x1xf32>
    %cst_73 = arith.constant 3.200000e+01 : f32
    %333 = vector.broadcast %cst_73 : f32 to vector<16x1xf32>
    %334 = arith.divf %332, %333 : vector<16x1xf32>
    %335 = vector.broadcast %334 : vector<16x1xf32> to vector<16x32xf32>
    %336 = arith.subf %330, %335 : vector<16x32xf32>
    %337 = arith.mulf %336, %336 : vector<16x32xf32>
    %cst_74 = arith.constant dense<0.000000e+00> : vector<16xf32>
    %338 = vector.multi_reduction <add>, %337, %cst_74 [1] : vector<16x32xf32> to vector<16xf32>
    %339 = vector.shape_cast %338 : vector<16xf32> to vector<16x1xf32>
    %cst_75 = arith.constant 3.200000e+01 : f32
    %340 = vector.broadcast %cst_75 : f32 to vector<16x1xf32>
    %341 = arith.divf %339, %340 : vector<16x1xf32>
    %cst_76 = arith.constant 9.99999974E-6 : f32
    %342 = vector.broadcast %cst_76 : f32 to vector<16x1xf32>
    %343 = arith.addf %341, %342 : vector<16x1xf32>
    %344 = math.rsqrt %343 : vector<16x1xf32>
    %345 = vector.broadcast %344 : vector<16x1xf32> to vector<16x32xf32>
    %346 = arith.mulf %336, %345 : vector<16x32xf32>
    %347 = vector.extract_strided_slice %16 {offsets = [0, 0], sizes = [1, 32], strides = [1, 1]} : vector<2x32xf32> to vector<1x32xf32>
    %348 = vector.broadcast %347 : vector<1x32xf32> to vector<16x32xf32>
    %349 = arith.mulf %346, %348 : vector<16x32xf32>
    %350 = vector.extract_strided_slice %16 {offsets = [1, 0], sizes = [1, 32], strides = [1, 1]} : vector<2x32xf32> to vector<1x32xf32>
    %351 = vector.broadcast %350 : vector<1x32xf32> to vector<16x32xf32>
    %352 = arith.addf %349, %351 : vector<16x32xf32>
    %353 = arith.truncf %352 : vector<16x32xf32> to vector<16x32xbf16>
    %354 = arith.truncf %17 : vector<32x32xf32> to vector<32x32xbf16>
    %cst_77 = arith.constant dense<0.000000e+00> : vector<16x32xf32>
    %355 = tpu.matmul %353, %354, %cst_77 {dimension_numbers = #tpu.dot_dimension_numbers<[1], [0], [0], [1], [0, 0, 1, 1], [], []>} : vector<16x32xbf16>, vector<32x32xbf16>, vector<16x32xf32> -> vector<16x32xf32>
    %356 = vector.broadcast %18 : vector<1x32xf32> to vector<16x32xf32>
    %357 = arith.addf %355, %356 : vector<16x32xf32>
    %358 = arith.truncf %211 : vector<16x32xf32> to vector<16x32xbf16>
    %359 = arith.truncf %19 : vector<32x64xf32> to vector<32x64xbf16>
    %cst_78 = arith.constant dense<0.000000e+00> : vector<16x64xf32>
    %360 = tpu.matmul %358, %359, %cst_78 {dimension_numbers = #tpu.dot_dimension_numbers<[1], [0], [0], [1], [0, 0, 1, 1], [], []>} : vector<16x32xbf16>, vector<32x64xbf16>, vector<16x64xf32> -> vector<16x64xf32>
    %361 = vector.broadcast %20 : vector<1x64xf32> to vector<16x64xf32>
    %362 = arith.addf %360, %361 : vector<16x64xf32>
    %363 = vector.extract_strided_slice %362 {offsets = [0, 0], sizes = [16, 32], strides = [1, 1]} : vector<16x64xf32> to vector<16x32xf32>
    %364 = vector.extract_strided_slice %362 {offsets = [0, 32], sizes = [16, 32], strides = [1, 1]} : vector<16x64xf32> to vector<16x32xf32>
    %365 = vector.extract_strided_slice %357 {offsets = [0, 0], sizes = [16, 8], strides = [1, 1]} : vector<16x32xf32> to vector<16x8xf32>
    %366 = arith.truncf %365 : vector<16x8xf32> to vector<16x8xbf16>
    %367 = vector.extract_strided_slice %363 {offsets = [0, 0], sizes = [16, 8], strides = [1, 1]} : vector<16x32xf32> to vector<16x8xf32>
    %368 = arith.truncf %367 : vector<16x8xf32> to vector<16x8xbf16>
    %cst_79 = arith.constant dense<0.000000e+00> : vector<16x16xf32>
    %369 = tpu.matmul %366, %368, %cst_79 {dimension_numbers = #tpu.dot_dimension_numbers<[1], [1], [0], [0], [0, 0, 1, 0], [], []>} : vector<16x8xbf16>, vector<16x8xbf16>, vector<16x16xf32> -> vector<16x16xf32>
    %cst_80 = arith.constant 0.353553385 : f32
    %370 = vector.broadcast %cst_80 : f32 to vector<16x16xf32>
    %371 = arith.mulf %369, %370 : vector<16x16xf32>
    %372 = arith.addf %371, %35 : vector<16x16xf32>
    %cst_81 = arith.constant dense<0xFF800000> : vector<16xf32>
    %373 = vector.multi_reduction <maximumf>, %372, %cst_81 [1] : vector<16x16xf32> to vector<16xf32>
    %374 = vector.shape_cast %373 : vector<16xf32> to vector<16x1xf32>
    %375 = vector.broadcast %374 : vector<16x1xf32> to vector<16x16xf32>
    %376 = arith.subf %372, %375 : vector<16x16xf32>
    %377 = math.exp %376 : vector<16x16xf32>
    %cst_82 = arith.constant dense<0.000000e+00> : vector<16xf32>
    %378 = vector.multi_reduction <add>, %377, %cst_82 [1] : vector<16x16xf32> to vector<16xf32>
    %379 = vector.shape_cast %378 : vector<16xf32> to vector<16x1xf32>
    %380 = tpu.reciprocal %379 {approx = true} : vector<16x1xf32> -> vector<16x1xf32>
    %381 = vector.broadcast %380 : vector<16x1xf32> to vector<16x16xf32>
    %382 = arith.mulf %377, %381 : vector<16x16xf32>
    %383 = arith.truncf %382 : vector<16x16xf32> to vector<16x16xbf16>
    %384 = vector.extract_strided_slice %364 {offsets = [0, 0], sizes = [16, 8], strides = [1, 1]} : vector<16x32xf32> to vector<16x8xf32>
    %385 = arith.truncf %384 : vector<16x8xf32> to vector<16x8xbf16>
    %cst_83 = arith.constant dense<0.000000e+00> : vector<16x8xf32>
    %386 = tpu.matmul %383, %385, %cst_83 {dimension_numbers = #tpu.dot_dimension_numbers<[1], [0], [0], [1], [0, 0, 1, 1], [], []>} : vector<16x16xbf16>, vector<16x8xbf16>, vector<16x8xf32> -> vector<16x8xf32>
    %387 = arith.truncf %386 : vector<16x8xf32> to vector<16x8xbf16>
    %388 = vector.extract_strided_slice %21 {offsets = [0, 0], sizes = [8, 32], strides = [1, 1]} : vector<32x32xf32> to vector<8x32xf32>
    %389 = arith.truncf %388 : vector<8x32xf32> to vector<8x32xbf16>
    %cst_84 = arith.constant dense<0.000000e+00> : vector<16x32xf32>
    %390 = tpu.matmul %387, %389, %cst_84 {dimension_numbers = #tpu.dot_dimension_numbers<[1], [0], [0], [1], [0, 0, 1, 1], [], []>} : vector<16x8xbf16>, vector<8x32xbf16>, vector<16x32xf32> -> vector<16x32xf32>
    %391 = vector.extract_strided_slice %357 {offsets = [0, 8], sizes = [16, 8], strides = [1, 1]} : vector<16x32xf32> to vector<16x8xf32>
    %392 = arith.truncf %391 : vector<16x8xf32> to vector<16x8xbf16>
    %393 = vector.extract_strided_slice %363 {offsets = [0, 8], sizes = [16, 8], strides = [1, 1]} : vector<16x32xf32> to vector<16x8xf32>
    %394 = arith.truncf %393 : vector<16x8xf32> to vector<16x8xbf16>
    %cst_85 = arith.constant dense<0.000000e+00> : vector<16x16xf32>
    %395 = tpu.matmul %392, %394, %cst_85 {dimension_numbers = #tpu.dot_dimension_numbers<[1], [1], [0], [0], [0, 0, 1, 0], [], []>} : vector<16x8xbf16>, vector<16x8xbf16>, vector<16x16xf32> -> vector<16x16xf32>
    %cst_86 = arith.constant 0.353553385 : f32
    %396 = vector.broadcast %cst_86 : f32 to vector<16x16xf32>
    %397 = arith.mulf %395, %396 : vector<16x16xf32>
    %398 = arith.addf %397, %35 : vector<16x16xf32>
    %cst_87 = arith.constant dense<0xFF800000> : vector<16xf32>
    %399 = vector.multi_reduction <maximumf>, %398, %cst_87 [1] : vector<16x16xf32> to vector<16xf32>
    %400 = vector.shape_cast %399 : vector<16xf32> to vector<16x1xf32>
    %401 = vector.broadcast %400 : vector<16x1xf32> to vector<16x16xf32>
    %402 = arith.subf %398, %401 : vector<16x16xf32>
    %403 = math.exp %402 : vector<16x16xf32>
    %cst_88 = arith.constant dense<0.000000e+00> : vector<16xf32>
    %404 = vector.multi_reduction <add>, %403, %cst_88 [1] : vector<16x16xf32> to vector<16xf32>
    %405 = vector.shape_cast %404 : vector<16xf32> to vector<16x1xf32>
    %406 = tpu.reciprocal %405 {approx = true} : vector<16x1xf32> -> vector<16x1xf32>
    %407 = vector.broadcast %406 : vector<16x1xf32> to vector<16x16xf32>
    %408 = arith.mulf %403, %407 : vector<16x16xf32>
    %409 = arith.truncf %408 : vector<16x16xf32> to vector<16x16xbf16>
    %410 = vector.extract_strided_slice %364 {offsets = [0, 8], sizes = [16, 8], strides = [1, 1]} : vector<16x32xf32> to vector<16x8xf32>
    %411 = arith.truncf %410 : vector<16x8xf32> to vector<16x8xbf16>
    %cst_89 = arith.constant dense<0.000000e+00> : vector<16x8xf32>
    %412 = tpu.matmul %409, %411, %cst_89 {dimension_numbers = #tpu.dot_dimension_numbers<[1], [0], [0], [1], [0, 0, 1, 1], [], []>} : vector<16x16xbf16>, vector<16x8xbf16>, vector<16x8xf32> -> vector<16x8xf32>
    %413 = arith.truncf %412 : vector<16x8xf32> to vector<16x8xbf16>
    %414 = vector.extract_strided_slice %21 {offsets = [8, 0], sizes = [8, 32], strides = [1, 1]} : vector<32x32xf32> to vector<8x32xf32>
    %415 = arith.truncf %414 : vector<8x32xf32> to vector<8x32xbf16>
    %cst_90 = arith.constant dense<0.000000e+00> : vector<16x32xf32>
    %416 = tpu.matmul %413, %415, %cst_90 {dimension_numbers = #tpu.dot_dimension_numbers<[1], [0], [0], [1], [0, 0, 1, 1], [], []>} : vector<16x8xbf16>, vector<8x32xbf16>, vector<16x32xf32> -> vector<16x32xf32>
    %417 = arith.addf %390, %416 : vector<16x32xf32>
    %418 = vector.extract_strided_slice %357 {offsets = [0, 16], sizes = [16, 8], strides = [1, 1]} : vector<16x32xf32> to vector<16x8xf32>
    %419 = arith.truncf %418 : vector<16x8xf32> to vector<16x8xbf16>
    %420 = vector.extract_strided_slice %363 {offsets = [0, 16], sizes = [16, 8], strides = [1, 1]} : vector<16x32xf32> to vector<16x8xf32>
    %421 = arith.truncf %420 : vector<16x8xf32> to vector<16x8xbf16>
    %cst_91 = arith.constant dense<0.000000e+00> : vector<16x16xf32>
    %422 = tpu.matmul %419, %421, %cst_91 {dimension_numbers = #tpu.dot_dimension_numbers<[1], [1], [0], [0], [0, 0, 1, 0], [], []>} : vector<16x8xbf16>, vector<16x8xbf16>, vector<16x16xf32> -> vector<16x16xf32>
    %cst_92 = arith.constant 0.353553385 : f32
    %423 = vector.broadcast %cst_92 : f32 to vector<16x16xf32>
    %424 = arith.mulf %422, %423 : vector<16x16xf32>
    %425 = arith.addf %424, %35 : vector<16x16xf32>
    %cst_93 = arith.constant dense<0xFF800000> : vector<16xf32>
    %426 = vector.multi_reduction <maximumf>, %425, %cst_93 [1] : vector<16x16xf32> to vector<16xf32>
    %427 = vector.shape_cast %426 : vector<16xf32> to vector<16x1xf32>
    %428 = vector.broadcast %427 : vector<16x1xf32> to vector<16x16xf32>
    %429 = arith.subf %425, %428 : vector<16x16xf32>
    %430 = math.exp %429 : vector<16x16xf32>
    %cst_94 = arith.constant dense<0.000000e+00> : vector<16xf32>
    %431 = vector.multi_reduction <add>, %430, %cst_94 [1] : vector<16x16xf32> to vector<16xf32>
    %432 = vector.shape_cast %431 : vector<16xf32> to vector<16x1xf32>
    %433 = tpu.reciprocal %432 {approx = true} : vector<16x1xf32> -> vector<16x1xf32>
    %434 = vector.broadcast %433 : vector<16x1xf32> to vector<16x16xf32>
    %435 = arith.mulf %430, %434 : vector<16x16xf32>
    %436 = arith.truncf %435 : vector<16x16xf32> to vector<16x16xbf16>
    %437 = vector.extract_strided_slice %364 {offsets = [0, 16], sizes = [16, 8], strides = [1, 1]} : vector<16x32xf32> to vector<16x8xf32>
    %438 = arith.truncf %437 : vector<16x8xf32> to vector<16x8xbf16>
    %cst_95 = arith.constant dense<0.000000e+00> : vector<16x8xf32>
    %439 = tpu.matmul %436, %438, %cst_95 {dimension_numbers = #tpu.dot_dimension_numbers<[1], [0], [0], [1], [0, 0, 1, 1], [], []>} : vector<16x16xbf16>, vector<16x8xbf16>, vector<16x8xf32> -> vector<16x8xf32>
    %440 = arith.truncf %439 : vector<16x8xf32> to vector<16x8xbf16>
    %441 = vector.extract_strided_slice %21 {offsets = [16, 0], sizes = [8, 32], strides = [1, 1]} : vector<32x32xf32> to vector<8x32xf32>
    %442 = arith.truncf %441 : vector<8x32xf32> to vector<8x32xbf16>
    %cst_96 = arith.constant dense<0.000000e+00> : vector<16x32xf32>
    %443 = tpu.matmul %440, %442, %cst_96 {dimension_numbers = #tpu.dot_dimension_numbers<[1], [0], [0], [1], [0, 0, 1, 1], [], []>} : vector<16x8xbf16>, vector<8x32xbf16>, vector<16x32xf32> -> vector<16x32xf32>
    %444 = arith.addf %417, %443 : vector<16x32xf32>
    %445 = vector.extract_strided_slice %357 {offsets = [0, 24], sizes = [16, 8], strides = [1, 1]} : vector<16x32xf32> to vector<16x8xf32>
    %446 = arith.truncf %445 : vector<16x8xf32> to vector<16x8xbf16>
    %447 = vector.extract_strided_slice %363 {offsets = [0, 24], sizes = [16, 8], strides = [1, 1]} : vector<16x32xf32> to vector<16x8xf32>
    %448 = arith.truncf %447 : vector<16x8xf32> to vector<16x8xbf16>
    %cst_97 = arith.constant dense<0.000000e+00> : vector<16x16xf32>
    %449 = tpu.matmul %446, %448, %cst_97 {dimension_numbers = #tpu.dot_dimension_numbers<[1], [1], [0], [0], [0, 0, 1, 0], [], []>} : vector<16x8xbf16>, vector<16x8xbf16>, vector<16x16xf32> -> vector<16x16xf32>
    %cst_98 = arith.constant 0.353553385 : f32
    %450 = vector.broadcast %cst_98 : f32 to vector<16x16xf32>
    %451 = arith.mulf %449, %450 : vector<16x16xf32>
    %452 = arith.addf %451, %35 : vector<16x16xf32>
    %cst_99 = arith.constant dense<0xFF800000> : vector<16xf32>
    %453 = vector.multi_reduction <maximumf>, %452, %cst_99 [1] : vector<16x16xf32> to vector<16xf32>
    %454 = vector.shape_cast %453 : vector<16xf32> to vector<16x1xf32>
    %455 = vector.broadcast %454 : vector<16x1xf32> to vector<16x16xf32>
    %456 = arith.subf %452, %455 : vector<16x16xf32>
    %457 = math.exp %456 : vector<16x16xf32>
    %cst_100 = arith.constant dense<0.000000e+00> : vector<16xf32>
    %458 = vector.multi_reduction <add>, %457, %cst_100 [1] : vector<16x16xf32> to vector<16xf32>
    %459 = vector.shape_cast %458 : vector<16xf32> to vector<16x1xf32>
    %460 = tpu.reciprocal %459 {approx = true} : vector<16x1xf32> -> vector<16x1xf32>
    %461 = vector.broadcast %460 : vector<16x1xf32> to vector<16x16xf32>
    %462 = arith.mulf %457, %461 : vector<16x16xf32>
    %463 = arith.truncf %462 : vector<16x16xf32> to vector<16x16xbf16>
    %464 = vector.extract_strided_slice %364 {offsets = [0, 24], sizes = [16, 8], strides = [1, 1]} : vector<16x32xf32> to vector<16x8xf32>
    %465 = arith.truncf %464 : vector<16x8xf32> to vector<16x8xbf16>
    %cst_101 = arith.constant dense<0.000000e+00> : vector<16x8xf32>
    %466 = tpu.matmul %463, %465, %cst_101 {dimension_numbers = #tpu.dot_dimension_numbers<[1], [0], [0], [1], [0, 0, 1, 1], [], []>} : vector<16x16xbf16>, vector<16x8xbf16>, vector<16x8xf32> -> vector<16x8xf32>
    %467 = arith.truncf %466 : vector<16x8xf32> to vector<16x8xbf16>
    %468 = vector.extract_strided_slice %21 {offsets = [24, 0], sizes = [8, 32], strides = [1, 1]} : vector<32x32xf32> to vector<8x32xf32>
    %469 = arith.truncf %468 : vector<8x32xf32> to vector<8x32xbf16>
    %cst_102 = arith.constant dense<0.000000e+00> : vector<16x32xf32>
    %470 = tpu.matmul %467, %469, %cst_102 {dimension_numbers = #tpu.dot_dimension_numbers<[1], [0], [0], [1], [0, 0, 1, 1], [], []>} : vector<16x8xbf16>, vector<8x32xbf16>, vector<16x32xf32> -> vector<16x32xf32>
    %471 = arith.addf %444, %470 : vector<16x32xf32>
    %472 = vector.broadcast %22 : vector<1x32xf32> to vector<16x32xf32>
    %473 = arith.addf %471, %472 : vector<16x32xf32>
    %474 = arith.addf %352, %473 : vector<16x32xf32>
    %cst_103 = arith.constant dense<0.000000e+00> : vector<16xf32>
    %475 = vector.multi_reduction <add>, %474, %cst_103 [1] : vector<16x32xf32> to vector<16xf32>
    %476 = vector.shape_cast %475 : vector<16xf32> to vector<16x1xf32>
    %cst_104 = arith.constant 3.200000e+01 : f32
    %477 = vector.broadcast %cst_104 : f32 to vector<16x1xf32>
    %478 = arith.divf %476, %477 : vector<16x1xf32>
    %479 = vector.broadcast %478 : vector<16x1xf32> to vector<16x32xf32>
    %480 = arith.subf %474, %479 : vector<16x32xf32>
    %481 = arith.mulf %480, %480 : vector<16x32xf32>
    %cst_105 = arith.constant dense<0.000000e+00> : vector<16xf32>
    %482 = vector.multi_reduction <add>, %481, %cst_105 [1] : vector<16x32xf32> to vector<16xf32>
    %483 = vector.shape_cast %482 : vector<16xf32> to vector<16x1xf32>
    %cst_106 = arith.constant 3.200000e+01 : f32
    %484 = vector.broadcast %cst_106 : f32 to vector<16x1xf32>
    %485 = arith.divf %483, %484 : vector<16x1xf32>
    %cst_107 = arith.constant 9.99999974E-6 : f32
    %486 = vector.broadcast %cst_107 : f32 to vector<16x1xf32>
    %487 = arith.addf %485, %486 : vector<16x1xf32>
    %488 = math.rsqrt %487 : vector<16x1xf32>
    %489 = vector.broadcast %488 : vector<16x1xf32> to vector<16x32xf32>
    %490 = arith.mulf %480, %489 : vector<16x32xf32>
    %491 = vector.extract_strided_slice %23 {offsets = [0, 0], sizes = [1, 32], strides = [1, 1]} : vector<2x32xf32> to vector<1x32xf32>
    %492 = vector.broadcast %491 : vector<1x32xf32> to vector<16x32xf32>
    %493 = arith.mulf %490, %492 : vector<16x32xf32>
    %494 = vector.extract_strided_slice %23 {offsets = [1, 0], sizes = [1, 32], strides = [1, 1]} : vector<2x32xf32> to vector<1x32xf32>
    %495 = vector.broadcast %494 : vector<1x32xf32> to vector<16x32xf32>
    %496 = arith.addf %493, %495 : vector<16x32xf32>
    %497 = arith.truncf %496 : vector<16x32xf32> to vector<16x32xbf16>
    %498 = arith.truncf %24 : vector<32x64xf32> to vector<32x64xbf16>
    %cst_108 = arith.constant dense<0.000000e+00> : vector<16x64xf32>
    %499 = tpu.matmul %497, %498, %cst_108 {dimension_numbers = #tpu.dot_dimension_numbers<[1], [0], [0], [1], [0, 0, 1, 1], [], []>} : vector<16x32xbf16>, vector<32x64xbf16>, vector<16x64xf32> -> vector<16x64xf32>
    %500 = vector.broadcast %25 : vector<1x64xf32> to vector<16x64xf32>
    %501 = arith.addf %499, %500 : vector<16x64xf32>
    %cst_109 = arith.constant 0.000000e+00 : f32
    %502 = vector.broadcast %cst_109 : f32 to vector<16x64xf32>
    %503 = arith.maximumf %501, %502 : vector<16x64xf32>
    %504 = arith.truncf %503 : vector<16x64xf32> to vector<16x64xbf16>
    %505 = arith.truncf %26 : vector<64x32xf32> to vector<64x32xbf16>
    %cst_110 = arith.constant dense<0.000000e+00> : vector<16x32xf32>
    %506 = tpu.matmul %504, %505, %cst_110 {dimension_numbers = #tpu.dot_dimension_numbers<[1], [0], [0], [1], [0, 0, 1, 1], [], []>} : vector<16x64xbf16>, vector<64x32xbf16>, vector<16x32xf32> -> vector<16x32xf32>
    %507 = vector.broadcast %27 : vector<1x32xf32> to vector<16x32xf32>
    %508 = arith.addf %506, %507 : vector<16x32xf32>
    %509 = arith.addf %496, %508 : vector<16x32xf32>
    %cst_111 = arith.constant dense<0.000000e+00> : vector<16xf32>
    %510 = vector.multi_reduction <add>, %509, %cst_111 [1] : vector<16x32xf32> to vector<16xf32>
    %511 = vector.shape_cast %510 : vector<16xf32> to vector<16x1xf32>
    %cst_112 = arith.constant 3.200000e+01 : f32
    %512 = vector.broadcast %cst_112 : f32 to vector<16x1xf32>
    %513 = arith.divf %511, %512 : vector<16x1xf32>
    %514 = vector.broadcast %513 : vector<16x1xf32> to vector<16x32xf32>
    %515 = arith.subf %509, %514 : vector<16x32xf32>
    %516 = arith.mulf %515, %515 : vector<16x32xf32>
    %cst_113 = arith.constant dense<0.000000e+00> : vector<16xf32>
    %517 = vector.multi_reduction <add>, %516, %cst_113 [1] : vector<16x32xf32> to vector<16xf32>
    %518 = vector.shape_cast %517 : vector<16xf32> to vector<16x1xf32>
    %cst_114 = arith.constant 3.200000e+01 : f32
    %519 = vector.broadcast %cst_114 : f32 to vector<16x1xf32>
    %520 = arith.divf %518, %519 : vector<16x1xf32>
    %cst_115 = arith.constant 9.99999974E-6 : f32
    %521 = vector.broadcast %cst_115 : f32 to vector<16x1xf32>
    %522 = arith.addf %520, %521 : vector<16x1xf32>
    %523 = math.rsqrt %522 : vector<16x1xf32>
    %524 = vector.broadcast %523 : vector<16x1xf32> to vector<16x32xf32>
    %525 = arith.mulf %515, %524 : vector<16x32xf32>
    %526 = vector.extract_strided_slice %28 {offsets = [0, 0], sizes = [1, 32], strides = [1, 1]} : vector<2x32xf32> to vector<1x32xf32>
    %527 = vector.broadcast %526 : vector<1x32xf32> to vector<16x32xf32>
    %528 = arith.mulf %525, %527 : vector<16x32xf32>
    %529 = vector.extract_strided_slice %28 {offsets = [1, 0], sizes = [1, 32], strides = [1, 1]} : vector<2x32xf32> to vector<1x32xf32>
    %530 = vector.broadcast %529 : vector<1x32xf32> to vector<16x32xf32>
    %531 = arith.addf %528, %530 : vector<16x32xf32>
    %c0_116 = arith.constant 0 : index
    %c0_117 = arith.constant 0 : index
    %532 = vector.load %arg5[%c0_116, %c0_117] : memref<16x32xf32, #tpu.memory_space<vmem>>, vector<16x32xf32>
    tpu.vector_store %arg5[%c0_116, %c0_117], %531 {strides = array<i32>} : memref<16x32xf32, #tpu.memory_space<vmem>>, vector<16x32xf32>,
    return
  }
}

</mosaic_0001>

<bundles_post_ra>
// kernel: _forward_call.1
= control target key start
LH: loop header
LB: loop body
LE: loop exit
PB: predicated region body
PF: predicated region fallthrough
CT: control target
= control target key end

     0   :  { %v3446_v3 = vmov 0.0   ;;  %vm3447_vm0 = vmmov 0   ;;  %s4217_s0 = inlined_call_operand.vmem [shape: f32[16,32], index: 0, kind: input, shape index: {}]   ;;  %s4218_s1 = inlined_call_operand.vmem [shape: f32[16,32], index: 1, kind: input, shape index: {}]   ;;  %s4219_s2 = inlined_call_operand.vmem [shape: f32[3,16,16], index: 2, kind: input, shape index: {}]   ;;  %s4220_s3 = inlined_call_operand.vmem [shape: f32[208,96], index: 3, kind: input, shape index: {}]   ;;  %s4221_s4 = inlined_call_operand.vmem [shape: f32[336,96], index: 4, kind: input, shape index: {}]   ;;  %s4222_s5 = inlined_call_operand.hbm [shape: f32[16,32], index: 5, kind: output, shape index: {}]  }
   0x1   :  { %v22_v0 = vld [vmem:[%s4220_s3] sm:$0xff]  ;;  %v23_v1 = vld [vmem:[%s4220_s3 + $0x8] sm:$0xff]  ;;  %v24_v2 = vld [vmem:[%s4220_s3 + $0x10] sm:$0xff]  ;;  %3002 = vmatprep.subr.bf16.mxu1 %v3446_v3  ;;  %3006 = vmatprep.mubr.msk.bf16.mxu1 %vm3447_vm0, %v3446_v3 }
   0x2   :  { %v99_v4 = vpack.c.bf16 %v23_v1, %v22_v0  ;;  %v25_v5 = vld [vmem:[%s4220_s3 + $0x18] sm:$0xff]  ;;  %3016 = vmatprep.subr.bf16.mxu0 %v3446_v3  ;;  %3018 = vmatprep.mubr.msk.bf16.mxu0 %vm3447_vm0, %v3446_v3 }
   0x3   :  { %10 = vsyncpa [#allocation3], 0  ;;  %v100_v6 = vpack.c.bf16 %v25_v5, %v24_v2  ;;  %v3513_v7 = vld [vmem:[%s4217_s0] sm:$0xff]  ;;  %v3518_v8 = vld [vmem:[%s4217_s0 + $0x8] sm:$0xff]  ;;  %vm105_vm1 = vcmask 261120   ;;  %v101_v10 = vlaneseq  ;;  %s3448_s6 = smov 120  }
   0x4   :  { %3003 = vmatpush3.bf16.msra.mxu1 %v99_v4  ;;  %v98_v9 = vpack.c.bf16 %v3518_v8, %v3513_v7  ;;  %v26_v13 = vld [vmem:[%s4220_s3 + $0x20] sm:$0xff]  ;;  %s3449_s7 = smov 96   ;;  %s3450_s8 = smov 88   ;;  %vm154_vm2 = vcmask 64512   ;;  %vm206_vm3 = vcmask 130048   ;;  %v3563_v32 = vld [vmem:[%s4219_s2 + $0x8] sm:$0xff] }
   0x5   :  { %3004 = vmatprep.subr.bf16.mxu1 %v3446_v3  ;;  %v3527_v11 = vshrl.u32 %v101_v10, 7  ;;  %v3558_v28 = vld [vmem:[%s4219_s2] sm:$0xff]  ;;  %s3451_s13 = smov 56   ;;  %s3452_s14 = smov 64   ;;  %vm409_vm4 = vcmask 1043456   ;;  %vm962_vm5 = vcmask 523264  }
   0x6   :  { %s3453_s15 = smov 80   ;;  %s3454_s16 = smov 112  }
   0x7   :  { %v3530_v12 = vsub.s32 0, %v3527_v11  ;;  %s3455_s21 = smov 72   ;;  %s3456_s22 = smov 48  }
   0x8   :  { %3005 = vmatpush3.bf16.msra.mxu1 %v100_v6  ;;  %s3457_s23 = smov 104   ;;  %s3458_s26 = smov 40  }
   0x9   :  { %3010 = vmatprep.subr.bf16.mxu1 %v3446_v3  ;;  %v104_v14 = vrot.slane %v26_v13, %v3530_v12  ;;  %s3459_s9 = smov [#allocation2]  }
   0xb   :  { %3007 = vmatmul.mubr.msk.bf16.vlgmr.msra.gmra.mrb[0].mxu1 %vm105_vm1, %v98_v9 }
   0xc   :  { %3012 = vmatprep.mubr.msk.bf16.mxu1 %vm3447_vm0, %v3446_v3 }
  0xde   :  { %v143_v15 = vpop.f32.mrb[0].mxu1 }
  0xdf   :  { %v3008_v16 = vpop.f32.mrb[1].mxu1  ;;  %v144_v18 = vadd.f32 %v143_v15, %v104_v14 }
  0xe0   :  { %v146_v17 = vpop.f32.mrb[2].mxu1 }
  0xe1   :  { %v147_v19 = vadd.f32 %v146_v17, %v104_v14  ;;  %v3009_v20 = vpop.f32.mrb[3].mxu1 }
  0xe3   :  { %v3536_v21 = vpack.c.bf16 %v147_v19, %v144_v18 }
  0xe5   :  { %279 = vrot.lane.b32.xlu1 %v3536_v21, %s3448_s6  ;;  %152 = vrot.lane.b32.xlu0 %v3536_v21, %s3449_s7 }
  0xe9   :  { %281 = vrot.lane.b32.xlu0 %v3536_v21, %s3450_s8 }
 0x157   :  { %v153_v22 = vpop.permute.xlu0 %152  ;;  %v280_v26 = vpop.permute.xlu1 %279 }
 0x158   :  { %v159_v23 = vsel %vm154_vm2, %v153_v22, 0 }
 0x159   :  { %3011 = vmatpush3.bf16.xpose.msra.mxu1 %v159_v23 }
 0x15a   :  { %3022 = vmatprep.subr.bf16.mxu1 %v3446_v3 }
 0x15b   :  { %v282_v24 = vpop.permute.xlu0 %281 }
 0x15c   :  { %v287_v25 = vsel %vm154_vm2, %v282_v24, 0 }
 0x160   :  { %3013 = vmatmul.mubr.msk.bf16.vlgmr.msra.gmra.mrb[4].mxu1 %vm154_vm2, %v3536_v21 }
 0x161   :  { %3023 = vmatpush3.bf16.xpose.msra.mxu1 %v287_v25  ;;  %3024 = vmatprep.mubr.msk.bf16.mxu1 %vm3447_vm0, %v3446_v3 }
 0x162   :  { %3034 = vmatprep.subr.bf16.mxu1 %v3446_v3 }
 0x168   :  { %3025 = vmatmul.mubr.msk.bf16.vlgmr.msra.gmra.mrb[8].mxu1 %vm154_vm2, %v280_v26 }
 0x169   :  { %3036 = vmatprep.mubr.msk.bf16.mxu1 %vm3447_vm0, %v3446_v3 }
 0x233   :  { %v195_v27 = vpop.f32.mrb[4].mxu1 }
 0x234   :  { %v202_v29 = vmul.f32 0.35355338, %v195_v27  ;;  %v3014_v30 = vpop.f32.mrb[5].mxu1  ;;  %v27_v27 = vld [vmem:[%s4220_s3 + $0x28] sm:$0xff] }
 0x235   :  { %v198_v31 = vpop.f32.mrb[6].mxu1  ;;  %v28_v30 = vld [vmem:[%s4220_s3 + $0x30] sm:$0xff] }
 0x236   :  { %v203_v33 = vmul.f32 0.35355338, %v198_v31  ;;  %v3015_v34 = vpop.f32.mrb[7].mxu1  ;;  %v204_v35 = vadd.f32 %v202_v29, %v3558_v28  ;;  %v278_v29 = vpack.c.bf16 %v27_v27, %v27_v27 }
 0x238   :  { %v207_v36 = vsel %vm206_vm3, %v204_v35, -inf  ;;  %v205_v37 = vadd.f32 %v203_v33, %v3563_v32  ;;  %v458_v31 = vsel %vm409_vm4, %v278_v29, 0  ;;  %v405_v33 = vpack.c.bf16 %v28_v30, %v28_v30 }
 0x239   :  { %208 = vmax.xlane.f32.xlu1 %v207_v36 }
 0x23a   :  { %v210_v38 = vsel %vm206_vm3, %v205_v37, -inf  ;;  %v411_v34 = vsel %vm409_vm4, %v405_v33, 0  ;;  %v29_v33 = vld [vmem:[%s4220_s3 + $0x38] sm:$0xff] }
 0x23b   :  { %211 = vmax.xlane.f32.xlu0 %v210_v38  ;;  %v323_v39 = vpop.f32.mrb[8].mxu1  ;;  %3035 = vmatpush3.bf16.msra.mxu1 %v411_v34  ;;  %v627_v34 = vpack.c.bf16 %v29_v33, %v29_v33 }
 0x23c   :  { %v330_v40 = vmul.f32 0.35355338, %v323_v39  ;;  %v3026_v41 = vpop.f32.mrb[9].mxu1  ;;  %3046 = vmatprep.subr.bf16.mxu1 %v3446_v3 }
 0x23d   :  { %v326_v42 = vpop.f32.mrb[10].mxu1 }
 0x23e   :  { %v331_v43 = vmul.f32 0.35355338, %v326_v42  ;;  %v3027_v44 = vpop.f32.mrb[11].mxu1  ;;  %v332_v45 = vadd.f32 %v330_v40, %v3558_v28 }
 0x240   :  { %v334_v46 = vsel %vm206_vm3, %v332_v45, -inf  ;;  %v333_v47 = vadd.f32 %v331_v43, %v3563_v32 }
 0x241   :  { %335 = vmax.xlane.f32.xlu0 %v334_v46 }
 0x242   :  { %v337_v48 = vsel %vm206_vm3, %v333_v47, -inf }
 0x243   :  { %338 = vmax.xlane.f32.xlu1 %v337_v48 }
 0x2c6   :  { %v209_v49 = vpop.xlane.xlu1 %208 }
 0x2c7   :  { %v213_v50 = vsub.f32 %v204_v35, %v209_v49 }
 0x2c8   :  { %v212_v51 = vpop.xlane.xlu0 %211 }
 0x2c9   :  { %v215_v52 = vmul.f32 1.442695, %v213_v50  ;;  %v214_v53 = vsub.f32 %v205_v37, %v212_v51 }
 0x2cb   :  { %3306 = vpow2.f32 %v215_v52  ;;  %v217_v54 = vmul.f32 1.442695, %v214_v53 }
 0x2cd   :  { %3308 = vpow2.f32 %v217_v54 }
 0x2ce   :  { %v336_v55 = vpop.xlane.xlu0 %335 }
 0x2cf   :  { %v340_v56 = vsub.f32 %v332_v45, %v336_v55 }
 0x2d0   :  { %v339_v57 = vpop.xlane.xlu1 %338 }
 0x2d1   :  { %v342_v58 = vmul.f32 1.442695, %v340_v56  ;;  %v341_v59 = vsub.f32 %v333_v47, %v339_v57 }
 0x2d3   :  { %3310 = vpow2.f32 %v342_v58  ;;  %v344_v60 = vmul.f32 1.442695, %v341_v59 }
 0x2d5   :  { %v3307_v61 = vpop.eup %3306  ;;  %3312 = vpow2.f32 %v344_v60 }
 0x2d6   :  { %v219_v62 = vsel %vm206_vm3, %v3307_v61, 0.0 }
 0x2d7   :  { %v3309_v63 = vpop.eup %3308  ;;  %220 = vadd.xlane.f32.xlu0 %v219_v62 }
 0x2d8   :  { %v222_v0 = vsel %vm206_vm3, %v3309_v63, 0.0 }
 0x2d9   :  { %223 = vadd.xlane.f32.xlu1 %v222_v0 }
 0x2dd   :  { %v3311_v1 = vpop.eup %3310 }
 0x2de   :  { %v346_v2 = vsel %vm206_vm3, %v3311_v1, 0.0 }
 0x2df   :  { %v3313_v4 = vpop.eup %3312  ;;  %347 = vadd.xlane.f32.xlu0 %v346_v2 }
 0x2e0   :  { %v349_v5 = vsel %vm206_vm3, %v3313_v4, 0.0 }
 0x2e1   :  { %350 = vadd.xlane.f32.xlu1 %v349_v5 }
 0x2f2   :  { %357 = vrot.lane.b32.xlu1 %v3536_v21, %s3451_s13 }
 0x2f5   :  { %230 = vrot.lane.b32.xlu0 %v3536_v21, %s3452_s14 }
 0x2f6   :  { %503 = vrot.lane.b32.xlu1 %v3536_v21, %s3453_s15 }
 0x2f9   :  { %501 = vrot.lane.b32.xlu0 %v3536_v21, %s3454_s16 }
 0x364   :  { %v221_v6 = vpop.xlane.xlu0 %220 }
 0x365   :  { %3314 = vrcp.f32 %v221_v6 }
 0x366   :  { %v224_v9 = vpop.xlane.xlu1 %223 }
 0x367   :  { %3316 = vrcp.f32 %v224_v9 }
 0x36c   :  { %v348_v10 = vpop.xlane.xlu0 %347 }
 0x36d   :  { %3318 = vrcp.f32 %v348_v10 }
 0x36e   :  { %v351_v13 = vpop.xlane.xlu1 %350 }
 0x36f   :  { %v3315_v14 = vpop.eup %3314  ;;  %3320 = vrcp.f32 %v351_v13 }
 0x370   :  { %v231_v15 = vpop.permute.xlu0 %230  ;;  %v227_v17 = vmul.f32 %v3315_v14, %v3307_v61 }
 0x371   :  { %v3317_v16 = vpop.eup %3316  ;;  %3017 = vmatpush3.bf16.msra.mxu0 %v231_v15 }
 0x372   :  { %3028 = vmatprep.subr.bf16.mxu0 %v3446_v3  ;;  %v228_v18 = vmul.f32 %v3317_v16, %v3309_v63  ;;  %v358_v20 = vpop.permute.xlu1 %357 }
 0x374   :  { %v229_v19 = vpack.c.bf16 %v228_v18, %v227_v17  ;;  %v502_v47 = vpop.permute.xlu0 %501 }
 0x376   :  { %3019 = vmatmul.mubr.msk.bf16.vlgmr.msra.gmra.mrb[0].mxu0 %vm206_vm3, %v229_v19  ;;  %v504_v42 = vpop.permute.xlu1 %503 }
 0x377   :  { %v3319_v22 = vpop.eup %3318  ;;  %3029 = vmatpush3.bf16.msra.mxu0 %v358_v20  ;;  %3030 = vmatprep.mubr.msk.bf16.mxu0 %vm3447_vm0, %v3446_v3  ;;  %v509_v46 = vsel %vm154_vm2, %v504_v42, 0 }
 0x378   :  { %3040 = vmatprep.subr.bf16.mxu0 %v3446_v3  ;;  %v354_v24 = vmul.f32 %v3319_v22, %v3311_v1 }
 0x379   :  { %v3321_v23 = vpop.eup %3320 }
 0x37a   :  { %v355_v25 = vmul.f32 %v3321_v23, %v3313_v4 }
 0x37c   :  { %v356_v26 = vpack.c.bf16 %v355_v25, %v354_v24 }
 0x37e   :  { %3031 = vmatmul.mubr.msk.bf16.vlgmr.msra.gmra.mrb[4].mxu0 %vm206_vm3, %v356_v26 }
 0x37f   :  { %3042 = vmatprep.mubr.msk.bf16.mxu0 %vm3447_vm0, %v3446_v3  ;;  %3041 = vmatpush3.bf16.msra.mxu0 %v458_v31 }
 0x380   :  { %3052 = vmatprep.subr.bf16.mxu0 %v3446_v3 }
 0x449   :  { %v270_v35 = vpop.f32.mrb[0].mxu0 }
 0x44a   :  { %v3020_v36 = vpop.f32.mrb[1].mxu0 }
 0x44b   :  { %v273_v37 = vpop.f32.mrb[2].mxu0 }
 0x44c   :  { %v277_v38 = vpack.c.bf16 %v273_v37, %v270_v35  ;;  %v3021_v39 = vpop.f32.mrb[3].mxu0  ;;  %v632_v35 = vsel %vm409_vm4, %v627_v34, 0 }
 0x44e   :  { %3043 = vmatmul.mubr.msk.bf16.vlgmr.msra.gmra.mrb[8].mxu0 %vm154_vm2, %v277_v38 }
 0x44f   :  { %3054 = vmatprep.mubr.msk.bf16.mxu0 %vm3447_vm0, %v3446_v3 }
 0x451   :  { %v397_v40 = vpop.f32.mrb[4].mxu0 }
 0x452   :  { %v3032_v41 = vpop.f32.mrb[5].mxu0 }
 0x453   :  { %v400_v43 = vpop.f32.mrb[6].mxu0 }
 0x454   :  { %v404_v44 = vpack.c.bf16 %v400_v43, %v397_v40  ;;  %v3033_v45 = vpop.f32.mrb[7].mxu0 }
 0x456   :  { %3037 = vmatmul.mubr.msk.bf16.vlgmr.msra.gmra.mrb[12].mxu1 %vm154_vm2, %v404_v44 }
 0x457   :  { %3047 = vmatpush3.bf16.xpose.msra.mxu1 %v509_v46  ;;  %3048 = vmatprep.mubr.msk.bf16.mxu1 %vm3447_vm0, %v3446_v3 }
 0x458   :  { %3058 = vmatprep.subr.bf16.mxu1 %v3446_v3 }
 0x45e   :  { %3049 = vmatmul.mubr.msk.bf16.vlgmr.msra.gmra.mrb[16].mxu1 %vm154_vm2, %v502_v47 }
 0x45f   :  { %3060 = vmatprep.mubr.msk.bf16.mxu1 %vm3447_vm0, %v3446_v3  ;;  %3059 = vmatpush3.bf16.msra.mxu1 %v632_v35 }
 0x460   :  { %3070 = vmatprep.subr.bf16.mxu1 %v3446_v3 }
 0x521   :  { %v494_v48 = vpop.f32.mrb[8].mxu0 }
 0x522   :  { %v3044_v49 = vpop.f32.mrb[9].mxu0 }
 0x523   :  { %v497_v50 = vpop.f32.mrb[10].mxu0 }
 0x524   :  { %v3045_v51 = vpop.f32.mrb[11].mxu0 }
 0x529   :  { %v447_v52 = vpop.f32.mrb[12].mxu1 }
 0x52a   :  { %v3614_v53 = vadd.f32 %v494_v48, %v447_v52  ;;  %v3038_v54 = vpop.f32.mrb[13].mxu1 }
 0x52b   :  { %v450_v55 = vpop.f32.mrb[14].mxu1 }
 0x52c   :  { %v3616_v56 = vadd.f32 %v497_v50, %v450_v55  ;;  %v3039_v57 = vpop.f32.mrb[15].mxu1 }
 0x531   :  { %v545_v58 = vpop.f32.mrb[16].mxu1 }
 0x532   :  { %v552_v59 = vmul.f32 0.35355338, %v545_v58  ;;  %v3050_v60 = vpop.f32.mrb[17].mxu1 }
 0x533   :  { %v548_v61 = vpop.f32.mrb[18].mxu1 }
 0x534   :  { %v553_v62 = vmul.f32 0.35355338, %v548_v61  ;;  %v3051_v63 = vpop.f32.mrb[19].mxu1  ;;  %v554_v0 = vadd.f32 %v552_v59, %v3558_v28 }
 0x536   :  { %v556_v1 = vsel %vm206_vm3, %v554_v0, -inf  ;;  %v555_v2 = vadd.f32 %v553_v62, %v3563_v32 }
 0x537   :  { %557 = vmax.xlane.f32.xlu1 %v556_v1 }
 0x538   :  { %v559_v4 = vsel %vm206_vm3, %v555_v2, -inf }
 0x539   :  { %560 = vmax.xlane.f32.xlu0 %v559_v4 }
 0x5c4   :  { %v558_v5 = vpop.xlane.xlu1 %557 }
 0x5c5   :  { %v562_v6 = vsub.f32 %v554_v0, %v558_v5 }
 0x5c6   :  { %v561_v9 = vpop.xlane.xlu0 %560 }
 0x5c7   :  { %v564_v10 = vmul.f32 1.442695, %v562_v6  ;;  %v563_v13 = vsub.f32 %v555_v2, %v561_v9 }
 0x5c9   :  { %3322 = vpow2.f32 %v564_v10  ;;  %v566_v14 = vmul.f32 1.442695, %v563_v13 }
 0x5cb   :  { %3324 = vpow2.f32 %v566_v14 }
 0x5d3   :  { %v3323_v15 = vpop.eup %3322 }
 0x5d4   :  { %v568_v16 = vsel %vm206_vm3, %v3323_v15, 0.0 }
 0x5d5   :  { %v3325_v17 = vpop.eup %3324  ;;  %569 = vadd.xlane.f32.xlu0 %v568_v16 }
 0x5d6   :  { %v571_v18 = vsel %vm206_vm3, %v3325_v17, 0.0 }
 0x5d7   :  { %572 = vadd.xlane.f32.xlu1 %v571_v18 }
 0x5e8   :  { %679 = vrot.lane.b32.xlu1 %v3536_v21, %s3455_s21 }
 0x5eb   :  { %579 = vrot.lane.b32.xlu0 %v3536_v21, %s3456_s22 }
 0x5ec   :  { %677 = vrot.lane.b32.xlu1 %v3536_v21, %s3457_s23 }
 0x662   :  { %v570_v19 = vpop.xlane.xlu0 %569 }
 0x663   :  { %3326 = vrcp.f32 %v570_v19 }
 0x664   :  { %v573_v20 = vpop.xlane.xlu1 %572 }
 0x665   :  { %3328 = vrcp.f32 %v573_v20 }
 0x666   :  { %v580_v22 = vpop.permute.xlu0 %579 }
 0x667   :  { %3053 = vmatpush3.bf16.msra.mxu0 %v580_v22  ;;  %v31_v22 = vld [vmem:[%s4220_s3 + $0x48] sm:$0xff] }
 0x668   :  { %3064 = vmatprep.subr.bf16.mxu0 %v3446_v3  ;;  %v680_v27 = vpop.permute.xlu1 %679 }
 0x669   :  { %v685_v30 = vsel %vm154_vm2, %v680_v27, 0 }
 0x66c   :  { %v678_v31 = vpop.permute.xlu1 %677 }
 0x66d   :  { %v3327_v23 = vpop.eup %3326 }
 0x66e   :  { %v576_v25 = vmul.f32 %v3327_v23, %v3323_v15  ;;  %v856_v23 = vrot.slane %v31_v22, %v3530_v12  ;;  %v3744_v22 = vld [vmem:[%s4218_s1 + $0x8] sm:$0xff] }
 0x66f   :  { %v3329_v24 = vpop.eup %3328 }
 0x670   :  { %v577_v26 = vmul.f32 %v3329_v24, %v3325_v17 }
 0x672   :  { %v578_v29 = vpack.c.bf16 %v577_v26, %v576_v25 }
 0x674   :  { %3055 = vmatmul.mubr.msk.bf16.vlgmr.msra.gmra.mrb[12].mxu0 %vm206_vm3, %v578_v29 }
 0x675   :  { %3065 = vmatpush3.bf16.xpose.msra.mxu0 %v685_v30  ;;  %3066 = vmatprep.mubr.msk.bf16.mxu0 %vm3447_vm0, %v3446_v3 }
 0x676   :  { %3076 = vmatprep.subr.bf16.mxu0 %v3446_v3 }
 0x67c   :  { %3067 = vmatmul.mubr.msk.bf16.vlgmr.msra.gmra.mrb[16].mxu0 %vm154_vm2, %v678_v31 }
 0x67d   :  { %3078 = vmatprep.mubr.msk.bf16.mxu0 %vm3447_vm0, %v3446_v3 }
 0x747   :  { %v619_v36 = vpop.f32.mrb[12].mxu0 }
 0x748   :  { %v3056_v37 = vpop.f32.mrb[13].mxu0 }
 0x749   :  { %v622_v38 = vpop.f32.mrb[14].mxu0 }
 0x74a   :  { %v626_v39 = vpack.c.bf16 %v622_v38, %v619_v36  ;;  %v3057_v40 = vpop.f32.mrb[15].mxu0 }
 0x74c   :  { %3061 = vmatmul.mubr.msk.bf16.vlgmr.msra.gmra.mrb[20].mxu1 %vm154_vm2, %v626_v39 }
 0x74d   :  { %3072 = vmatprep.mubr.msk.bf16.mxu1 %vm3447_vm0, %v3446_v3 }
 0x74f   :  { %v721_v41 = vpop.f32.mrb[16].mxu0 }
 0x750   :  { %v728_v42 = vmul.f32 0.35355338, %v721_v41  ;;  %v3068_v43 = vpop.f32.mrb[17].mxu0 }
 0x751   :  { %v724_v44 = vpop.f32.mrb[18].mxu0 }
 0x752   :  { %v729_v45 = vmul.f32 0.35355338, %v724_v44  ;;  %v3069_v46 = vpop.f32.mrb[19].mxu0  ;;  %v730_v47 = vadd.f32 %v728_v42, %v3558_v28 }
 0x754   :  { %v732_v48 = vsel %vm206_vm3, %v730_v47, -inf  ;;  %v731_v49 = vadd.f32 %v729_v45, %v3563_v32 }
 0x755   :  { %733 = vmax.xlane.f32.xlu0 %v732_v48 }
 0x756   :  { %v735_v50 = vsel %vm206_vm3, %v731_v49, -inf }
 0x757   :  { %736 = vmax.xlane.f32.xlu1 %v735_v50  ;;  %v36_v50 = vld [vmem:[%s4220_s3 + $0x70] sm:$0xff] }
 0x768   :  { %755 = vrot.lane.b32.xlu1 %v3536_v21, %s3458_s26 }
 0x7e2   :  { %v734_v51 = vpop.xlane.xlu0 %733 }
 0x7e3   :  { %v738_v52 = vsub.f32 %v730_v47, %v734_v51  ;;  %v34_v47 = vld [vmem:[%s4220_s3 + $0x60] sm:$0xff] }
 0x7e4   :  { %v737_v54 = vpop.xlane.xlu1 %736 }
 0x7e5   :  { %v740_v55 = vmul.f32 1.442695, %v738_v52  ;;  %v739_v57 = vsub.f32 %v731_v49, %v737_v54  ;;  %v35_v49 = vld [vmem:[%s4220_s3 + $0x68] sm:$0xff]  ;;  %v38_v52 = vld [vmem:[%s4220_s3 + $0x80] sm:$0xff] }
 0x7e6   :  { %v902_v51 = vpack.c.bf16 %v36_v50, %v35_v49  ;;  %v39_v54 = vld [vmem:[%s4220_s3 + $0x88] sm:$0xff] }
 0x7e7   :  { %3330 = vpow2.f32 %v740_v55  ;;  %v742_v58 = vmul.f32 1.442695, %v739_v57  ;;  %v40_v55 = vld [vmem:[%s4220_s3 + $0x90] sm:$0xff]  ;;  %v954_v57 = vpack.c.bf16 %v39_v54, %v38_v52 }
 0x7e8   :  { %v756_v28 = vpop.permute.xlu1 %755 }
 0x7e9   :  { %3332 = vpow2.f32 %v742_v58  ;;  %3071 = vmatpush3.bf16.msra.mxu1 %v756_v28  ;;  %v41_v58 = vld [vmem:[%s4220_s3 + $0x98] sm:$0xff] }
 0x7ea   :  { %3082 = vmatprep.subr.bf16.mxu1 %v3446_v3  ;;  %v955_v28 = vpack.c.bf16 %v41_v58, %v40_v55 }
 0x7f1   :  { %v3331_v32 = vpop.eup %3330 }
 0x7f2   :  { %v744_v59 = vsel %vm206_vm3, %v3331_v32, 0.0 }
 0x7f3   :  { %v3333_v60 = vpop.eup %3332  ;;  %745 = vadd.xlane.f32.xlu0 %v744_v59 }
 0x7f4   :  { %v747_v61 = vsel %vm206_vm3, %v3333_v60, 0.0 }
 0x7f7   :  { %748 = vadd.xlane.f32.xlu0 %v747_v61 }
 0x81f   :  { %v668_v21 = vpop.f32.mrb[20].mxu1 }
 0x820   :  { %v675_v62 = vadd.f32 %v668_v21, %v3614_v53  ;;  %v3062_v63 = vpop.f32.mrb[21].mxu1  ;;  %v30_v53 = vld [vmem:[%s4220_s3 + $0x40] sm:$0xff] }
 0x821   :  { %v671_v0 = vpop.f32.mrb[22].mxu1  ;;  %v32_v63 = vld [vmem:[%s4220_s3 + $0x50] sm:$0xff] }
 0x822   :  { %v676_v1 = vadd.f32 %v671_v0, %v3616_v56  ;;  %v3063_v2 = vpop.f32.mrb[23].mxu1  ;;  %v803_v56 = vpack.c.bf16 %v30_v53, %v30_v53  ;;  %v49_v53 = vld [vmem:[%s4221_s4 + $0x8] sm:$0xff] }
 0x824   :  { %v808_v15 = vsel %vm409_vm4, %v803_v56, 0 }
 0x825   :  { %3077 = vmatpush3.bf16.msra.mxu0 %v808_v15 }
 0x826   :  { %3090 = vmatprep.subr.bf16.mxu0 %v3446_v3 }
 0x880   :  { %v746_v4 = vpop.xlane.xlu0 %745 }
 0x881   :  { %3334 = vrcp.f32 %v746_v4  ;;  %v3712_v4 = vsub.s32 1, %v3527_v11 }
 0x884   :  { %v749_v5 = vpop.xlane.xlu0 %748 }
 0x885   :  { %3336 = vrcp.f32 %v749_v5 }
 0x88b   :  { %v3335_v6 = vpop.eup %3334 }
 0x88c   :  { %v752_v10 = vmul.f32 %v3335_v6, %v3331_v32 }
 0x88f   :  { %v3337_v9 = vpop.eup %3336 }
 0x890   :  { %v753_v13 = vmul.f32 %v3337_v9, %v3333_v60 }
 0x892   :  { %v754_v14 = vpack.c.bf16 %v753_v13, %v752_v10  ;;  %v897_v10 = vrot.slane %v32_v63, %v3712_v4 }
 0x894   :  { %3073 = vmatmul.mubr.msk.bf16.vlgmr.msra.gmra.mrb[24].mxu1 %vm206_vm3, %v754_v14  ;;  %v48_v14 = vld [vmem:[%s4221_s4] sm:$0xff] }
 0x895   :  { %3086 = vmatprep.mubr.msk.bf16.mxu1 %vm3447_vm0, %v3446_v3  ;;  %v1050_v11 = vpack.c.bf16 %v49_v53, %v48_v14 }
 0x967   :  { %v795_v16 = vpop.f32.mrb[24].mxu1 }
 0x968   :  { %v3074_v17 = vpop.f32.mrb[25].mxu1 }
 0x969   :  { %v798_v18 = vpop.f32.mrb[26].mxu1  ;;  %v50_v17 = vld [vmem:[%s4221_s4 + $0x10] sm:$0xff] }
 0x96a   :  { %v802_v19 = vpack.c.bf16 %v798_v18, %v795_v16  ;;  %v3075_v20 = vpop.f32.mrb[27].mxu1  ;;  %v51_v18 = vld [vmem:[%s4221_s4 + $0x18] sm:$0xff] }
 0x96b   :  { %v3739_v20 = vld [vmem:[%s4218_s1] sm:$0xff] }
 0x96c   :  { %3079 = vmatmul.mubr.msk.bf16.vlgmr.msra.gmra.mrb[20].mxu0 %vm154_vm2, %v802_v19  ;;  %v1051_v19 = vpack.c.bf16 %v51_v18, %v50_v17 }
 0x96d   :  { %3098 = vmatprep.mubr.msk.bf16.mxu0 %vm3447_vm0, %v3446_v3  ;;  %3091 = vmatpush3.bf16.msra.mxu0 %v954_v57 }
 0x96e   :  { %3092 = vmatprep.subr.bf16.mxu0 %v3446_v3 }
 0x971   :  { %3093 = vmatpush3.bf16.msra.mxu0 %v955_v28 }
 0x972   :  { %3094 = vmatprep.subr.bf16.mxu0 %v3446_v3 }
 0xa3f   :  { %v844_v24 = vpop.f32.mrb[20].mxu0 }
 0xa40   :  { %v851_v25 = vadd.f32 %v844_v24, %v675_v62  ;;  %v3080_v26 = vpop.f32.mrb[21].mxu0  ;;  %v42_v24 = vld [vmem:[%s4220_s3 + $0xa0] sm:$0xff] }
 0xa41   :  { %v847_v27 = vpop.f32.mrb[22].mxu0 }
 0xa42   :  { %v857_v29 = vadd.f32 %v856_v23, %v851_v25  ;;  %v852_v30 = vadd.f32 %v847_v27, %v676_v1  ;;  %v3081_v31 = vpop.f32.mrb[23].mxu0  ;;  %v891_v1 = vrot.slane %v32_v63, %v3530_v12  ;;  %v43_v25 = vld [vmem:[%s4220_s3 + $0xa8] sm:$0xff]  ;;  %v44_v27 = vld [vmem:[%s4220_s3 + $0xb0] sm:$0xff]  ;;  %v3809_v63 = vld [vmem:[%s4219_s2 + $0x18] sm:$0xff] }
 0xa43   :  { %v956_v26 = vpack.c.bf16 %v43_v25, %v42_v24  ;;  %v37_v31 = vld [vmem:[%s4220_s3 + $0x78] sm:$0xff] }
 0xa44   :  { %v858_v33 = vadd.f32 %v856_v23, %v852_v30  ;;  %v859_v34 = vadd.f32 %v857_v29, %v3513_v7  ;;  %v1049_v23 = vpack.c.bf16 %v3744_v22, %v3739_v20  ;;  %v45_v29 = vld [vmem:[%s4220_s3 + $0xb8] sm:$0xff] }
 0xa45   :  { %3095 = vmatpush3.bf16.msra.mxu0 %v956_v26  ;;  %v957_v30 = vpack.c.bf16 %v45_v29, %v44_v27 }
 0xa46   :  { %v861_v35 = vsel %vm105_vm1, %v859_v34, 0.0  ;;  %v860_v36 = vadd.f32 %v858_v33, %v3518_v8  ;;  %v33_v8 = vld [vmem:[%s4220_s3 + $0x58] sm:$0xff]  ;;  %3096 = vmatprep.subr.bf16.mxu0 %v3446_v3  ;;  %v906_v33 = vrot.slane %v37_v31, %v3530_v12 }
 0xa47   :  { %862 = vadd.xlane.f32.xlu0 %v861_v35  ;;  %v901_v48 = vpack.c.bf16 %v34_v47, %v33_v8 }
 0xa48   :  { %v864_v37 = vsel %vm105_vm1, %v860_v36, 0.0 }
 0xa49   :  { %3083 = vmatpush3.bf16.msra.mxu1 %v901_v48  ;;  %3097 = vmatpush3.bf16.msra.mxu0 %v957_v30 }
 0xa4a   :  { %3084 = vmatprep.subr.bf16.mxu1 %v3446_v3  ;;  %3116 = vmatprep.subr.bf16.mxu0 %v3446_v3 }
 0xa4b   :  { %865 = vadd.xlane.f32.xlu0 %v864_v37 }
 0xa4d   :  { %3085 = vmatpush3.bf16.msra.mxu1 %v902_v51 }
 0xa4e   :  { %3102 = vmatprep.subr.bf16.mxu1 %v3446_v3 }
 0xad4   :  { %v863_v38 = vpop.xlane.xlu0 %862 }
 0xad5   :  { %v868_v39 = vmul.f32 0.03125, %v863_v38 }
 0xad7   :  { %v870_v40 = vsub.f32 %v859_v34, %v868_v39 }
 0xad8   :  { %v866_v41 = vpop.xlane.xlu0 %865 }
 0xad9   :  { %v869_v42 = vmul.f32 0.03125, %v866_v41  ;;  %v872_v43 = vmul.f32 %v870_v40, %v870_v40 }
 0xadb   :  { %v871_v44 = vsub.f32 %v860_v36, %v869_v42  ;;  %v874_v45 = vsel %vm105_vm1, %v872_v43, 0.0 }
 0xadc   :  { %875 = vadd.xlane.f32.xlu0 %v874_v45 }
 0xadd   :  { %v873_v46 = vmul.f32 %v871_v44, %v871_v44 }
 0xadf   :  { %v877_v7 = vsel %vm105_vm1, %v873_v46, 0.0 }
 0xae0   :  { %878 = vadd.xlane.f32.xlu0 %v877_v7 }
 0xb69   :  { %v876_v32 = vpop.xlane.xlu0 %875 }
 0xb6a   :  { %v880_v59 = vmul.f32 0.03125, %v876_v32 }
 0xb6c   :  { %v882_v60 = vadd.f32 1e-05, %v880_v59 }
 0xb6d   :  { %v879_v61 = vpop.xlane.xlu0 %878 }
 0xb6e   :  { %3338 = vrsqrt.f32 %v882_v60  ;;  %v881_v21 = vmul.f32 0.03125, %v879_v61  ;;  %v3804_v60 = vld [vmem:[%s4219_s2 + $0x10] sm:$0xff] }
 0xb70   :  { %v883_v62 = vadd.f32 1e-05, %v881_v21 }
 0xb72   :  { %3340 = vrsqrt.f32 %v883_v62 }
 0xb78   :  { %v3339_v0 = vpop.eup %3338 }
 0xb79   :  { %v886_v2 = vmul.f32 %v3339_v0, %v870_v40  ;;  %v52_v40 = vld [vmem:[%s4221_s4 + $0x20] sm:$0xff] }
 0xb7b   :  { %v892_v6 = vmul.f32 %v891_v1, %v886_v2 }
 0xb7c   :  { %v3341_v5 = vpop.eup %3340 }
 0xb7d   :  { %v887_v9 = vmul.f32 %v3341_v5, %v871_v44  ;;  %v3721_v56 = vadd.f32 %v897_v10, %v892_v6  ;;  %v1055_v44 = vrot.slane %v52_v40, %v3530_v12 }
 0xb7f   :  { %v893_v13 = vmul.f32 %v891_v1, %v887_v9 }
 0xb81   :  { %v3723_v15 = vadd.f32 %v897_v10, %v893_v13 }
 0xb83   :  { %v900_v16 = vpack.c.bf16 %v3723_v15, %v3721_v56 }
 0xb85   :  { %3087 = vmatmul.mubr.msk.bf16.vlgmr.msra.gmra.mrb[28].mxu1 %vm105_vm1, %v900_v16 }
 0xb86   :  { %3103 = vmatpush3.bf16.msra.mxu1 %v1050_v11  ;;  %3106 = vmatprep.mubr.msk.bf16.mxu1 %vm3447_vm0, %v3446_v3 }
 0xb87   :  { %3104 = vmatprep.subr.bf16.mxu1 %v3446_v3 }
 0xb8a   :  { %3105 = vmatpush3.bf16.msra.mxu1 %v1051_v19 }
 0xb8b   :  { %3110 = vmatprep.subr.bf16.mxu1 %v3446_v3 }
 0xb8d   :  { %3107 = vmatmul.mubr.msk.bf16.vlgmr.msra.gmra.mrb[32].mxu1 %vm105_vm1, %v1049_v23 }
 0xb8e   :  { %3112 = vmatprep.mubr.msk.bf16.mxu1 %vm3447_vm0, %v3446_v3 }
 0xc58   :  { %v944_v34 = vpop.f32.mrb[28].mxu1 }
 0xc59   :  { %v945_v35 = vadd.f32 %v944_v34, %v906_v33  ;;  %v3088_v36 = vpop.f32.mrb[29].mxu1 }
 0xc5a   :  { %v947_v37 = vpop.f32.mrb[30].mxu1 }
 0xc5b   :  { %v948_v38 = vadd.f32 %v947_v37, %v906_v33  ;;  %v3089_v39 = vpop.f32.mrb[31].mxu1  ;;  %v951_v41 = vmax.f32 %v945_v35, 0.0 }
 0xc5d   :  { %v952_v42 = vmax.f32 %v948_v38, 0.0 }
 0xc5f   :  { %v953_v43 = vpack.c.bf16 %v952_v42, %v951_v41 }
 0xc60   :  { %v1093_v45 = vpop.f32.mrb[32].mxu1 }
 0xc61   :  { %3099 = vmatmul.mubr.msk.bf16.vlgmr.msra.gmra.mrb[24].mxu0 %vm962_vm5, %v953_v43  ;;  %v3108_v46 = vpop.f32.mrb[33].mxu1  ;;  %v1094_v8 = vadd.f32 %v1093_v45, %v1055_v44 }
 0xc62   :  { %v1096_v7 = vpop.f32.mrb[34].mxu1  ;;  %3118 = vmatprep.mubr.msk.bf16.mxu0 %vm3447_vm0, %v3446_v3 }
 0xc63   :  { %v1097_v47 = vadd.f32 %v1096_v7, %v1055_v44  ;;  %v3109_v48 = vpop.f32.mrb[35].mxu1 }
 0xc65   :  { %v3778_v49 = vpack.c.bf16 %v1097_v47, %v1094_v8 }
 0xc67   :  { %1229 = vrot.lane.b32.xlu0 %v3778_v49, %s3450_s8  ;;  %1102 = vrot.lane.b32.xlu1 %v3778_v49, %s3449_s7 }
 0xc6b   :  { %1227 = vrot.lane.b32.xlu1 %v3778_v49, %s3448_s6 }
 0xcd9   :  { %v1103_v50 = vpop.permute.xlu1 %1102  ;;  %v1230_v52 = vpop.permute.xlu0 %1229 }
 0xcda   :  { %v1108_v51 = vsel %vm154_vm2, %v1103_v50, 0  ;;  %v1235_v54 = vsel %vm154_vm2, %v1230_v52, 0 }
 0xcdb   :  { %3111 = vmatpush3.bf16.xpose.msra.mxu1 %v1108_v51 }
 0xcdc   :  { %3122 = vmatprep.subr.bf16.mxu1 %v3446_v3 }
 0xcdd   :  { %v1228_v55 = vpop.permute.xlu1 %1227 }
 0xce2   :  { %3113 = vmatmul.mubr.msk.bf16.vlgmr.msra.gmra.mrb[36].mxu1 %vm154_vm2, %v3778_v49 }
 0xce3   :  { %3123 = vmatpush3.bf16.xpose.msra.mxu1 %v1235_v54  ;;  %3124 = vmatprep.mubr.msk.bf16.mxu1 %vm3447_vm0, %v3446_v3 }
 0xce4   :  { %3134 = vmatprep.subr.bf16.mxu1 %v3446_v3 }
 0xcea   :  { %3125 = vmatmul.mubr.msk.bf16.vlgmr.msra.gmra.mrb[40].mxu1 %vm154_vm2, %v1228_v55 }
 0xceb   :  { %3136 = vmatprep.mubr.msk.bf16.mxu1 %vm3447_vm0, %v3446_v3 }
 0xd34   :  { %v3797_v57 = vpop.f32.mrb[24].mxu0 }
 0xd35   :  { %v3100_v58 = vpop.f32.mrb[25].mxu0 }
 0xd36   :  { %v3799_v28 = vpop.f32.mrb[26].mxu0 }
 0xd37   :  { %v3101_v32 = vpop.f32.mrb[27].mxu0 }
 0xdb5   :  { %v1144_v59 = vpop.f32.mrb[36].mxu1 }
 0xdb6   :  { %v1151_v61 = vmul.f32 0.35355338, %v1144_v59  ;;  %v3114_v21 = vpop.f32.mrb[37].mxu1 }
 0xdb7   :  { %v1147_v62 = vpop.f32.mrb[38].mxu1 }
 0xdb8   :  { %v1152_v0 = vmul.f32 0.35355338, %v1147_v62  ;;  %v3115_v1 = vpop.f32.mrb[39].mxu1  ;;  %v1153_v2 = vadd.f32 %v1151_v61, %v3804_v60 }
 0xdba   :  { %v1155_v5 = vsel %vm206_vm3, %v1153_v2, -inf  ;;  %v1154_v6 = vadd.f32 %v1152_v0, %v3809_v63  ;;  %v53_v0 = vld [vmem:[%s4221_s4 + $0x28] sm:$0xff] }
 0xdbb   :  { %1156 = vmax.xlane.f32.xlu1 %v1155_v5  ;;  %v1226_v1 = vpack.c.bf16 %v53_v0, %v53_v0  ;;  %v54_v5 = vld [vmem:[%s4221_s4 + $0x30] sm:$0xff] }
 0xdbc   :  { %v1158_v9 = vsel %vm206_vm3, %v1154_v6, -inf }
 0xdbd   :  { %1159 = vmax.xlane.f32.xlu0 %v1158_v9  ;;  %v1271_v10 = vpop.f32.mrb[40].mxu1 }
 0xdbe   :  { %v1278_v13 = vmul.f32 0.35355338, %v1271_v10  ;;  %v3126_v14 = vpop.f32.mrb[41].mxu1 }
 0xdbf   :  { %v1274_v53 = vpop.f32.mrb[42].mxu1 }
 0xdc0   :  { %v1279_v11 = vmul.f32 0.35355338, %v1274_v53  ;;  %v3127_v16 = vpop.f32.mrb[43].mxu1  ;;  %v1280_v17 = vadd.f32 %v1278_v13, %v3804_v60 }
 0xdc2   :  { %v1282_v18 = vsel %vm206_vm3, %v1280_v17, -inf  ;;  %v1281_v19 = vadd.f32 %v1279_v11, %v3809_v63 }
 0xdc3   :  { %1283 = vmax.xlane.f32.xlu1 %v1282_v18 }
 0xdc4   :  { %v1285_v23 = vsel %vm206_vm3, %v1281_v19, -inf }
 0xdc7   :  { %1286 = vmax.xlane.f32.xlu1 %v1285_v23 }
 0xe48   :  { %v1157_v24 = vpop.xlane.xlu1 %1156 }
 0xe49   :  { %v1161_v25 = vsub.f32 %v1153_v2, %v1157_v24  ;;  %v1405_v2 = vsel %vm409_vm4, %v1226_v1, 0 }
 0xe4a   :  { %v1160_v26 = vpop.xlane.xlu0 %1159 }
 0xe4b   :  { %v1163_v27 = vmul.f32 1.442695, %v1161_v25  ;;  %v1162_v29 = vsub.f32 %v1154_v6, %v1160_v26  ;;  %v1353_v6 = vpack.c.bf16 %v54_v5, %v54_v5 }
 0xe4d   :  { %3342 = vpow2.f32 %v1163_v27  ;;  %v1165_v30 = vmul.f32 1.442695, %v1162_v29  ;;  %v1358_v9 = vsel %vm409_vm4, %v1353_v6, 0 }
 0xe4e   :  { %3135 = vmatpush3.bf16.msra.mxu1 %v1358_v9 }
 0xe4f   :  { %3344 = vpow2.f32 %v1165_v30  ;;  %3146 = vmatprep.subr.bf16.mxu1 %v3446_v3 }
 0xe50   :  { %v1284_v31 = vpop.xlane.xlu1 %1283 }
 0xe51   :  { %v1288_v33 = vsub.f32 %v1280_v17, %v1284_v31 }
 0xe53   :  { %v1290_v34 = vmul.f32 1.442695, %v1288_v33 }
 0xe54   :  { %v1287_v35 = vpop.xlane.xlu1 %1286 }
 0xe55   :  { %3346 = vpow2.f32 %v1290_v34  ;;  %v1289_v36 = vsub.f32 %v1281_v19, %v1287_v35 }
 0xe57   :  { %v3343_v37 = vpop.eup %3342  ;;  %v1292_v38 = vmul.f32 1.442695, %v1289_v36 }
 0xe58   :  { %v1167_v39 = vsel %vm206_vm3, %v3343_v37, 0.0 }
 0xe59   :  { %v3345_v40 = vpop.eup %3344  ;;  %3348 = vpow2.f32 %v1292_v38  ;;  %1168 = vadd.xlane.f32.xlu1 %v1167_v39 }
 0xe5a   :  { %v1170_v41 = vsel %vm206_vm3, %v3345_v40, 0.0 }
 0xe5b   :  { %1171 = vadd.xlane.f32.xlu0 %v1170_v41 }
 0xe5f   :  { %v3347_v42 = vpop.eup %3346 }
 0xe60   :  { %v1294_v43 = vsel %vm206_vm3, %v3347_v42, 0.0 }
 0xe61   :  { %1295 = vadd.xlane.f32.xlu1 %v1294_v43 }
 0xe63   :  { %v3349_v44 = vpop.eup %3348 }
 0xe64   :  { %v1297_v45 = vsel %vm206_vm3, %v3349_v44, 0.0 }
 0xe65   :  { %1298 = vadd.xlane.f32.xlu0 %v1297_v45 }
 0xe72   :  { %1178 = vrot.lane.b32.xlu1 %v3778_v49, %s3452_s14 }
 0xe76   :  { %1450 = vrot.lane.b32.xlu1 %v3778_v49, %s3453_s15 }
 0xe7a   :  { %1448 = vrot.lane.b32.xlu1 %v3778_v49, %s3454_s16 }
 0xe7b   :  { %1305 = vrot.lane.b32.xlu0 %v3778_v49, %s3451_s13 }
 0xee6   :  { %v1169_v46 = vpop.xlane.xlu1 %1168 }
 0xee7   :  { %3350 = vrcp.f32 %v1169_v46 }
 0xee8   :  { %v1172_v7 = vpop.xlane.xlu0 %1171 }
 0xee9   :  { %3352 = vrcp.f32 %v1172_v7 }
 0xeee   :  { %v1296_v8 = vpop.xlane.xlu1 %1295 }
 0xeef   :  { %3354 = vrcp.f32 %v1296_v8 }
 0xef1   :  { %v3351_v47 = vpop.eup %3350 }
 0xef2   :  { %v1299_v48 = vpop.xlane.xlu0 %1298  ;;  %v1179_v50 = vpop.permute.xlu1 %1178  ;;  %v1175_v52 = vmul.f32 %v3351_v47, %v3343_v37 }
 0xef3   :  { %v3353_v51 = vpop.eup %3352  ;;  %3356 = vrcp.f32 %v1299_v48  ;;  %3117 = vmatpush3.bf16.msra.mxu0 %v1179_v50 }
 0xef4   :  { %v1176_v54 = vmul.f32 %v3353_v51, %v3345_v40  ;;  %3128 = vmatprep.subr.bf16.mxu0 %v3446_v3 }
 0xef6   :  { %v1306_v55 = vpop.permute.xlu0 %1305  ;;  %v1177_v58 = vpack.c.bf16 %v1176_v54, %v1175_v52  ;;  %v1451_v18 = vpop.permute.xlu1 %1450 }
 0xef7   :  { %v1456_v25 = vsel %vm154_vm2, %v1451_v18, 0 }
 0xef8   :  { %3119 = vmatmul.mubr.msk.bf16.vlgmr.msra.gmra.mrb[28].mxu0 %vm206_vm3, %v1177_v58 }
 0xef9   :  { %3129 = vmatpush3.bf16.msra.mxu0 %v1306_v55  ;;  %3130 = vmatprep.mubr.msk.bf16.mxu0 %vm3447_vm0, %v3446_v3  ;;  %v3355_v32 = vpop.eup %3354 }
 0xefa   :  { %3140 = vmatprep.subr.bf16.mxu0 %v3446_v3  ;;  %v1302_v61 = vmul.f32 %v3355_v32, %v3347_v42  ;;  %v1449_v26 = vpop.permute.xlu1 %1448 }
 0xefd   :  { %v3357_v59 = vpop.eup %3356 }
 0xefe   :  { %v1303_v21 = vmul.f32 %v3357_v59, %v3349_v44 }
 0xf00   :  { %v1304_v62 = vpack.c.bf16 %v1303_v21, %v1302_v61 }
 0xf02   :  { %3131 = vmatmul.mubr.msk.bf16.vlgmr.msra.gmra.mrb[32].mxu0 %vm206_vm3, %v1304_v62 }
 0xf03   :  { %3142 = vmatprep.mubr.msk.bf16.mxu0 %vm3447_vm0, %v3446_v3  ;;  %3141 = vmatpush3.bf16.msra.mxu0 %v1405_v2 }
 0xf04   :  { %3152 = vmatprep.subr.bf16.mxu0 %v3446_v3 }
 0xfcb   :  { %v1218_v10 = vpop.f32.mrb[28].mxu0 }
 0xfcc   :  { %v3120_v13 = vpop.f32.mrb[29].mxu0 }
 0xfcd   :  { %v1221_v14 = vpop.f32.mrb[30].mxu0 }
 0xfce   :  { %v1225_v53 = vpack.c.bf16 %v1221_v14, %v1218_v10  ;;  %v3121_v11 = vpop.f32.mrb[31].mxu0  ;;  %v55_v14 = vld [vmem:[%s4221_s4 + $0x38] sm:$0xff] }
 0xfd0   :  { %3143 = vmatmul.mubr.msk.bf16.vlgmr.msra.gmra.mrb[36].mxu0 %vm154_vm2, %v1225_v53  ;;  %v1574_v53 = vpack.c.bf16 %v55_v14, %v55_v14 }
 0xfd1   :  { %3154 = vmatprep.mubr.msk.bf16.mxu0 %vm3447_vm0, %v3446_v3 }
 0xfd2   :  { %v1579_v11 = vsel %vm409_vm4, %v1574_v53, 0 }
 0xfd5   :  { %v1345_v16 = vpop.f32.mrb[32].mxu0 }
 0xfd6   :  { %v3132_v17 = vpop.f32.mrb[33].mxu0 }
 0xfd7   :  { %v1348_v19 = vpop.f32.mrb[34].mxu0 }
 0xfd8   :  { %v1352_v23 = vpack.c.bf16 %v1348_v19, %v1345_v16  ;;  %v3133_v24 = vpop.f32.mrb[35].mxu0 }
 0xfda   :  { %3137 = vmatmul.mubr.msk.bf16.vlgmr.msra.gmra.mrb[44].mxu1 %vm154_vm2, %v1352_v23 }
 0xfdb   :  { %3147 = vmatpush3.bf16.xpose.msra.mxu1 %v1456_v25  ;;  %3148 = vmatprep.mubr.msk.bf16.mxu1 %vm3447_vm0, %v3446_v3 }
 0xfdc   :  { %3158 = vmatprep.subr.bf16.mxu1 %v3446_v3 }
 0xfe2   :  { %3149 = vmatmul.mubr.msk.bf16.vlgmr.msra.gmra.mrb[48].mxu1 %vm154_vm2, %v1449_v26 }
 0xfe3   :  { %3160 = vmatprep.mubr.msk.bf16.mxu1 %vm3447_vm0, %v3446_v3  ;;  %3159 = vmatpush3.bf16.msra.mxu1 %v1579_v11 }
 0xfe4   :  { %3170 = vmatprep.subr.bf16.mxu1 %v3446_v3 }
0x10a3   :  { %v1441_v27 = vpop.f32.mrb[36].mxu0 }
0x10a4   :  { %v3144_v29 = vpop.f32.mrb[37].mxu0 }
0x10a5   :  { %v1444_v30 = vpop.f32.mrb[38].mxu0 }
0x10a6   :  { %v3145_v31 = vpop.f32.mrb[39].mxu0 }
0x10ad   :  { %v1394_v33 = vpop.f32.mrb[44].mxu1 }
0x10ae   :  { %v3860_v34 = vadd.f32 %v1441_v27, %v1394_v33  ;;  %v3138_v35 = vpop.f32.mrb[45].mxu1 }
0x10af   :  { %v1397_v36 = vpop.f32.mrb[46].mxu1 }
0x10b0   :  { %v3862_v37 = vadd.f32 %v1444_v30, %v1397_v36  ;;  %v3139_v38 = vpop.f32.mrb[47].mxu1 }
0x10b5   :  { %v1492_v39 = vpop.f32.mrb[48].mxu1 }
0x10b6   :  { %v1499_v40 = vmul.f32 0.35355338, %v1492_v39  ;;  %v3150_v41 = vpop.f32.mrb[49].mxu1 }
0x10b7   :  { %v1495_v42 = vpop.f32.mrb[50].mxu1 }
0x10b8   :  { %v1500_v43 = vmul.f32 0.35355338, %v1495_v42  ;;  %v3151_v44 = vpop.f32.mrb[51].mxu1  ;;  %v1501_v45 = vadd.f32 %v1499_v40, %v3804_v60 }
0x10b9   :  { %v46_v44 = vld [vmem:[%s4220_s3 + $0xc0] sm:$0xff] }
0x10ba   :  { %v1503_v46 = vsel %vm206_vm3, %v1501_v45, -inf  ;;  %v1502_v7 = vadd.f32 %v1500_v43, %v3809_v63 }
0x10bb   :  { %1504 = vmax.xlane.f32.xlu0 %v1503_v46 }
0x10bc   :  { %v1506_v8 = vsel %vm206_vm3, %v1502_v7, -inf }
0x10bd   :  { %1507 = vmax.xlane.f32.xlu1 %v1506_v8 }
0x10ce   :  { %1526 = vrot.lane.b32.xlu1 %v3778_v49, %s3456_s22  ;;  %s2847_s22 = sshll.u32 %s3459_s9, 4  ;;  %s2848_s22 = int_to_ptr.vmem [resolvable:$true] %s2847_s22 }
0x10cf   :  { %p3427_p1 = scmp.lt.s32.totalorder %s2848_s22, %s2848_s22 }
0x10d2   :  { %1624 = vrot.lane.b32.xlu1 %v3778_v49, %s3457_s23 }
0x1148   :  { %v1505_v47 = vpop.xlane.xlu0 %1504 }
0x1149   :  { %v1509_v48 = vsub.f32 %v1501_v45, %v1505_v47 }
0x114a   :  { %v1508_v50 = vpop.xlane.xlu1 %1507 }
0x114b   :  { %v1511_v51 = vmul.f32 1.442695, %v1509_v48  ;;  %v1510_v52 = vsub.f32 %v1502_v7, %v1508_v50 }
0x114d   :  { %3358 = vpow2.f32 %v1511_v51  ;;  %v1513_v54 = vmul.f32 1.442695, %v1510_v52 }
0x114e   :  { %v1527_v55 = vpop.permute.xlu1 %1526 }
0x114f   :  { %3360 = vpow2.f32 %v1513_v54  ;;  %3153 = vmatpush3.bf16.msra.mxu0 %v1527_v55 }
0x1150   :  { %3164 = vmatprep.subr.bf16.mxu0 %v3446_v3 }
0x1152   :  { %v1625_v13 = vpop.permute.xlu1 %1624 }
0x1157   :  { %v3359_v58 = vpop.eup %3358 }
0x1158   :  { %v1515_v32 = vsel %vm206_vm3, %v3359_v58, 0.0 }
0x1159   :  { %v3361_v59 = vpop.eup %3360  ;;  %1516 = vadd.xlane.f32.xlu0 %v1515_v32 }
0x115a   :  { %v1518_v61 = vsel %vm206_vm3, %v3361_v59, 0.0 }
0x115d   :  { %1519 = vadd.xlane.f32.xlu0 %v1518_v61 }
0x1173   :  { %1626 = vrot.lane.b32.xlu0 %v3778_v49, %s3455_s21 }
0x11e6   :  { %v1517_v21 = vpop.xlane.xlu0 %1516 }
0x11e7   :  { %3362 = vrcp.f32 %v1517_v21 }
0x11ea   :  { %v1520_v62 = vpop.xlane.xlu0 %1519 }
0x11eb   :  { %3364 = vrcp.f32 %v1520_v62 }
0x11ee   :  { %v1627_v6 = vpop.permute.xlu0 %1626 }
0x11ef   :  { %v1632_v10 = vsel %vm154_vm2, %v1627_v6, 0 }
0x11f1   :  { %v3363_v0 = vpop.eup %3362 }
0x11f2   :  { %v1523_v2 = vmul.f32 %v3363_v0, %v3359_v58 }
0x11f5   :  { %v3365_v1 = vpop.eup %3364 }
0x11f6   :  { %v1524_v5 = vmul.f32 %v3365_v1, %v3361_v59 }
0x11f8   :  { %v1525_v9 = vpack.c.bf16 %v1524_v5, %v1523_v2 }
0x11fa   :  { %3155 = vmatmul.mubr.msk.bf16.vlgmr.msra.gmra.mrb[40].mxu0 %vm206_vm3, %v1525_v9 }
0x11fb   :  { %3165 = vmatpush3.bf16.xpose.msra.mxu0 %v1632_v10  ;;  %3166 = vmatprep.mubr.msk.bf16.mxu0 %vm3447_vm0, %v3446_v3 }
0x11fc   :  { %3176 = vmatprep.subr.bf16.mxu0 %v3446_v3 }
0x1202   :  { %3167 = vmatmul.mubr.msk.bf16.vlgmr.msra.gmra.mrb[44].mxu0 %vm154_vm2, %v1625_v13  ;;  %v57_v13 = vld [vmem:[%s4221_s4 + $0x48] sm:$0xff] }
0x1203   :  { %3178 = vmatprep.mubr.msk.bf16.mxu0 %vm3447_vm0, %v3446_v3  ;;  %v1803_v53 = vrot.slane %v57_v13, %v3530_v12  ;;  %v61_v13 = vld [vmem:[%s4221_s4 + $0x68] sm:$0xff] }
0x12cd   :  { %v1566_v16 = vpop.f32.mrb[40].mxu0 }
0x12ce   :  { %v3156_v17 = vpop.f32.mrb[41].mxu0 }
0x12cf   :  { %v1569_v18 = vpop.f32.mrb[42].mxu0 }
0x12d0   :  { %v1573_v19 = vpack.c.bf16 %v1569_v18, %v1566_v16  ;;  %v3157_v23 = vpop.f32.mrb[43].mxu0 }
0x12d2   :  { %3161 = vmatmul.mubr.msk.bf16.vlgmr.msra.gmra.mrb[52].mxu1 %vm154_vm2, %v1573_v19 }
0x12d3   :  { %3172 = vmatprep.mubr.msk.bf16.mxu1 %vm3447_vm0, %v3446_v3 }
0x12d5   :  { %v1668_v24 = vpop.f32.mrb[44].mxu0 }
0x12d6   :  { %v1675_v25 = vmul.f32 0.35355338, %v1668_v24  ;;  %v3168_v26 = vpop.f32.mrb[45].mxu0 }
0x12d7   :  { %v1671_v27 = vpop.f32.mrb[46].mxu0 }
0x12d8   :  { %v1676_v29 = vmul.f32 0.35355338, %v1671_v27  ;;  %v3169_v30 = vpop.f32.mrb[47].mxu0  ;;  %v1677_v31 = vadd.f32 %v1675_v25, %v3804_v60  ;;  %v961_v60 = vrot.slane %v46_v44, %v3530_v12  ;;  %v66_v44 = vld [vmem:[%s4221_s4 + $0x90] sm:$0xff] }
0x12da   :  { %v1679_v33 = vsel %vm206_vm3, %v1677_v31, -inf  ;;  %v1678_v35 = vadd.f32 %v1676_v29, %v3809_v63  ;;  %v1001_v63 = vadd.f32 %v3797_v57, %v961_v60  ;;  %v1004_v8 = vadd.f32 %v3799_v28, %v961_v60  ;;  %v67_v60 = vld [vmem:[%s4221_s4 + $0x98] sm:$0xff] }
0x12db   :  { %1680 = vmax.xlane.f32.xlu1 %v1679_v33 }
0x12dc   :  { %v1682_v36 = vsel %vm206_vm3, %v1678_v35, -inf  ;;  %v1007_v48 = vadd.f32 %v1001_v63, %v3721_v56  ;;  %v1008_v51 = vadd.f32 %v1004_v8, %v3723_v15  ;;  %v1899_v63 = vpack.c.bf16 %v67_v60, %v66_v44 }
0x12dd   :  { %1683 = vmax.xlane.f32.xlu0 %v1682_v36 }
0x12de   :  { %v1009_v50 = vsel %vm105_vm1, %v1007_v48, 0.0  ;;  %v1012_v52 = vsel %vm105_vm1, %v1008_v51, 0.0 }
0x1368   :  { %v1681_v38 = vpop.xlane.xlu1 %1680 }
0x1369   :  { %v1685_v39 = vsub.f32 %v1677_v31, %v1681_v38 }
0x136a   :  { %v1684_v40 = vpop.xlane.xlu0 %1683 }
0x136b   :  { %v1687_v41 = vmul.f32 1.442695, %v1685_v39  ;;  %v1686_v42 = vsub.f32 %v1678_v35, %v1684_v40 }
0x136d   :  { %3366 = vpow2.f32 %v1687_v41  ;;  %v1689_v43 = vmul.f32 1.442695, %v1686_v42 }
0x136f   :  { %3368 = vpow2.f32 %v1689_v43 }
0x1377   :  { %v3367_v45 = vpop.eup %3366 }
0x1378   :  { %v1691_v46 = vsel %vm206_vm3, %v3367_v45, 0.0 }
0x1379   :  { %v3369_v7 = vpop.eup %3368  ;;  %1692 = vadd.xlane.f32.xlu0 %v1691_v46 }
0x137a   :  { %v1694_v47 = vsel %vm206_vm3, %v3369_v7, 0.0 }
0x137b   :  { %1695 = vadd.xlane.f32.xlu1 %v1694_v47 }
0x137f   :  { %1010 = vadd.xlane.f32.xlu1 %v1009_v50 }
0x1383   :  { %1013 = vadd.xlane.f32.xlu1 %v1012_v52 }
0x138f   :  { %1702 = vrot.lane.b32.xlu0 %v3778_v49, %s3458_s26 }
0x13a5   :  { %v1615_v57 = vpop.f32.mrb[52].mxu1 }
0x13a6   :  { %v1622_v54 = vadd.f32 %v1615_v57, %v3860_v34  ;;  %v3162_v28 = vpop.f32.mrb[53].mxu1  ;;  %v56_v34 = vld [vmem:[%s4221_s4 + $0x40] sm:$0xff] }
0x13a7   :  { %v1618_v55 = vpop.f32.mrb[54].mxu1 }
0x13a8   :  { %v1623_v58 = vadd.f32 %v1618_v55, %v3862_v37  ;;  %v3163_v56 = vpop.f32.mrb[55].mxu1  ;;  %v1750_v37 = vpack.c.bf16 %v56_v34, %v56_v34 }
0x13aa   :  { %v1755_v1 = vsel %vm409_vm4, %v1750_v37, 0 }
0x13ab   :  { %3177 = vmatpush3.bf16.msra.mxu0 %v1755_v1 }
0x13ac   :  { %3190 = vmatprep.subr.bf16.mxu0 %v3446_v3 }
0x1406   :  { %v1693_v32 = vpop.xlane.xlu0 %1692 }
0x1407   :  { %3370 = vrcp.f32 %v1693_v32 }
0x1408   :  { %v1696_v59 = vpop.xlane.xlu1 %1695 }
0x1409   :  { %3372 = vrcp.f32 %v1696_v59  ;;  %v47_v59 = vld [vmem:[%s4220_s3 + $0xc8] sm:$0xff] }
0x140a   :  { %v1703_v15 = vpop.permute.xlu0 %1702  ;;  %v1044_v34 = vrot.slane %v47_v59, %v3712_v4 }
0x140b   :  { %3171 = vmatpush3.bf16.msra.mxu1 %v1703_v15 }
0x140c   :  { %3182 = vmatprep.subr.bf16.mxu1 %v3446_v3  ;;  %v1011_v14 = vpop.xlane.xlu1 %1010 }
0x140d   :  { %v1015_v19 = vmul.f32 0.03125, %v1011_v14  ;;  %v62_v14 = vld [vmem:[%s4221_s4 + $0x70] sm:$0xff] }
0x140f   :  { %v1017_v30 = vsub.f32 %v1007_v48, %v1015_v19 }
0x1410   :  { %v1014_v26 = vpop.xlane.xlu1 %1013 }
0x1411   :  { %v3371_v61 = vpop.eup %3370  ;;  %v1016_v31 = vmul.f32 0.03125, %v1014_v26  ;;  %v1019_v39 = vmul.f32 %v1017_v30, %v1017_v30 }
0x1412   :  { %v1699_v62 = vmul.f32 %v3371_v61, %v3367_v45  ;;  %v1038_v61 = vrot.slane %v47_v59, %v3530_v12 }
0x1413   :  { %v3373_v21 = vpop.eup %3372  ;;  %v1018_v36 = vsub.f32 %v1008_v51, %v1016_v31  ;;  %v1021_v40 = vsel %vm105_vm1, %v1019_v39, 0.0 }
0x1414   :  { %v1700_v49 = vmul.f32 %v3373_v21, %v3369_v7 }
0x1415   :  { %v1020_v41 = vmul.f32 %v1018_v36, %v1018_v36 }
0x1416   :  { %v1701_v0 = vpack.c.bf16 %v1700_v49, %v1699_v62 }
0x1417   :  { %v1024_v42 = vsel %vm105_vm1, %v1020_v41, 0.0 }
0x1418   :  { %3173 = vmatmul.mubr.msk.bf16.vlgmr.msra.gmra.mrb[56].mxu1 %vm206_vm3, %v1701_v0 }
0x1419   :  { %3186 = vmatprep.mubr.msk.bf16.mxu1 %vm3447_vm0, %v3446_v3 }
0x14eb   :  { %v1742_v2 = vpop.f32.mrb[56].mxu1 }
0x14ec   :  { %v3174_v5 = vpop.f32.mrb[57].mxu1 }
0x14ed   :  { %v1745_v6 = vpop.f32.mrb[58].mxu1 }
0x14ee   :  { %v1749_v9 = vpack.c.bf16 %v1745_v6, %v1742_v2  ;;  %v3175_v10 = vpop.f32.mrb[59].mxu1  ;;  %v59_v6 = vld [vmem:[%s4221_s4 + $0x58] sm:$0xff] }
0x14f0   :  { %3179 = vmatmul.mubr.msk.bf16.vlgmr.msra.gmra.mrb[48].mxu0 %vm154_vm2, %v1749_v9  ;;  %v60_v9 = vld [vmem:[%s4221_s4 + $0x60] sm:$0xff] }
0x14f1   :  { %3194 = vmatprep.mubr.msk.bf16.mxu0 %vm3447_vm0, %v3446_v3  ;;  %v1847_v10 = vpack.c.bf16 %v60_v9, %v59_v6 }
0x14f3   :  { %3183 = vmatpush3.bf16.msra.mxu1 %v1847_v10 }
0x14f4   :  { %3184 = vmatprep.subr.bf16.mxu1 %v3446_v3 }
0x15c3   :  { %v1791_v11 = vpop.f32.mrb[48].mxu0 }
0x15c4   :  { %v1798_v16 = vadd.f32 %v1791_v11, %v1622_v54  ;;  %v3180_v17 = vpop.f32.mrb[49].mxu0 }
0x15c5   :  { %v1794_v18 = vpop.f32.mrb[50].mxu0 }
0x15c6   :  { %v1804_v23 = vadd.f32 %v1803_v53, %v1798_v16  ;;  %v1799_v24 = vadd.f32 %v1794_v18, %v1623_v58  ;;  %v3181_v25 = vpop.f32.mrb[51].mxu0 }
0x15c8   :  { %v1805_v27 = vadd.f32 %v1803_v53, %v1799_v24  ;;  %v1806_v29 = vadd.f32 %v1804_v23, %v3739_v20  ;;  %v64_v20 = vld [vmem:[%s4221_s4 + $0x80] sm:$0xff]  ;;  %v1848_v53 = vpack.c.bf16 %v62_v14, %v61_v13  ;;  %v58_v24 = vld [vmem:[%s4221_s4 + $0x50] sm:$0xff] }
0x15c9   :  { %v1837_v26 = vrot.slane %v58_v24, %v3530_v12 }
0x15ca   :  { %v1808_v33 = vsel %vm105_vm1, %v1806_v29, 0.0  ;;  %v1807_v35 = vadd.f32 %v1805_v27, %v3744_v22  ;;  %v65_v22 = vld [vmem:[%s4221_s4 + $0x88] sm:$0xff]  ;;  %3185 = vmatpush3.bf16.msra.mxu1 %v1848_v53 }
0x15cb   :  { %1809 = vadd.xlane.f32.xlu1 %v1808_v33  ;;  %v1898_v43 = vpack.c.bf16 %v65_v22, %v64_v20  ;;  %3198 = vmatprep.subr.bf16.mxu1 %v3446_v3  ;;  %v1843_v33 = vrot.slane %v58_v24, %v3712_v4 }
0x15cc   :  { %v1811_v38 = vsel %vm105_vm1, %v1807_v35, 0.0 }
0x15cd   :  { %3191 = vmatpush3.bf16.msra.mxu0 %v1898_v43 }
0x15ce   :  { %3192 = vmatprep.subr.bf16.mxu0 %v3446_v3 }
0x15cf   :  { %1812 = vadd.xlane.f32.xlu1 %v1811_v38 }
0x15d1   :  { %3193 = vmatpush3.bf16.msra.mxu0 %v1899_v63 }
0x15d2   :  { %3204 = vmatprep.subr.bf16.mxu0 %v3446_v3 }
0x15d3   :  { %1022 = vadd.xlane.f32.xlu1 %v1021_v40  ;;  %v68_v40 = vld [vmem:[%s4221_s4 + $0xa0] sm:$0xff] }
0x15d4   :  { %v1903_v41 = vrot.slane %v68_v40, %v3530_v12 }
0x15d7   :  { %1025 = vadd.xlane.f32.xlu1 %v1024_v42 }
0x1658   :  { %v1810_v45 = vpop.xlane.xlu1 %1809 }
0x1659   :  { %v1814_v46 = vmul.f32 0.03125, %v1810_v45 }
0x165b   :  { %v1816_v7 = vsub.f32 %v1806_v29, %v1814_v46  ;;  %v63_v46 = vld [vmem:[%s4221_s4 + $0x78] sm:$0xff] }
0x165c   :  { %v1813_v8 = vpop.xlane.xlu1 %1812 }
0x165d   :  { %v1815_v47 = vmul.f32 0.03125, %v1813_v8  ;;  %v1818_v48 = vmul.f32 %v1816_v7, %v1816_v7 }
0x165f   :  { %v1817_v50 = vsub.f32 %v1807_v35, %v1815_v47  ;;  %v1820_v51 = vsel %vm105_vm1, %v1818_v48, 0.0 }
0x1660   :  { %1821 = vadd.xlane.f32.xlu0 %v1820_v51  ;;  %v1023_v52 = vpop.xlane.xlu1 %1022 }
0x1661   :  { %v1027_v57 = vmul.f32 0.03125, %v1023_v52  ;;  %v1819_v54 = vmul.f32 %v1817_v50, %v1817_v50 }
0x1663   :  { %v1029_v28 = vadd.f32 1e-05, %v1027_v57  ;;  %v1823_v55 = vsel %vm105_vm1, %v1819_v54, 0.0 }
0x1664   :  { %1824 = vadd.xlane.f32.xlu1 %v1823_v55  ;;  %v1026_v58 = vpop.xlane.xlu1 %1025 }
0x1665   :  { %3374 = vrsqrt.f32 %v1029_v28  ;;  %v1028_v56 = vmul.f32 0.03125, %v1026_v58 }
0x1667   :  { %v1030_v32 = vadd.f32 1e-05, %v1028_v56  ;;  %v4018_v56 = vld [vmem:[%s4219_s2 + $0x20] sm:$0xff] }
0x1669   :  { %3376 = vrsqrt.f32 %v1030_v32 }
0x166f   :  { %v3375_v15 = vpop.eup %3374 }
0x1670   :  { %v1033_v21 = vmul.f32 %v3375_v15, %v1017_v30 }
0x1672   :  { %v1039_v49 = vmul.f32 %v1038_v61, %v1033_v21 }
0x1673   :  { %v3377_v62 = vpop.eup %3376 }
0x1674   :  { %v1034_v0 = vmul.f32 %v3377_v62, %v1018_v36  ;;  %v1045_v1 = vadd.f32 %v1044_v34, %v1039_v49 }
0x1676   :  { %v1040_v37 = vmul.f32 %v1038_v61, %v1034_v0  ;;  %v4023_v61 = vld [vmem:[%s4219_s2 + $0x28] sm:$0xff] }
0x1678   :  { %v1046_v2 = vadd.f32 %v1044_v34, %v1040_v37 }
0x167a   :  { %v1897_v5 = vpack.c.bf16 %v1046_v2, %v1045_v1 }
0x167c   :  { %3195 = vmatmul.mubr.msk.bf16.vlgmr.msra.gmra.mrb[52].mxu0 %vm105_vm1, %v1897_v5 }
0x167d   :  { %3206 = vmatprep.mubr.msk.bf16.mxu0 %vm3447_vm0, %v3446_v3 }
0x16ed   :  { %v1822_v11 = vpop.xlane.xlu0 %1821 }
0x16ee   :  { %v1826_v16 = vmul.f32 0.03125, %v1822_v11 }
0x16f0   :  { %v1828_v17 = vadd.f32 1e-05, %v1826_v16 }
0x16f1   :  { %v1825_v18 = vpop.xlane.xlu1 %1824 }
0x16f2   :  { %3378 = vrsqrt.f32 %v1828_v17  ;;  %v1827_v19 = vmul.f32 0.03125, %v1825_v18 }
0x16f4   :  { %v1829_v23 = vadd.f32 1e-05, %v1827_v19 }
0x16f6   :  { %3380 = vrsqrt.f32 %v1829_v23 }
0x16fc   :  { %v3379_v25 = vpop.eup %3378 }
0x16fd   :  { %v1832_v27 = vmul.f32 %v3379_v25, %v1816_v7  ;;  %v1852_v7 = vrot.slane %v63_v46, %v3530_v12 }
0x16ff   :  { %v1838_v30 = vmul.f32 %v1837_v26, %v1832_v27 }
0x1700   :  { %v3381_v29 = vpop.eup %3380 }
0x1701   :  { %v1833_v31 = vmul.f32 %v3381_v29, %v1817_v50  ;;  %v3978_v36 = vadd.f32 %v1843_v33, %v1838_v30 }
0x1703   :  { %v1839_v35 = vmul.f32 %v1837_v26, %v1833_v31 }
0x1705   :  { %v3980_v38 = vadd.f32 %v1843_v33, %v1839_v35 }
0x1707   :  { %v1846_v39 = vpack.c.bf16 %v3980_v38, %v3978_v36 }
0x1709   :  { %3187 = vmatmul.mubr.msk.bf16.vlgmr.msra.gmra.mrb[60].mxu1 %vm105_vm1, %v1846_v39 }
0x170a   :  { %3200 = vmatprep.mubr.msk.bf16.mxu1 %vm3447_vm0, %v3446_v3 }
0x174f   :  { %v1941_v42 = vpop.f32.mrb[52].mxu0 }
0x1750   :  { %v3196_v20 = vpop.f32.mrb[53].mxu0  ;;  %v1942_v43 = vadd.f32 %v1941_v42, %v1903_v41 }
0x1751   :  { %v1944_v22 = vpop.f32.mrb[54].mxu0 }
0x1752   :  { %v1945_v44 = vadd.f32 %v1944_v22, %v1903_v41  ;;  %v3197_v60 = vpop.f32.mrb[55].mxu0 }
0x1754   :  { %v3991_v63 = vpack.c.bf16 %v1945_v44, %v1942_v43 }
0x1756   :  { %2077 = vrot.lane.b32.xlu1 %v3991_v63, %s3448_s6  ;;  %v1954_v45 = vsel %vm154_vm2, %v3991_v63, 0 }
0x1757   :  { %3199 = vmatpush3.bf16.xpose.msra.mxu1 %v1954_v45 }
0x1758   :  { %3210 = vmatprep.subr.bf16.mxu1 %v3446_v3 }
0x17c8   :  { %v2078_v57 = vpop.permute.xlu1 %2077 }
0x17c9   :  { %v2083_v28 = vsel %vm154_vm2, %v2078_v57, 0 }
0x17dc   :  { %v1890_v8 = vpop.f32.mrb[60].mxu1 }
0x17dd   :  { %v3188_v47 = vpop.f32.mrb[61].mxu1  ;;  %v1891_v50 = vadd.f32 %v1890_v8, %v1852_v7 }
0x17de   :  { %v1893_v48 = vpop.f32.mrb[62].mxu1 }
0x17df   :  { %v1894_v51 = vadd.f32 %v1893_v48, %v1852_v7  ;;  %v3189_v52 = vpop.f32.mrb[63].mxu1 }
0x17e1   :  { %v4002_v54 = vpack.c.bf16 %v1894_v51, %v1891_v50 }
0x17e3   :  { %2075 = vrot.lane.b32.xlu1 %v4002_v54, %s3448_s6  ;;  %3201 = vmatmul.mubr.msk.bf16.vlgmr.msra.gmra.mrb[64].mxu1 %vm154_vm2, %v4002_v54 }
0x17e4   :  { %3211 = vmatpush3.bf16.xpose.msra.mxu1 %v2083_v28  ;;  %3212 = vmatprep.mubr.msk.bf16.mxu1 %vm3447_vm0, %v3446_v3 }
0x17e5   :  { %3222 = vmatprep.subr.bf16.mxu1 %v3446_v3 }
0x1855   :  { %v2076_v55 = vpop.permute.xlu1 %2075 }
0x1856   :  { %3213 = vmatmul.mubr.msk.bf16.vlgmr.msra.gmra.mrb[68].mxu1 %vm154_vm2, %v2076_v55 }
0x1857   :  { %3224 = vmatprep.mubr.msk.bf16.mxu1 %vm3447_vm0, %v3446_v3 }
0x18b6   :  { %v1990_v58 = vpop.f32.mrb[64].mxu1 }
0x18b7   :  { %v1997_v32 = vmul.f32 0.35355338, %v1990_v58  ;;  %v3202_v59 = vpop.f32.mrb[65].mxu1 }
0x18b8   :  { %v1993_v15 = vpop.f32.mrb[66].mxu1 }
0x18b9   :  { %v1998_v21 = vmul.f32 0.35355338, %v1993_v15  ;;  %v3203_v62 = vpop.f32.mrb[67].mxu1  ;;  %v1999_v49 = vadd.f32 %v1997_v32, %v4018_v56  ;;  %v69_v32 = vld [vmem:[%s4221_s4 + $0xa8] sm:$0xff]  ;;  %v70_v15 = vld [vmem:[%s4221_s4 + $0xb0] sm:$0xff] }
0x18ba   :  { %v2073_v59 = vpack.c.bf16 %v69_v32, %v69_v32  ;;  %v2201_v62 = vpack.c.bf16 %v70_v15, %v70_v15 }
0x18bb   :  { %v2001_v0 = vsel %vm206_vm3, %v1999_v49, -inf  ;;  %v2000_v34 = vadd.f32 %v1998_v21, %v4023_v61 }
0x18bc   :  { %2002 = vmax.xlane.f32.xlu1 %v2001_v0  ;;  %v2253_v21 = vsel %vm409_vm4, %v2073_v59, 0 }
0x18bd   :  { %v2004_v37 = vsel %vm206_vm3, %v2000_v34, -inf }
0x18be   :  { %2005 = vmax.xlane.f32.xlu0 %v2004_v37 }
0x18cd   :  { %2153 = vrot.lane.b32.xlu1 %v3991_v63, %s3450_s8 }
0x18d1   :  { %2296 = vrot.lane.b32.xlu1 %v4002_v54, %s3454_s16 }
0x1929   :  { %v2119_v1 = vpop.f32.mrb[68].mxu1 }
0x192a   :  { %v2126_v2 = vmul.f32 0.35355338, %v2119_v1  ;;  %v3214_v5 = vpop.f32.mrb[69].mxu1 }
0x192b   :  { %v2122_v6 = vpop.f32.mrb[70].mxu1 }
0x192c   :  { %v2127_v9 = vmul.f32 0.35355338, %v2122_v6  ;;  %v3215_v10 = vpop.f32.mrb[71].mxu1  ;;  %v2128_v13 = vadd.f32 %v2126_v2, %v4018_v56 }
0x192e   :  { %v2130_v14 = vsel %vm206_vm3, %v2128_v13, -inf  ;;  %v2129_v53 = vadd.f32 %v2127_v9, %v4023_v61 }
0x192f   :  { %2131 = vmax.xlane.f32.xlu0 %v2130_v14 }
0x1930   :  { %v2133_v11 = vsel %vm206_vm3, %v2129_v53, -inf }
0x1933   :  { %2134 = vmax.xlane.f32.xlu0 %v2133_v11 }
0x1949   :  { %v2003_v16 = vpop.xlane.xlu1 %2002 }
0x194a   :  { %v2007_v17 = vsub.f32 %v1999_v49, %v2003_v16  ;;  %v2206_v49 = vsel %vm409_vm4, %v2201_v62, 0  ;;  %v71_v62 = vld [vmem:[%s4221_s4 + $0xb8] sm:$0xff] }
0x194b   :  { %v2006_v18 = vpop.xlane.xlu0 %2005  ;;  %3223 = vmatpush3.bf16.msra.mxu1 %v2206_v49  ;;  %v2422_v49 = vpack.c.bf16 %v71_v62, %v71_v62 }
0x194c   :  { %v2009_v19 = vmul.f32 1.442695, %v2007_v17  ;;  %v2008_v23 = vsub.f32 %v2000_v34, %v2006_v18  ;;  %3234 = vmatprep.subr.bf16.mxu1 %v3446_v3 }
0x194d   :  { %v2154_v51 = vpop.permute.xlu1 %2153 }
0x194e   :  { %3382 = vpow2.f32 %v2009_v19  ;;  %v2011_v24 = vmul.f32 1.442695, %v2008_v23 }
0x1950   :  { %3384 = vpow2.f32 %v2011_v24 }
0x1951   :  { %v2297_v11 = vpop.permute.xlu1 %2296 }
0x1958   :  { %v3383_v25 = vpop.eup %3382 }
0x1959   :  { %v2013_v26 = vsel %vm206_vm3, %v3383_v25, 0.0 }
0x195a   :  { %v3385_v27 = vpop.eup %3384  ;;  %2014 = vadd.xlane.f32.xlu0 %v2013_v26 }
0x195b   :  { %v2016_v29 = vsel %vm206_vm3, %v3385_v27, 0.0 }
0x195e   :  { %2017 = vadd.xlane.f32.xlu0 %v2016_v29 }
0x19bc   :  { %v2132_v30 = vpop.xlane.xlu0 %2131 }
0x19bd   :  { %v2136_v31 = vsub.f32 %v2128_v13, %v2132_v30 }
0x19bf   :  { %v2138_v33 = vmul.f32 1.442695, %v2136_v31 }
0x19c0   :  { %v2135_v35 = vpop.xlane.xlu0 %2134 }
0x19c1   :  { %3386 = vpow2.f32 %v2138_v33  ;;  %v2137_v39 = vsub.f32 %v2129_v53, %v2135_v35 }
0x19c3   :  { %v2140_v40 = vmul.f32 1.442695, %v2137_v39 }
0x19c5   :  { %3388 = vpow2.f32 %v2140_v40 }
0x19cb   :  { %v3387_v41 = vpop.eup %3386 }
0x19cc   :  { %v2142_v42 = vsel %vm206_vm3, %v3387_v41, 0.0 }
0x19cd   :  { %2143 = vadd.xlane.f32.xlu0 %v2142_v42 }
0x19cf   :  { %v3389_v20 = vpop.eup %3388 }
0x19d0   :  { %v2145_v22 = vsel %vm206_vm3, %v3389_v20, 0.0 }
0x19d1   :  { %2146 = vadd.xlane.f32.xlu0 %v2145_v22 }
0x19e7   :  { %2025 = vrot.lane.b32.xlu0 %v3991_v63, %s3449_s7  ;;  %v2015_v43 = vpop.xlane.xlu0 %2014 }
0x19eb   :  { %2298 = vrot.lane.b32.xlu0 %v3991_v63, %s3454_s16  ;;  %v2018_v44 = vpop.xlane.xlu0 %2017 }
0x19ec   :  { %3390 = vrcp.f32 %v2018_v44 }
0x19ed   :  { %3392 = vrcp.f32 %v2015_v43 }
0x19f6   :  { %v3391_v45 = vpop.eup %3390 }
0x19f7   :  { %v3393_v7 = vpop.eup %3392  ;;  %v2022_v8 = vmul.f32 %v3391_v45, %v3385_v27 }
0x19f8   :  { %v2021_v47 = vmul.f32 %v3393_v7, %v3383_v25 }
0x19fa   :  { %v2023_v50 = vpack.c.bf16 %v2022_v8, %v2021_v47 }
0x1a5a   :  { %v2144_v60 = vpop.xlane.xlu0 %2143 }
0x1a5b   :  { %3394 = vrcp.f32 %v2144_v60 }
0x1a5e   :  { %v2147_v46 = vpop.xlane.xlu0 %2146 }
0x1a5f   :  { %3396 = vrcp.f32 %v2147_v46 }
0x1a62   :  { %v2026_v48 = vpop.permute.xlu0 %2025 }
0x1a63   :  { %3205 = vmatpush3.bf16.msra.mxu0 %v2026_v48 }
0x1a64   :  { %3216 = vmatprep.subr.bf16.mxu0 %v3446_v3 }
0x1a65   :  { %v3395_v52 = vpop.eup %3394 }
0x1a66   :  { %3207 = vmatmul.mubr.msk.bf16.vlgmr.msra.gmra.mrb[56].mxu0 %vm206_vm3, %v2023_v50  ;;  %v2150_v28 = vmul.f32 %v3395_v52, %v3387_v41  ;;  %v2299_v9 = vpop.permute.xlu0 %2298 }
0x1a67   :  { %3217 = vmatpush3.bf16.msra.mxu0 %v2154_v51  ;;  %3218 = vmatprep.mubr.msk.bf16.mxu0 %vm3447_vm0, %v3446_v3  ;;  %v2304_v53 = vsel %vm154_vm2, %v2299_v9, 0 }
0x1a68   :  { %3228 = vmatprep.subr.bf16.mxu0 %v3446_v3 }
0x1a69   :  { %v3397_v57 = vpop.eup %3396 }
0x1a6a   :  { %v2151_v55 = vmul.f32 %v3397_v57, %v3389_v20 }
0x1a6c   :  { %v2152_v58 = vpack.c.bf16 %v2151_v55, %v2150_v28 }
0x1a6e   :  { %3219 = vmatmul.mubr.msk.bf16.vlgmr.msra.gmra.mrb[60].mxu0 %vm206_vm3, %v2152_v58 }
0x1a6f   :  { %3230 = vmatprep.mubr.msk.bf16.mxu0 %vm3447_vm0, %v3446_v3  ;;  %3229 = vmatpush3.bf16.msra.mxu0 %v2253_v21 }
0x1a70   :  { %3240 = vmatprep.subr.bf16.mxu0 %v3446_v3 }
0x1b39   :  { %v2065_v0 = vpop.f32.mrb[56].mxu0 }
0x1b3a   :  { %v3208_v34 = vpop.f32.mrb[57].mxu0 }
0x1b3b   :  { %v2068_v37 = vpop.f32.mrb[58].mxu0 }
0x1b3c   :  { %v2072_v1 = vpack.c.bf16 %v2068_v37, %v2065_v0  ;;  %v3209_v2 = vpop.f32.mrb[59].mxu0  ;;  %v2427_v0 = vsel %vm409_vm4, %v2422_v49, 0 }
0x1b3e   :  { %3231 = vmatmul.mubr.msk.bf16.vlgmr.msra.gmra.mrb[64].mxu0 %vm154_vm2, %v2072_v1 }
0x1b3f   :  { %3242 = vmatprep.mubr.msk.bf16.mxu0 %vm3447_vm0, %v3446_v3 }
0x1b41   :  { %v2193_v5 = vpop.f32.mrb[60].mxu0 }
0x1b42   :  { %v3220_v6 = vpop.f32.mrb[61].mxu0 }
0x1b43   :  { %v2196_v10 = vpop.f32.mrb[62].mxu0 }
0x1b44   :  { %v2200_v13 = vpack.c.bf16 %v2196_v10, %v2193_v5  ;;  %v3221_v14 = vpop.f32.mrb[63].mxu0 }
0x1b46   :  { %3225 = vmatmul.mubr.msk.bf16.vlgmr.msra.gmra.mrb[72].mxu1 %vm154_vm2, %v2200_v13 }
0x1b47   :  { %3235 = vmatpush3.bf16.xpose.msra.mxu1 %v2304_v53  ;;  %3236 = vmatprep.mubr.msk.bf16.mxu1 %vm3447_vm0, %v3446_v3 }
0x1b48   :  { %3246 = vmatprep.subr.bf16.mxu1 %v3446_v3 }
0x1b4e   :  { %3237 = vmatmul.mubr.msk.bf16.vlgmr.msra.gmra.mrb[76].mxu1 %vm154_vm2, %v2297_v11 }
0x1b4f   :  { %3248 = vmatprep.mubr.msk.bf16.mxu1 %vm3447_vm0, %v3446_v3  ;;  %3247 = vmatpush3.bf16.msra.mxu1 %v2427_v0 }
0x1b50   :  { %3258 = vmatprep.subr.bf16.mxu1 %v3446_v3 }
0x1c11   :  { %v2289_v16 = vpop.f32.mrb[64].mxu0 }
0x1c12   :  { %v3232_v17 = vpop.f32.mrb[65].mxu0 }
0x1c13   :  { %v2292_v18 = vpop.f32.mrb[66].mxu0 }
0x1c14   :  { %v3233_v19 = vpop.f32.mrb[67].mxu0 }
0x1c19   :  { %v2242_v23 = vpop.f32.mrb[72].mxu1 }
0x1c1a   :  { %v4074_v24 = vadd.f32 %v2289_v16, %v2242_v23  ;;  %v3226_v25 = vpop.f32.mrb[73].mxu1 }
0x1c1b   :  { %v2245_v26 = vpop.f32.mrb[74].mxu1 }
0x1c1c   :  { %v4076_v27 = vadd.f32 %v2292_v18, %v2245_v26  ;;  %v3227_v29 = vpop.f32.mrb[75].mxu1 }
0x1c21   :  { %v2340_v30 = vpop.f32.mrb[76].mxu1 }
0x1c22   :  { %v2347_v31 = vmul.f32 0.35355338, %v2340_v30  ;;  %v3238_v33 = vpop.f32.mrb[77].mxu1 }
0x1c23   :  { %v2343_v35 = vpop.f32.mrb[78].mxu1 }
0x1c24   :  { %v2348_v39 = vmul.f32 0.35355338, %v2343_v35  ;;  %v3239_v40 = vpop.f32.mrb[79].mxu1  ;;  %v2349_v41 = vadd.f32 %v2347_v31, %v4018_v56 }
0x1c26   :  { %v2351_v42 = vsel %vm206_vm3, %v2349_v41, -inf  ;;  %v2350_v20 = vadd.f32 %v2348_v39, %v4023_v61 }
0x1c27   :  { %2352 = vmax.xlane.f32.xlu0 %v2351_v42 }
0x1c28   :  { %v2354_v22 = vsel %vm206_vm3, %v2350_v20, -inf }
0x1c29   :  { %2355 = vmax.xlane.f32.xlu1 %v2354_v22 }
0x1c3a   :  { %2374 = vrot.lane.b32.xlu1 %v3991_v63, %s3453_s15 }
0x1c3e   :  { %2472 = vrot.lane.b32.xlu1 %v4002_v54, %s3457_s23 }
0x1cb4   :  { %v2353_v43 = vpop.xlane.xlu0 %2352 }
0x1cb5   :  { %v2357_v44 = vsub.f32 %v2349_v41, %v2353_v43 }
0x1cb6   :  { %v2356_v60 = vpop.xlane.xlu1 %2355 }
0x1cb7   :  { %v2359_v45 = vmul.f32 1.442695, %v2357_v44  ;;  %v2358_v46 = vsub.f32 %v2350_v20, %v2356_v60 }
0x1cb9   :  { %3398 = vpow2.f32 %v2359_v45  ;;  %v2361_v7 = vmul.f32 1.442695, %v2358_v46 }
0x1cba   :  { %v2375_v8 = vpop.permute.xlu1 %2374 }
0x1cbb   :  { %3400 = vpow2.f32 %v2361_v7  ;;  %3241 = vmatpush3.bf16.msra.mxu0 %v2375_v8 }
0x1cbc   :  { %3252 = vmatprep.subr.bf16.mxu0 %v3446_v3 }
0x1cbe   :  { %v2473_v21 = vpop.permute.xlu1 %2472 }
0x1cc3   :  { %v3399_v47 = vpop.eup %3398 }
0x1cc4   :  { %v2363_v48 = vsel %vm206_vm3, %v3399_v47, 0.0 }
0x1cc5   :  { %v3401_v50 = vpop.eup %3400  ;;  %2364 = vadd.xlane.f32.xlu0 %v2363_v48 }
0x1cc6   :  { %v2366_v51 = vsel %vm206_vm3, %v3401_v50, 0.0 }
0x1cc9   :  { %2367 = vadd.xlane.f32.xlu0 %v2366_v51 }
0x1cdf   :  { %2474 = vrot.lane.b32.xlu0 %v3991_v63, %s3457_s23 }
0x1d52   :  { %v2365_v54 = vpop.xlane.xlu0 %2364 }
0x1d53   :  { %3402 = vrcp.f32 %v2365_v54 }
0x1d56   :  { %v2368_v52 = vpop.xlane.xlu0 %2367 }
0x1d57   :  { %3404 = vrcp.f32 %v2368_v52  ;;  %v73_v52 = vld [vmem:[%s4221_s4 + $0xc8] sm:$0xff] }
0x1d5a   :  { %v2475_v32 = vpop.permute.xlu0 %2474 }
0x1d5b   :  { %v2480_v15 = vsel %vm154_vm2, %v2475_v32, 0 }
0x1d5d   :  { %v3403_v57 = vpop.eup %3402 }
0x1d5e   :  { %v2371_v55 = vmul.f32 %v3403_v57, %v3399_v47  ;;  %v2651_v57 = vrot.slane %v73_v52, %v3530_v12 }
0x1d61   :  { %v3405_v28 = vpop.eup %3404 }
0x1d62   :  { %v2372_v58 = vmul.f32 %v3405_v28, %v3401_v50 }
0x1d64   :  { %v2373_v59 = vpack.c.bf16 %v2372_v58, %v2371_v55 }
0x1d66   :  { %3243 = vmatmul.mubr.msk.bf16.vlgmr.msra.gmra.mrb[68].mxu0 %vm206_vm3, %v2373_v59 }
0x1d67   :  { %3253 = vmatpush3.bf16.xpose.msra.mxu0 %v2480_v15  ;;  %3254 = vmatprep.mubr.msk.bf16.mxu0 %vm3447_vm0, %v3446_v3 }
0x1d68   :  { %3264 = vmatprep.subr.bf16.mxu0 %v3446_v3 }
0x1d6e   :  { %3255 = vmatmul.mubr.msk.bf16.vlgmr.msra.gmra.mrb[72].mxu0 %vm154_vm2, %v2473_v21 }
0x1d6f   :  { %3266 = vmatprep.mubr.msk.bf16.mxu0 %vm3447_vm0, %v3446_v3 }
0x1e39   :  { %v2414_v34 = vpop.f32.mrb[68].mxu0 }
0x1e3a   :  { %v3244_v37 = vpop.f32.mrb[69].mxu0 }
0x1e3b   :  { %v2417_v1 = vpop.f32.mrb[70].mxu0 }
0x1e3c   :  { %v2421_v2 = vpack.c.bf16 %v2417_v1, %v2414_v34  ;;  %v3245_v5 = vpop.f32.mrb[71].mxu0 }
0x1e3e   :  { %3249 = vmatmul.mubr.msk.bf16.vlgmr.msra.gmra.mrb[80].mxu1 %vm154_vm2, %v2421_v2 }
0x1e3f   :  { %3260 = vmatprep.mubr.msk.bf16.mxu1 %vm3447_vm0, %v3446_v3 }
0x1e41   :  { %v2516_v6 = vpop.f32.mrb[72].mxu0 }
0x1e42   :  { %v2523_v9 = vmul.f32 0.35355338, %v2516_v6  ;;  %v3256_v10 = vpop.f32.mrb[73].mxu0 }
0x1e43   :  { %v2519_v13 = vpop.f32.mrb[74].mxu0 }
0x1e44   :  { %v2524_v14 = vmul.f32 0.35355338, %v2519_v13  ;;  %v3257_v53 = vpop.f32.mrb[75].mxu0  ;;  %v2525_v11 = vadd.f32 %v2523_v9, %v4018_v56 }
0x1e46   :  { %v2527_v16 = vsel %vm206_vm3, %v2525_v11, -inf  ;;  %v2526_v17 = vadd.f32 %v2524_v14, %v4023_v61 }
0x1e47   :  { %2528 = vmax.xlane.f32.xlu1 %v2527_v16 }
0x1e48   :  { %v2530_v18 = vsel %vm206_vm3, %v2526_v17, -inf }
0x1e49   :  { %2531 = vmax.xlane.f32.xlu0 %v2530_v18  ;;  %v78_v18 = vld [vmem:[%s4221_s4 + $0xf0] sm:$0xff] }
0x1ed4   :  { %v2529_v19 = vpop.xlane.xlu1 %2528 }
0x1ed5   :  { %v2533_v23 = vsub.f32 %v2525_v11, %v2529_v19  ;;  %v76_v11 = vld [vmem:[%s4221_s4 + $0xe0] sm:$0xff] }
0x1ed6   :  { %v2532_v25 = vpop.xlane.xlu0 %2531 }
0x1ed7   :  { %v2535_v26 = vmul.f32 1.442695, %v2533_v23  ;;  %v2534_v29 = vsub.f32 %v2526_v17, %v2532_v25  ;;  %v77_v17 = vld [vmem:[%s4221_s4 + $0xe8] sm:$0xff]  ;;  %v80_v23 = vld [vmem:[%s4221_s4 + $0x100] sm:$0xff] }
0x1ed8   :  { %v2696_v19 = vpack.c.bf16 %v78_v18, %v77_v17  ;;  %v81_v25 = vld [vmem:[%s4221_s4 + $0x108] sm:$0xff] }
0x1ed9   :  { %3406 = vpow2.f32 %v2535_v26  ;;  %v2537_v30 = vmul.f32 1.442695, %v2534_v29  ;;  %v82_v26 = vld [vmem:[%s4221_s4 + $0x110] sm:$0xff]  ;;  %v2748_v29 = vpack.c.bf16 %v81_v25, %v80_v23 }
0x1edb   :  { %3408 = vpow2.f32 %v2537_v30  ;;  %v83_v30 = vld [vmem:[%s4221_s4 + $0x118] sm:$0xff] }
0x1ee3   :  { %v3407_v31 = vpop.eup %3406 }
0x1ee4   :  { %v2539_v33 = vsel %vm206_vm3, %v3407_v31, 0.0 }
0x1ee5   :  { %v3409_v56 = vpop.eup %3408  ;;  %2540 = vadd.xlane.f32.xlu0 %v2539_v33 }
0x1ee6   :  { %v2542_v35 = vsel %vm206_vm3, %v3409_v56, 0.0 }
0x1ee7   :  { %2543 = vadd.xlane.f32.xlu1 %v2542_v35 }
0x1efb   :  { %2550 = vrot.lane.b32.xlu0 %v3991_v63, %s3455_s21 }
0x1f11   :  { %v2463_v61 = vpop.f32.mrb[80].mxu1 }
0x1f12   :  { %v2470_v39 = vadd.f32 %v2463_v61, %v4074_v24  ;;  %v3250_v40 = vpop.f32.mrb[81].mxu1  ;;  %v72_v24 = vld [vmem:[%s4221_s4 + $0xc0] sm:$0xff] }
0x1f13   :  { %v2466_v41 = vpop.f32.mrb[82].mxu1 }
0x1f14   :  { %v2471_v42 = vadd.f32 %v2466_v41, %v4076_v27  ;;  %v3251_v20 = vpop.f32.mrb[83].mxu1  ;;  %v2598_v27 = vpack.c.bf16 %v72_v24, %v72_v24  ;;  %v74_v41 = vld [vmem:[%s4221_s4 + $0xd0] sm:$0xff] }
0x1f15   :  { %v2685_v20 = vrot.slane %v74_v41, %v3530_v12 }
0x1f16   :  { %v2603_v8 = vsel %vm409_vm4, %v2598_v27, 0  ;;  %v84_v27 = vld [vmem:[%s4221_s4 + $0x120] sm:$0xff] }
0x1f17   :  { %3265 = vmatpush3.bf16.msra.mxu0 %v2603_v8  ;;  %v85_v8 = vld [vmem:[%s4221_s4 + $0x128] sm:$0xff] }
0x1f18   :  { %3278 = vmatprep.subr.bf16.mxu0 %v3446_v3 }
0x1f72   :  { %v2541_v22 = vpop.xlane.xlu0 %2540 }
0x1f73   :  { %3410 = vrcp.f32 %v2541_v22 }
0x1f74   :  { %v2544_v43 = vpop.xlane.xlu1 %2543 }
0x1f75   :  { %3412 = vrcp.f32 %v2544_v43 }
0x1f76   :  { %v2551_v44 = vpop.permute.xlu0 %2550 }
0x1f77   :  { %3259 = vmatpush3.bf16.msra.mxu1 %v2551_v44 }
0x1f78   :  { %3270 = vmatprep.subr.bf16.mxu1 %v3446_v3 }
0x1f7d   :  { %v3411_v60 = vpop.eup %3410 }
0x1f7e   :  { %v2547_v46 = vmul.f32 %v3411_v60, %v3407_v31  ;;  %v2749_v31 = vpack.c.bf16 %v83_v30, %v82_v26 }
0x1f7f   :  { %v3413_v45 = vpop.eup %3412 }
0x1f80   :  { %v2548_v63 = vmul.f32 %v3413_v45, %v3409_v56  ;;  %v2691_v45 = vrot.slane %v74_v41, %v3712_v4 }
0x1f82   :  { %v2549_v7 = vpack.c.bf16 %v2548_v63, %v2547_v46 }
0x1f84   :  { %3261 = vmatmul.mubr.msk.bf16.vlgmr.msra.gmra.mrb[84].mxu1 %vm206_vm3, %v2549_v7 }
0x1f85   :  { %3274 = vmatprep.mubr.msk.bf16.mxu1 %vm3447_vm0, %v3446_v3 }
0x2057   :  { %v2590_v47 = vpop.f32.mrb[84].mxu1 }
0x2058   :  { %v3262_v48 = vpop.f32.mrb[85].mxu1 }
0x2059   :  { %v2593_v50 = vpop.f32.mrb[86].mxu1  ;;  %v86_v48 = vld [vmem:[%s4221_s4 + $0x130] sm:$0xff] }
0x205a   :  { %v2597_v51 = vpack.c.bf16 %v2593_v50, %v2590_v47  ;;  %v3263_v54 = vpop.f32.mrb[87].mxu1  ;;  %v2750_v47 = vpack.c.bf16 %v85_v8, %v84_v27  ;;  %v87_v50 = vld [vmem:[%s4221_s4 + $0x138] sm:$0xff] }
0x205b   :  { %v79_v54 = vld [vmem:[%s4221_s4 + $0xf8] sm:$0xff] }
0x205c   :  { %3267 = vmatmul.mubr.msk.bf16.vlgmr.msra.gmra.mrb[76].mxu0 %vm154_vm2, %v2597_v51  ;;  %v2751_v51 = vpack.c.bf16 %v87_v50, %v86_v48  ;;  %v2700_v52 = vrot.slane %v79_v54, %v3530_v12 }
0x205d   :  { %3286 = vmatprep.mubr.msk.bf16.mxu0 %vm3447_vm0, %v3446_v3  ;;  %3279 = vmatpush3.bf16.msra.mxu0 %v2748_v29 }
0x205e   :  { %3280 = vmatprep.subr.bf16.mxu0 %v3446_v3 }
0x2061   :  { %3281 = vmatpush3.bf16.msra.mxu0 %v2749_v31 }
0x2062   :  { %3282 = vmatprep.subr.bf16.mxu0 %v3446_v3 }
0x2065   :  { %3283 = vmatpush3.bf16.msra.mxu0 %v2750_v47 }
0x2066   :  { %3284 = vmatprep.subr.bf16.mxu0 %v3446_v3 }
0x2069   :  { %3285 = vmatpush3.bf16.msra.mxu0 %v2751_v51 }
0x212f   :  { %v2639_v28 = vpop.f32.mrb[76].mxu0 }
0x2130   :  { %v2646_v55 = vadd.f32 %v2639_v28, %v2470_v39  ;;  %v3268_v58 = vpop.f32.mrb[77].mxu0 }
0x2131   :  { %v2642_v32 = vpop.f32.mrb[78].mxu0 }
0x2132   :  { %v2652_v59 = vadd.f32 %v2651_v57, %v2646_v55  ;;  %v2647_v15 = vadd.f32 %v2642_v32, %v2471_v42  ;;  %v3269_v21 = vpop.f32.mrb[79].mxu0 }
0x2134   :  { %v2653_v62 = vadd.f32 %v2651_v57, %v2647_v15  ;;  %v2654_v49 = vadd.f32 %v2652_v59, %v3978_v36 }
0x2136   :  { %v2656_v0 = vsel %vm105_vm1, %v2654_v49, 0.0  ;;  %v2655_v34 = vadd.f32 %v2653_v62, %v3980_v38  ;;  %v75_v38 = vld [vmem:[%s4221_s4 + $0xd8] sm:$0xff]  ;;  %v88_v62 = vld [vmem:[%s4221_s4 + $0x140] sm:$0xff] }
0x2137   :  { %2657 = vadd.xlane.f32.xlu1 %v2656_v0  ;;  %v2695_v16 = vpack.c.bf16 %v76_v11, %v75_v38 }
0x2138   :  { %v2659_v37 = vsel %vm105_vm1, %v2655_v34, 0.0 }
0x2139   :  { %3271 = vmatpush3.bf16.msra.mxu1 %v2695_v16 }
0x213a   :  { %3272 = vmatprep.subr.bf16.mxu1 %v3446_v3 }
0x213b   :  { %2660 = vadd.xlane.f32.xlu1 %v2659_v37 }
0x213d   :  { %3273 = vmatpush3.bf16.msra.mxu1 %v2696_v19 }
0x21c4   :  { %v2658_v1 = vpop.xlane.xlu1 %2657 }
0x21c5   :  { %v2662_v2 = vmul.f32 0.03125, %v2658_v1 }
0x21c7   :  { %v2664_v5 = vsub.f32 %v2654_v49, %v2662_v2  ;;  %v2755_v49 = vrot.slane %v88_v62, %v3530_v12 }
0x21c8   :  { %v2661_v6 = vpop.xlane.xlu1 %2660 }
0x21c9   :  { %v2663_v9 = vmul.f32 0.03125, %v2661_v6  ;;  %v2666_v10 = vmul.f32 %v2664_v5, %v2664_v5 }
0x21cb   :  { %v2665_v13 = vsub.f32 %v2655_v34, %v2663_v9  ;;  %v2668_v14 = vsel %vm105_vm1, %v2666_v10, 0.0 }
0x21cc   :  { %2669 = vadd.xlane.f32.xlu1 %v2668_v14 }
0x21cd   :  { %v2667_v53 = vmul.f32 %v2665_v13, %v2665_v13 }
0x21cf   :  { %v2671_v36 = vsel %vm105_vm1, %v2667_v53, 0.0 }
0x21d0   :  { %2672 = vadd.xlane.f32.xlu1 %v2671_v36 }
0x2259   :  { %v2670_v33 = vpop.xlane.xlu1 %2669 }
0x225a   :  { %v2674_v56 = vmul.f32 0.03125, %v2670_v33 }
0x225c   :  { %v2676_v35 = vadd.f32 1e-05, %v2674_v56  ;;  %v89_v56 = vld [vmem:[%s4221_s4 + $0x148] sm:$0xff]  ;;  %s3422_s4 = scalar_lea.vmem %s2848_s22, 256 }
0x225d   :  { %v2673_v61 = vpop.xlane.xlu1 %2672  ;;  %p3423_p0 = scmp.ne.s32.totalorder %s2848_s22, %s3422_s4  ;;  %p3428_p2 = scmp.lt.s32.totalorder %s3422_s4, %s3422_s4 }
0x225e   :  { %3414 = vrsqrt.f32 %v2676_v35  ;;  %v2675_v39 = vmul.f32 0.03125, %v2673_v61  ;;  %v2831_v35 = vrot.slane %v89_v56, %v3530_v12 }
0x225f   :  { %p3429_p3 = por %p3428_p2, %p3427_p1 }
0x2260   :  { %v2677_v40 = vadd.f32 1e-05, %v2675_v39 }
0x2261   :  { %p3430_p4 = pnand %p3429_p3, %p3423_p0 }
0x2262   :  { %3416 = vrsqrt.f32 %v2677_v40  ;;  %v2837_v40 = vrot.slane %v89_v56, %v3712_v4 }
0x2268   :  { %v3415_v42 = vpop.eup %3414 }
0x2269   :  { %v2680_v22 = vmul.f32 %v3415_v42, %v2664_v5 }
0x226b   :  { %v2686_v44 = vmul.f32 %v2685_v20, %v2680_v22 }
0x226c   :  { %v3417_v43 = vpop.eup %3416 }
0x226d   :  { %v2681_v60 = vmul.f32 %v3417_v43, %v2665_v13  ;;  %v2692_v63 = vadd.f32 %v2691_v45, %v2686_v44 }
0x226f   :  { %v2687_v46 = vmul.f32 %v2685_v20, %v2681_v60 }
0x2271   :  { %v2693_v7 = vadd.f32 %v2691_v45, %v2687_v46 }
0x2273   :  { %v2694_v24 = vpack.c.bf16 %v2693_v7, %v2692_v63 }
0x2275   :  { %3275 = vmatmul.mubr.msk.bf16.vlgmr.msra.gmra.mrb[88].mxu1 %vm105_vm1, %v2694_v24 }
0x2348   :  { %v2738_v57 = vpop.f32.mrb[88].mxu1 }
0x2349   :  { %v2739_v28 = vadd.f32 %v2738_v57, %v2700_v52  ;;  %v3276_v55 = vpop.f32.mrb[89].mxu1 }
0x234a   :  { %v2741_v3 = vpop.f32.mrb[90].mxu1 }
0x234b   :  { %v2742_v58 = vadd.f32 %v2741_v3, %v2700_v52  ;;  %v3277_v32 = vpop.f32.mrb[91].mxu1  ;;  %v2745_v59 = vmax.f32 %v2739_v28, 0.0 }
0x234d   :  { %v2746_v15 = vmax.f32 %v2742_v58, 0.0 }
0x234f   :  { %v2747_v21 = vpack.c.bf16 %v2746_v15, %v2745_v59 }
0x2351   :  { %3287 = vmatmul.mubr.msk.bf16.vlgmr.msra.gmra.mrb[80].mxu0 %vm962_vm5, %v2747_v21 }
0x2424   :  { %v2793_v0 = vpop.f32.mrb[80].mxu0 }
0x2425   :  { %v2794_v34 = vadd.f32 %v2793_v0, %v2755_v49  ;;  %v3288_v37 = vpop.f32.mrb[81].mxu0 }
0x2426   :  { %v2796_v1 = vpop.f32.mrb[82].mxu0 }
0x2427   :  { %v2800_v2 = vadd.f32 %v2794_v34, %v2692_v63  ;;  %v2797_v5 = vadd.f32 %v2796_v1, %v2755_v49  ;;  %v3289_v6 = vpop.f32.mrb[83].mxu0 }
0x2429   :  { %v2801_v9 = vadd.f32 %v2797_v5, %v2693_v7  ;;  %v2802_v10 = vsel %vm105_vm1, %v2800_v2, 0.0 }
0x242a   :  { %2803 = vadd.xlane.f32.xlu1 %v2802_v10 }
0x242b   :  { %v2805_v13 = vsel %vm105_vm1, %v2801_v9, 0.0 }
0x242e   :  { %2806 = vadd.xlane.f32.xlu1 %v2805_v13 }
0x24b7   :  { %v2804_v14 = vpop.xlane.xlu1 %2803 }
0x24b8   :  { %v2808_v53 = vmul.f32 0.03125, %v2804_v14 }
0x24ba   :  { %v2810_v36 = vsub.f32 %v2800_v2, %v2808_v53 }
0x24bb   :  { %v2807_v38 = vpop.xlane.xlu1 %2806 }
0x24bc   :  { %v2809_v11 = vmul.f32 0.03125, %v2807_v38  ;;  %v2812_v16 = vmul.f32 %v2810_v36, %v2810_v36 }
0x24be   :  { %v2811_v17 = vsub.f32 %v2801_v9, %v2809_v11  ;;  %v2814_v18 = vsel %vm105_vm1, %v2812_v16, 0.0 }
0x24bf   :  { %2815 = vadd.xlane.f32.xlu0 %v2814_v18 }
0x24c0   :  { %v2813_v19 = vmul.f32 %v2811_v17, %v2811_v17 }
0x24c2   :  { %v2817_v23 = vsel %vm105_vm1, %v2813_v19, 0.0 }
0x24c3   :  { %2818 = vadd.xlane.f32.xlu1 %v2817_v23 }
0x254c   :  { %v2816_v25 = vpop.xlane.xlu0 %2815 }
0x254d   :  { %v2820_v26 = vmul.f32 0.03125, %v2816_v25 }
0x254f   :  { %v2822_v29 = vadd.f32 1e-05, %v2820_v26 }
0x2550   :  { %v2819_v30 = vpop.xlane.xlu1 %2818 }
0x2551   :  { %3418 = vrsqrt.f32 %v2822_v29  ;;  %v2821_v31 = vmul.f32 0.03125, %v2819_v30 }
0x2553   :  { %v2823_v33 = vadd.f32 1e-05, %v2821_v31 }
0x2555   :  { %3420 = vrsqrt.f32 %v2823_v33 }
0x255b   :  { %v3419_v61 = vpop.eup %3418 }
0x255c   :  { %v2826_v39 = vmul.f32 %v3419_v61, %v2810_v36 }
0x255e   :  { %v2832_v41 = vmul.f32 %v2831_v35, %v2826_v39 }
0x255f   :  { %v3421_v42 = vpop.eup %3420 }
0x2560   :  { %v2827_v20 = vmul.f32 %v3421_v42, %v2811_v17  ;;  %v2838_v22 = vadd.f32 %v2837_v40, %v2832_v41 }
0x2562   :  { %v2833_v43 = vmul.f32 %v2831_v35, %v2827_v20  ;;  %2840 = vst.msk [vmem:[#allocation2] sm:$0xff] %vm105_vm1, %v2838_v22 }
0x2564   :  { %v2839_v44 = vadd.f32 %v2837_v40, %v2833_v43 }
0x2566   :  { %2841 = vst.msk [vmem:[#allocation2 + $0x8] sm:$0xff] %vm105_vm1, %v2839_v44 }
0x2567   :  { %3433 = shalt.err (!%p3430_p4)
}
0x2568   :  { %s3434_s11 = scalar_lea.hbm %s4222_s5, 256 }
0x2569   :  { %p3435_p5 = scmp.ne.s32.totalorder %s4222_s5, %s3434_s11  ;;  %p3438_p6 = scmp.lt.u32.totalorder %s3434_s11, %s4222_s5 }
0x256b   :  { %p3440_p7 = pnand %p3438_p6, %p3435_p5 }
0x256d   :  { %3443 = shalt.err (!%p3440_p7)
}
0x256e   :  { %s3460_s19 = smov 128   ;;  %s3461_s20 = smov 8  }
0x256f   :  { %2853 = dma.vmem_to_hbm [thread:$0]  %s2848_s22, 256, %s4222_s5, [#allocation3], %s3460_s19, %s3460_s19, %s3461_s20  }
0x2570   :  { %3444 = dma.done.wait [#allocation3], 256  }
0x2571   :  { %3445 = vsyncadd [#allocation3], 4294967040 }
0x2572   :  { %2857 = vsyncpa [#allocation3], 1 }

</bundles_post_ra>
